<compile_context>
chip_gen: v7x
topology: tpu7x:2x2x1
jax: 0.10.0
libtpu: 0.0.40
codegen_flags: <defaults>
</compile_context>

<pallas_src>
import math
import numpy as np
import jax
import jax.numpy as jnp
from jax.experimental import pallas as pl
from jax.experimental.pallas import tpu as pltpu

# ----------------------- configuration (module-consistent) -------------------
D_IN = 3
MULTIRES = 4
D_OUT = 4
FEATURE = 32
HIDDEN = 64
BIAS = 1.0
INPUT_CH = D_IN + D_IN * 2 * MULTIRES      # 27 embedding features
EMB_P = 2 * MULTIRES * D_IN                # 24 periodic embedding rows
OUT_DIM = D_OUT + FEATURE                  # 36
OUT_PAD = 40                               # padded to a full 8-sublane group
SKIP_OUT = HIDDEN - INPUT_CH               # 37 (out width of lin1)
N_POINTS = 2048                            # example batch

# packed weight-slab row layout (all starts 8-aligned)
RW_AP, RW_W0, RW_W1, RW_W2A, RW_W2E, RW_W3, RW_W4 = 0, 24, 88, 128, 192, 256, 320
RW_B1, RW_B3, RW_B4 = 360, 400, 464
PACK_ROWS = 504


def _softplus100(v):
    # torch.nn.Softplus(beta=100, threshold=20): linear where beta*x > 20.
    # The where already selects the linear branch; exp may overflow to +inf in
    # the discarded lanes, but log1p(+inf)=+inf is dropped by the select (no NaN).
    bv = 100.0 * v
    return jnp.where(bv > 20.0, v, jnp.log1p(jnp.exp(bv)) * 0.01)


# ------------------------------- Pallas kernel --------------------------------
def sem_mlp_kernel(x_ref, w_ref, o_ref):
    x1 = x_ref[...]                                          # (4, T): [x; 1]

    # periodic embedding rows: sin(Ap @ x + phase); phase rides in the ones row
    emb_p = jnp.sin(jnp.dot(w_ref[RW_AP:RW_AP + 24, 0:4], x1,
                            preferred_element_type=jnp.float32))         # (24, T)

    # embedding slab: rows = [sin/cos (24) ; x (3) ; 1]
    # (the trailing ones-row carries the lin0 / skip-layer biases)
    emb = jnp.concatenate([emb_p, x1], axis=0)               # (28, T)

    # lin0 + softplus (bias folded into the packed weight's last column)
    h = _softplus100(jnp.dot(w_ref[RW_W0:RW_W0 + 64, 0:28], emb,
                             preferred_element_type=jnp.float32))         # (64, T)

    # lin1 + softplus
    h = _softplus100(jnp.dot(w_ref[RW_W1:RW_W1 + SKIP_OUT, 0:64], h,
                             preferred_element_type=jnp.float32)
                     + w_ref[RW_B1:RW_B1 + SKIP_OUT, 0:1])                # (37, T)

    # skip layer: (cat([h, emb_torch], 1)/sqrt(2)) @ W2^T + b2
    #   == W2a @ h + W2e @ emb   (1/sqrt(2) and b2 folded into the pack)
    h = _softplus100(jnp.dot(w_ref[RW_W2A:RW_W2A + 64, 0:SKIP_OUT], h,
                             preferred_element_type=jnp.float32)
                     + jnp.dot(w_ref[RW_W2E:RW_W2E + 64, 0:28], emb,
                               preferred_element_type=jnp.float32))       # (64, T)

    # lin3 + softplus
    h = _softplus100(jnp.dot(w_ref[RW_W3:RW_W3 + 64, 0:64], h,
                             preferred_element_type=jnp.float32)
                     + w_ref[RW_B3:RW_B3 + 64, 0:1])                      # (64, T)

    # lin4 (no activation) -> 40-row padded, lane-dense store
    o_ref[...] = (jnp.dot(w_ref[RW_W4:RW_W4 + OUT_PAD, 0:64], h,
                          preferred_element_type=jnp.float32)
                  + w_ref[RW_B4:RW_B4 + OUT_PAD, 0:1]).astype(o_ref.dtype)


def forward_pallas(x, w_pack, tile_n=None):
    """x: (N, 3) points; w_pack: (PACK_ROWS, 128) packed weights. Returns (N, OUT_DIM)."""
    N = x.shape[0]
    if tile_n is None:
        # >= 4 grid steps (keeps both v7x TensorCores pipelined), >= 256 lanes
        # per store, <= 2048 lanes of f32 activations (well inside scoped VMEM).
        tile_n = int(max(256, min(2048, pl.next_power_of_2(max(1, N // 4)))))

    # (4, N) input slab: rows 0..2 = x^T, row 3 = ones (bias/phase carrier)
    x1 = jnp.concatenate(
        [x.T.astype(jnp.float32), jnp.ones((1, N), jnp.float32)], axis=0)
    pad = (-N) % tile_n
    if pad:
        x1 = jnp.pad(x1, ((0, 0), (0, pad)))
    Np = N + pad

    out_t = pl.pallas_call(
        sem_mlp_kernel,
        out_shape=jax.ShapeDtypeStruct((OUT_PAD, Np), jnp.float32),
        grid=(Np // tile_n,),
        in_specs=[
            pl.BlockSpec((4, tile_n), lambda i: (0, i)),        # input tile
            pl.BlockSpec((PACK_ROWS, 128), lambda i: (0, 0)),   # packed weights (single DMA)
        ],
        out_specs=pl.BlockSpec((OUT_PAD, tile_n), lambda i: (0, i)),
        compiler_params=pltpu.CompilerParams(dimension_semantics=("parallel",)),
    )(x1, w_pack)

    return out_t[:OUT_DIM, :N].T                               # back to (N, OUT_DIM)


# ------------------------ deterministic parameter setup ------------------------
def init_params():
    keys = jax.random.split(jax.random.PRNGKey(0), 8)

    # Geometric init (multires > 0, skip at layer 2).  nn.utils.weight_norm with
    # g initialized to ||v|| is the identity at init, so effective weights equal
    # the geometric-init values below.
    std0 = math.sqrt(2.0) / math.sqrt(HIDDEN)
    w0 = jnp.zeros((HIDDEN, INPUT_CH), jnp.float32)
    w0 = w0.at[:, :D_IN].set(std0 * jax.random.normal(keys[0], (HIDDEN, D_IN), jnp.float32))
    b0 = jnp.zeros((HIDDEN,), jnp.float32)

    std1 = math.sqrt(2.0) / math.sqrt(SKIP_OUT)
    w1 = std1 * jax.random.normal(keys[1], (SKIP_OUT, HIDDEN), jnp.float32)
    b1 = jnp.zeros((SKIP_OUT,), jnp.float32)

    std2 = math.sqrt(2.0) / math.sqrt(HIDDEN)
    w2 = std2 * jax.random.normal(keys[2], (HIDDEN, HIDDEN), jnp.float32)
    w2 = w2.at[:, -(INPUT_CH - D_IN):].set(0.0)       # zero cols fed by high-freq emb
    b2 = jnp.zeros((HIDDEN,), jnp.float32)

    std3 = math.sqrt(2.0) / math.sqrt(HIDDEN)
    w3 = std3 * jax.random.normal(keys[3], (HIDDEN, HIDDEN), jnp.float32)
    b3 = jnp.zeros((HIDDEN,), jnp.float32)

    mean4 = math.sqrt(math.pi) / math.sqrt(HIDDEN)
    w4 = mean4 + 1e-4 * jax.random.normal(keys[4], (OUT_DIM, HIDDEN), jnp.float32)
    b4 = jnp.full((OUT_DIM,), -BIAS, jnp.float32)

    raw = (w0, b0, w1, b1, w2, b2, w3, b3, w4, b4)
    freqs = 2.0 ** np.linspace(0.0, MULTIRES - 1, MULTIRES)

    # periodic embedding matrix (rows: [sin f0, cos f0, sin f1, cos f1, ...]),
    # cos implemented as sin(z + pi/2)
    Ap = np.zeros((EMB_P, D_IN), np.float32)
    phase = np.zeros((EMB_P,), np.float32)
    r = 0
    for f in freqs:
        Ap[r:r + D_IN, :] = f * np.eye(D_IN); phase[r:r + D_IN] = 0.0;            r += D_IN
        Ap[r:r + D_IN, :] = f * np.eye(D_IN); phase[r:r + D_IN] = math.pi / 2.0;  r += D_IN

    w0n, b0n = np.asarray(w0), np.asarray(b0)
    w1n, b1n = np.asarray(w1), np.asarray(b1)
    w2n, b2n = np.asarray(w2), np.asarray(b2)
    w3n, b3n = np.asarray(w3), np.asarray(b3)
    w4n, b4n = np.asarray(w4), np.asarray(b4)
    s = 1.0 / math.sqrt(2.0)

    # ---- single packed weight slab (PACK_ROWS, 128) ----
    # emb slab column order inside the kernel is [sin/cos (24) ; x (3) ; 1]
    pack = np.zeros((PACK_ROWS, 128), np.float32)
    pack[RW_AP:RW_AP + 24, 0:3] = Ap                                 # Ap
    pack[RW_AP:RW_AP + 24, 3] = phase                                # phase (ones row)
    pack[RW_W0:RW_W0 + 64, 0:24] = w0n[:, D_IN:]                     # W0 periodic cols
    pack[RW_W0:RW_W0 + 64, 24:27] = w0n[:, :D_IN]                    # W0 identity cols
    pack[RW_W0:RW_W0 + 64, 27] = b0n                                 # b0 (ones row)
    pack[RW_W1:RW_W1 + SKIP_OUT, 0:64] = w1n                         # W1
    pack[RW_W2A:RW_W2A + 64, 0:SKIP_OUT] = w2n[:, :SKIP_OUT] * s     # W2 (hidden cols, /sqrt2)
    pack[RW_W2E:RW_W2E + 64, 0:24] = w2n[:, SKIP_OUT + D_IN:] * s    # W2 periodic cols (/sqrt2)
    pack[RW_W2E:RW_W2E + 64, 24:27] = w2n[:, SKIP_OUT:SKIP_OUT + D_IN] * s  # W2 x cols (/sqrt2)
    pack[RW_W2E:RW_W2E + 64, 27] = b2n                               # b2 (ones row, NOT scaled)
    pack[RW_W3:RW_W3 + 64, 0:64] = w3n                               # W3
    pack[RW_W4:RW_W4 + OUT_DIM, 0:64] = w4n                          # W4 (rows 36..39 stay 0)
    pack[RW_B1:RW_B1 + SKIP_OUT, 0] = b1n
    pack[RW_B3:RW_B3 + 64, 0] = b3n
    pack[RW_B4:RW_B4 + OUT_DIM, 0] = b4n

    return jnp.asarray(pack), raw, freqs


# ------------------------------- pure-JAX reference ----------------------------
def forward_ref(x, raw, freqs):
    (w0, b0, w1, b1, w2, b2, w3, b3, w4, b4) = raw
    parts = [x]
    for f in freqs:
        f = float(f)
        parts.append(jnp.sin(f * x))
        parts.append(jnp.cos(f * x))
    emb = jnp.concatenate(parts, axis=-1)
    h = _softplus100(emb @ w0.T + b0)
    h = _softplus100(h @ w1.T + b1)
    h = jnp.concatenate([h, emb], axis=-1) / math.sqrt(2.0)
    h = _softplus100(h @ w2.T + b2)
    h = _softplus100(h @ w3.T + b3)
    return h @ w4.T + b4


if __name__ == "__main__":
    w_pack, raw, freqs = init_params()
    xkey = jax.random.split(jax.random.PRNGKey(0), 2)[1]
    x = jax.random.normal(xkey, (N_POINTS, D_IN), jnp.float32)

    out = jax.block_until_ready(forward_pallas(x, w_pack))
    ref = jax.block_until_ready(forward_ref(x, raw, freqs))

    assert out.shape == (N_POINTS, OUT_DIM)
    if not np.allclose(np.asarray(out), np.asarray(ref), rtol=5e-3, atol=5e-3):
        diff = np.max(np.abs(np.asarray(out) - np.asarray(ref)))
        raise AssertionError(f"Pallas output does not match reference (max abs diff {diff})")

    print("KERNEL_OK")
</pallas_src>

<mosaic_0001>
module attributes {stable_mosaic.version = 11 : i64} {
  func.func @sem_mlp_kernel(%arg0: i32, %arg1: memref<4x512xf32, #tpu.memory_space<vmem>>, %arg2: memref<504x128xf32, #tpu.memory_space<vmem>>, %arg3: memref<40x512xf32, #tpu.memory_space<vmem>>) attributes {dimension_semantics = [#tpu.dimension_semantics<parallel>], iteration_bounds = array<i64: 4>, scalar_prefetch = 0 : i64, scratch_operands = 0 : i64, tpu.core_type = #tpu.core_type<tc>, window_params = [{transform_indices = @transform_0, window_bounds = array<i64: 4, 512>}, {pipeline_mode = #tpu.pipeline_mode<synchronous>, transform_indices = @transform_1, window_bounds = array<i64: 504, 128>}, {transform_indices = @transform_2, window_bounds = array<i64: 40, 512>}]} {
    %c0 = arith.constant 0 : index
    %c0_0 = arith.constant 0 : index
    %0 = vector.load %arg1[%c0, %c0_0] : memref<4x512xf32, #tpu.memory_space<vmem>>, vector<4x512xf32>
    %c0_1 = arith.constant 0 : index
    %c0_2 = arith.constant 0 : index
    %1 = vector.load %arg2[%c0_1, %c0_2] : memref<504x128xf32, #tpu.memory_space<vmem>>, vector<24x4xf32>
    %cst = arith.constant dense<0.000000e+00> : vector<24x512xf32>
    %2 = tpu.matmul %1, %0, %cst {dimension_numbers = #tpu.dot_dimension_numbers<[1], [0], [0], [1], [0, 0, 1, 1], [], []>} : vector<24x4xf32>, vector<4x512xf32>, vector<24x512xf32> -> vector<24x512xf32>
    %3 = math.sin %2 : vector<24x512xf32>
    %4 = tpu.concatenate %3, %0 in 0 : vector<24x512xf32>, vector<4x512xf32> -> vector<28x512xf32>
    %c24 = arith.constant 24 : index
    %c0_3 = arith.constant 0 : index
    %5 = vector.load %arg2[%c24, %c0_3] : memref<504x128xf32, #tpu.memory_space<vmem>>, vector<64x28xf32>
    %cst_4 = arith.constant dense<0.000000e+00> : vector<64x512xf32>
    %6 = tpu.matmul %5, %4, %cst_4 {dimension_numbers = #tpu.dot_dimension_numbers<[1], [0], [0], [1], [0, 0, 1, 1], [], []>} : vector<64x28xf32>, vector<28x512xf32>, vector<64x512xf32> -> vector<64x512xf32>
    %cst_5 = arith.constant 1.000000e+02 : f32
    %7 = vector.broadcast %cst_5 : f32 to vector<64x512xf32>
    %8 = arith.mulf %7, %6 : vector<64x512xf32>
    %cst_6 = arith.constant 2.000000e+01 : f32
    %9 = vector.broadcast %cst_6 : f32 to vector<64x512xf32>
    %10 = arith.cmpf ogt, %8, %9 : vector<64x512xf32>
    %11 = math.exp %8 : vector<64x512xf32>
    %12 = math.log1p %11 : vector<64x512xf32>
    %cst_7 = arith.constant 0.00999999977 : f32
    %13 = vector.broadcast %cst_7 : f32 to vector<64x512xf32>
    %14 = arith.mulf %12, %13 : vector<64x512xf32>
    %15 = arith.select %10, %6, %14 : vector<64x512xi1>, vector<64x512xf32>
    %c88 = arith.constant 88 : index
    %c0_8 = arith.constant 0 : index
    %16 = vector.load %arg2[%c88, %c0_8] : memref<504x128xf32, #tpu.memory_space<vmem>>, vector<37x64xf32>
    %cst_9 = arith.constant dense<0.000000e+00> : vector<37x512xf32>
    %17 = tpu.matmul %16, %15, %cst_9 {dimension_numbers = #tpu.dot_dimension_numbers<[1], [0], [0], [1], [0, 0, 1, 1], [], []>} : vector<37x64xf32>, vector<64x512xf32>, vector<37x512xf32> -> vector<37x512xf32>
    %c360 = arith.constant 360 : index
    %c0_10 = arith.constant 0 : index
    %18 = vector.load %arg2[%c360, %c0_10] : memref<504x128xf32, #tpu.memory_space<vmem>>, vector<37x1xf32>
    %19 = vector.broadcast %18 : vector<37x1xf32> to vector<37x512xf32>
    %20 = arith.addf %17, %19 : vector<37x512xf32>
    %cst_11 = arith.constant 1.000000e+02 : f32
    %21 = vector.broadcast %cst_11 : f32 to vector<37x512xf32>
    %22 = arith.mulf %21, %20 : vector<37x512xf32>
    %cst_12 = arith.constant 2.000000e+01 : f32
    %23 = vector.broadcast %cst_12 : f32 to vector<37x512xf32>
    %24 = arith.cmpf ogt, %22, %23 : vector<37x512xf32>
    %25 = math.exp %22 : vector<37x512xf32>
    %26 = math.log1p %25 : vector<37x512xf32>
    %cst_13 = arith.constant 0.00999999977 : f32
    %27 = vector.broadcast %cst_13 : f32 to vector<37x512xf32>
    %28 = arith.mulf %26, %27 : vector<37x512xf32>
    %29 = arith.select %24, %20, %28 : vector<37x512xi1>, vector<37x512xf32>
    %c128 = arith.constant 128 : index
    %c0_14 = arith.constant 0 : index
    %30 = vector.load %arg2[%c128, %c0_14] : memref<504x128xf32, #tpu.memory_space<vmem>>, vector<64x37xf32>
    %cst_15 = arith.constant dense<0.000000e+00> : vector<64x512xf32>
    %31 = tpu.matmul %30, %29, %cst_15 {dimension_numbers = #tpu.dot_dimension_numbers<[1], [0], [0], [1], [0, 0, 1, 1], [], []>} : vector<64x37xf32>, vector<37x512xf32>, vector<64x512xf32> -> vector<64x512xf32>
    %c192 = arith.constant 192 : index
    %c0_16 = arith.constant 0 : index
    %32 = vector.load %arg2[%c192, %c0_16] : memref<504x128xf32, #tpu.memory_space<vmem>>, vector<64x28xf32>
    %cst_17 = arith.constant dense<0.000000e+00> : vector<64x512xf32>
    %33 = tpu.matmul %32, %4, %cst_17 {dimension_numbers = #tpu.dot_dimension_numbers<[1], [0], [0], [1], [0, 0, 1, 1], [], []>} : vector<64x28xf32>, vector<28x512xf32>, vector<64x512xf32> -> vector<64x512xf32>
    %34 = arith.addf %31, %33 : vector<64x512xf32>
    %cst_18 = arith.constant 1.000000e+02 : f32
    %35 = vector.broadcast %cst_18 : f32 to vector<64x512xf32>
    %36 = arith.mulf %35, %34 : vector<64x512xf32>
    %cst_19 = arith.constant 2.000000e+01 : f32
    %37 = vector.broadcast %cst_19 : f32 to vector<64x512xf32>
    %38 = arith.cmpf ogt, %36, %37 : vector<64x512xf32>
    %39 = math.exp %36 : vector<64x512xf32>
    %40 = math.log1p %39 : vector<64x512xf32>
    %cst_20 = arith.constant 0.00999999977 : f32
    %41 = vector.broadcast %cst_20 : f32 to vector<64x512xf32>
    %42 = arith.mulf %40, %41 : vector<64x512xf32>
    %43 = arith.select %38, %34, %42 : vector<64x512xi1>, vector<64x512xf32>
    %c256 = arith.constant 256 : index
    %c0_21 = arith.constant 0 : index
    %44 = vector.load %arg2[%c256, %c0_21] : memref<504x128xf32, #tpu.memory_space<vmem>>, vector<64x64xf32>
    %cst_22 = arith.constant dense<0.000000e+00> : vector<64x512xf32>
    %45 = tpu.matmul %44, %43, %cst_22 {dimension_numbers = #tpu.dot_dimension_numbers<[1], [0], [0], [1], [0, 0, 1, 1], [], []>} : vector<64x64xf32>, vector<64x512xf32>, vector<64x512xf32> -> vector<64x512xf32>
    %c400 = arith.constant 400 : index
    %c0_23 = arith.constant 0 : index
    %46 = vector.load %arg2[%c400, %c0_23] : memref<504x128xf32, #tpu.memory_space<vmem>>, vector<64x1xf32>
    %47 = vector.broadcast %46 : vector<64x1xf32> to vector<64x512xf32>
    %48 = arith.addf %45, %47 : vector<64x512xf32>
    %cst_24 = arith.constant 1.000000e+02 : f32
    %49 = vector.broadcast %cst_24 : f32 to vector<64x512xf32>
    %50 = arith.mulf %49, %48 : vector<64x512xf32>
    %cst_25 = arith.constant 2.000000e+01 : f32
    %51 = vector.broadcast %cst_25 : f32 to vector<64x512xf32>
    %52 = arith.cmpf ogt, %50, %51 : vector<64x512xf32>
    %53 = math.exp %50 : vector<64x512xf32>
    %54 = math.log1p %53 : vector<64x512xf32>
    %cst_26 = arith.constant 0.00999999977 : f32
    %55 = vector.broadcast %cst_26 : f32 to vector<64x512xf32>
    %56 = arith.mulf %54, %55 : vector<64x512xf32>
    %57 = arith.select %52, %48, %56 : vector<64x512xi1>, vector<64x512xf32>
    %c320 = arith.constant 320 : index
    %c0_27 = arith.constant 0 : index
    %58 = vector.load %arg2[%c320, %c0_27] : memref<504x128xf32, #tpu.memory_space<vmem>>, vector<40x64xf32>
    %cst_28 = arith.constant dense<0.000000e+00> : vector<40x512xf32>
    %59 = tpu.matmul %58, %57, %cst_28 {dimension_numbers = #tpu.dot_dimension_numbers<[1], [0], [0], [1], [0, 0, 1, 1], [], []>} : vector<40x64xf32>, vector<64x512xf32>, vector<40x512xf32> -> vector<40x512xf32>
    %c464 = arith.constant 464 : index
    %c0_29 = arith.constant 0 : index
    %60 = vector.load %arg2[%c464, %c0_29] : memref<504x128xf32, #tpu.memory_space<vmem>>, vector<40x1xf32>
    %61 = vector.broadcast %60 : vector<40x1xf32> to vector<40x512xf32>
    %62 = arith.addf %59, %61 : vector<40x512xf32>
    %c0_30 = arith.constant 0 : index
    %c0_31 = arith.constant 0 : index
    %63 = vector.load %arg3[%c0_30, %c0_31] : memref<40x512xf32, #tpu.memory_space<vmem>>, vector<40x512xf32>
    tpu.vector_store %arg3[%c0_30, %c0_31], %62 {strides = array<i32>} : memref<40x512xf32, #tpu.memory_space<vmem>>, vector<40x512xf32>,
    return
  }
  func.func @transform_0(%arg0: i32) -> (i32, i32) {
    %c0_i32 = arith.constant 0 : i32
    %c0_i32_0 = arith.constant 0 : i32
    return %c0_i32, %arg0 : i32, i32
  }
  func.func @transform_1(%arg0: i32) -> (i32, i32) {
    %c0_i32 = arith.constant 0 : i32
    %c0_i32_0 = arith.constant 0 : i32
    %c0_i32_1 = arith.constant 0 : i32
    return %c0_i32, %c0_i32_0 : i32, i32
  }
  func.func @transform_2(%arg0: i32) -> (i32, i32) {
    %c0_i32 = arith.constant 0 : i32
    %c0_i32_0 = arith.constant 0 : i32
    return %c0_i32, %arg0 : i32, i32
  }
}

</mosaic_0001>

<bundles_post_ra>
// kernel: tpu_custom_call.1
= control target key start
LH: loop header
LB: loop body
LE: loop exit
PB: predicated region body
PF: predicated region fallthrough
CT: control target
= control target key end

     0   :  { %7 = vsyncpa [#allocation3], 0  ;;  %s10213_s0 = inlined_call_operand.hbm [shape: f32[4,2048], index: 0, kind: input, shape index: {}]   ;;  %s10214_s1 = inlined_call_operand.hbm [shape: f32[504,128], index: 1, kind: input, shape index: {}]   ;;  %s10215_s2 = inlined_call_operand.hbm [shape: f32[40,2048], index: 2, kind: output, shape index: {}]  }
   0x1   :  { %9 = vsyncpa [#allocation3 + $0x1], 0 }
   0x2   :  { %10 = vsyncpa [#allocation6], 0 }
   0x3   :  { %11 = vsyncpa [#allocation4], 0 }
   0x4   :  { %13 = vsyncpa [#allocation4 + $0x1], 0  ;;  %s6206_s9 = smov 0   ;;  %s6208_s10 = smov 0  }
   0x5   :  { %s6210_s11 = smov 0   ;;  %s6212_s12 = smov 0  }
   0x6 LB: > { %s6227_s13 = sadd.s32 4294967295, %s6172_s12   ;;  %s5052_s14 = sadd.s32 4294967294, %s6172_s12   ;;  %s6172_s12 = sphi %s6212_s12, %s10708_s12   ;;  %s6168_s11 = sphi %s6210_s11, %s10707_s11   ;;  %s6164_s10 = sphi %s6208_s10, %s10706_s10   ;;  %s6160_s9 = sphi %s6206_s9, %s10705_s9  }
   0x7   : > { %p39_p0 = scmp.ne.s32.totalorder %s6164_s10, %s6160_s9  ;;  %p10216_p1 = scmp.eq.s32.totalorder %s6227_s13, 0 }
   0x8   : > { %p90_p3 = scmp.eq.s32.totalorder %s5052_s14, 3  ;;  %p5053_p5 = scmp.ge.s32.totalorder %s6172_s12, 1 }
   0x9   : > { %p6236_p4 = por %p10216_p1, %p39_p0  ;;  %p97_p7 = scmp.lt.s32.totalorder %s6172_s12, 5 }
   0xa   : > { %p6241_p6 = por %p90_p3, %p39_p0  ;;  %s6174_s18 = smov [#allocation5]  }
   0xb   : > { %s10329_s15 = scalar_select %p6236_p4, 1, 0 }
   0xc   : > { %s10330_s16 = scalar_select %p6241_p6, 1, 0 }
   0xd   : > { %p6246_p8 = pnand %p5053_p5, %p97_p7  ;;  %s109_s19 = sshll.u32 %s6174_s18, 4  ;;  %s110_s19 = int_to_ptr.vmem [resolvable:$true] %s109_s19 }
   0xe   : > { %s6259_s21 = sadd.s32 1, %s6172_s12   ;;  %s26_s22 = sadd.s32 1, %s6168_s11 }
   0xf   : > { %s10331_s17 = scalar_select %p6246_p8, 1, 0 }
  0x10   : > { %p5463_p9 = pneg %p6246_p8  ;;  %s23_s23 = ssub.s32 %s6172_s12, %s6259_s21 }
  0x11   : > { %s6044_s26 = scalar_lea.hbm %s10214_s1, 8064 }
  0x12   : > { %p6254_p10 = pnand %p5463_p9, %p10216_p1  ;;  %p6045_p11 = scmp.ne.s32.totalorder %s10214_s1, %s6044_s26 }
  0x13   : > { %p6051_p3 = scmp.lt.u32.totalorder %s6044_s26, %s10214_s1 }
  0x14   : > { %p6046_p12 = pneg %p6254_p10 }
  0x16   : > { %p6047_p13 = pnand %p6046_p12, %p6045_p11 }
  0x18   : > { %p6048_p0 = pneg %p6047_p13 }
  0x1a   : > { %p6053_p5 = pnand %p6051_p3, %p6048_p0 }
  0x1c   : > { %6056 = shalt.err (!%p6053_p5)
}
  0x1d   : > { %s6057_s3 = scalar_lea.vmem %s110_s19, 8064  ;;  %p6065_p2 = scmp.lt.s32.totalorder %s110_s19, %s110_s19 }
  0x1e   : > { %p6058_p7 = scmp.ne.s32.totalorder %s110_s19, %s6057_s3  ;;  %p6066_p6 = scmp.lt.s32.totalorder %s6057_s3, %s6057_s3 }
  0x20   : > { %p6060_p9 = pnand %p6058_p7, %p6046_p12  ;;  %p6067_p4 = por %p6066_p6, %p6065_p2 }
  0x22   : > { %p6061_p1 = pneg %p6060_p9 }
  0x24   : > { %p6068_p8 = pnand %p6067_p4, %p6061_p1 }
  0x26   : > { %6071 = shalt.err (!%p6068_p8)
}
  0x27   : > { %s6175_s4 = smov 128   ;;  %s6176_s5 = smov 8  }
  0x28   : > { %5466 = dma.hbm_to_vmem [thread:$0]  (!%p6254_p10), %s10214_s1, 8064, %s110_s19, [#allocation6], %s6175_s4, %s6175_s4, %s6176_s5  }
  0x29   : > { %p24_p11 = scmp.eq.s32.totalorder %s23_s23, 0  ;;  %p33_p2 = scmp.ne.s32.totalorder %s6168_s11, %s6164_s10 }
  0x2a   : > { %p34_p1 = scmp.eq.s32.totalorder %s6172_s12, 0  ;;  %p5476_p4 = scmp.lt.s32.totalorder %s6172_s12, 4 }
  0x2b   : > { %s6285_s8 = scalar_select %p24_p11, %s6168_s11, %s26_s22  }
  0x2c   : > { %p35_p6 = por %p34_p1, %p33_p2  ;;  %p10333_p8 = scmp.eq.s32.totalorder %s6227_s13, 3 }
  0x2d   : > { %s123_s18 = sand.u32 1, %s6168_s11   ;;  %s5220_s24 = sshll.u32 %s6172_s12, 8 }
  0x2e   : > { %p6289_p12 = por %p10333_p8, %p33_p2  ;;  %s5056_s25 = sshll.u32 %s123_s18, 4 }
  0x2f   : > { %s6298_s27 = scalar_lea.hbm %s10213_s0, %s5220_s24  ;;  %s127_s19 = scalar_lea.vmem [#allocation2], %s5056_s25 }
  0x30   : > { %s135_s22 = sshll.u32 %s127_s19, 4  ;;  %p6300_p10 = pnand %p5476_p4, %p35_p6  ;;  %s6304_s22 = int_to_ptr.vmem [resolvable:$true] %s135_s22 }
  0x31   : > { %s124_s28 = scalar_lea.sflag [#allocation3], %s123_s18  ;;  %s6072_s29 = scalar_lea.hbm %s6298_s27, 256 }
  0x32   : > { %p6073_p13 = scmp.ne.s32.totalorder %s6298_s27, %s6072_s29  ;;  %p6074_p0 = pneg %p6300_p10 }
  0x33   : > { %s6077_s4 = scalar_lea.hbm %s10213_s0, 1024  ;;  %p6078_p7 = scmp.lt.u32.totalorder %s6298_s27, %s10213_s0 }
  0x34   : > { %p6075_p3 = pnand %p6074_p0, %p6073_p13  ;;  %p6079_p9 = scmp.lt.u32.totalorder %s6077_s4, %s6072_s29 }
  0x35   : > { %p6081_p2 = scmp.lt.u32.totalorder %s6072_s29, %s6298_s27 }
  0x36   : > { %p6076_p5 = pneg %p6075_p3  ;;  %p6080_p11 = por %p6079_p9, %p6078_p7 }
  0x38   : > { %p6082_p1 = por %p6081_p2, %p6080_p11 }
  0x3a   : > { %p6083_p4 = pnand %p6082_p1, %p6076_p5 }
  0x3c   : > { %6086 = shalt.err (!%p6083_p4)
}
  0x3d   : > { %s6087_s7 = scalar_lea.vmem %s6304_s22, 256  ;;  %s6177_s18 = smov [#allocation2]  }
  0x3e   : > { %p6088_p6 = scmp.ne.s32.totalorder %s6304_s22, %s6087_s7  ;;  %s6092_s24 = sshll.u32 %s6177_s18, 4  ;;  %s6093_s24 = int_to_ptr.vmem [resolvable:$false] %s6092_s24 }
  0x3f   : > { %s6094_s25 = scalar_lea.vmem %s6093_s24, 512  ;;  %p6095_p3 = scmp.lt.s32.totalorder %s6304_s22, %s6093_s24 }
  0x40   : > { %p6090_p8 = pnand %p6088_p6, %p6074_p0  ;;  %p6096_p7 = scmp.lt.s32.totalorder %s6094_s25, %s6087_s7 }
  0x42   : > { %p6091_p13 = pneg %p6090_p8  ;;  %p6097_p9 = por %p6096_p7, %p6095_p3 }
  0x44   : > { %p6098_p11 = pnand %p6097_p9, %p6091_p13 }
  0x46   : > { %6101 = shalt.err (!%p6098_p11)
}
  0x47   : > { %5470 = dma.hbm_to_vmem [thread:$0]  (!%p6300_p10), %s6298_s27, 256, %s6304_s22, %s124_s28  }
  0x48   : > { %p10336_p5 = scmp.ne.s32.totalorder %s10331_s17, 0 }
  0x4a   : > { %144 = sbr.rel (%p10336_p5) target bundleno = 2229 (0x8b5), region = 28 }
  0x51   : > { %s6334_s20 = sand.u32 1, %s6164_s10   ;;  %p10337_p0 = scmp.ne.s32.totalorder %s10329_s15, 0 }
  0x52   : > { %s5060_s26 = sshll.u32 %s6334_s20, 4  ;;  %s147_s19 = scalar_lea.sflag [#allocation3], %s6334_s20 }
  0x53   : > { %s6338_s29 = scalar_lea.vmem [#allocation2], %s5060_s26 }
  0x54   : > { %6147 = dma.done.wait (%p10337_p0), %s147_s19, 256  }
  0x55   : > { %6149 = vsyncadd (%p10337_p0), %s147_s19, 4294967040  ;;  %p10338_p10 = scmp.eq.s32.totalorder %s6227_s13, 0 }
  0x57   : > { %6151 = dma.done.wait (%p10338_p10), [#allocation6], 8064   ;;  %p10339_p2 = pmov %p10338_p10 }
  0x58   : > { %v10219_v0 = vmov 0.0   ;;  %v177_v1 = vld [vmem:[%s6338_s29] sm:$0xff]  ;;  %vm196_vm0 = vcmask 1043456   ;;  %v178_v2 = vld [vmem:[%s6338_s29 + $0x8] sm:$0xff]  ;;  %vm186_vm1 = vcmask 31744   ;;  %s5406_s15 = smul.u32 160, %s6334_s20 }
  0x59   : > { %6153 = vsyncadd (%p10339_p2), [#allocation6], 4294959232  ;;  %269 = vmatprep.mubr.f32.mxu0 %v10219_v0  ;;  %352 = vmatprep.mubr.f32.mxu1 %v10219_v0  ;;  %v6352_v3 = vcombine.high %v177_v1, %v177_v1  ;;  %v6354_v4 = vcombine.high %v178_v2, %v178_v2  ;;  %v179_v5 = vld [vmem:[#allocation5] sm:$0xff]  ;;  %v180_v6 = vld [vmem:[#allocation5 + $0x8] sm:$0xff]  ;;  %v10235_v41 = vmov 683565275  }
  0x5a   : > { %v181_v7 = vld [vmem:[#allocation5 + $0x10] sm:$0xff]  ;;  %v10226_v45 = vmov 2475754826   ;;  %v10224_v47 = vmov 2131351028   ;;  %s10141_s17 = scalar_lea.vmem [#allocation7], %s5406_s15 }
  0x5b   : > { %10340 = vst [vmem:[#allocation11_spill] sm:$0xff] %v6352_v3  ;;  %10341 = vst [vmem:[#allocation12_spill] sm:$0xff] %v6354_v4  ;;  %5062 = vmatprep.subr.msk.mxu0 %vm196_vm0, %v6352_v3  ;;  %5067 = vmatprep.subr.msk.mxu1 %vm196_vm0, %v6354_v4  ;;  %v10228_v49 = vmov 2102212464   ;;  %v10230_v51 = vmov 920167782  }
  0x5c   : > { %5063 = vmatpush1.msk.msra.mxu0 %vm196_vm0, %v177_v1  ;;  %5068 = vmatpush1.msk.msra.mxu1 %vm196_vm0, %v178_v2  ;;  %v10233_v58 = vmov 1326507024   ;;  %s5221_s27 = sshll.u32 %s6227_s13, 9  ;;  %s4969_s22 = sshll.u32 %s10141_s17, 4  ;;  %s10168_s22 = int_to_ptr.vmem [resolvable:$true] %s4969_s22 }
  0x5d   : > { %5064 = vmatmul.mubr.msk.f32.vlgmr.msra.gmra.mrb[0].mxu0 %vm186_vm1, %v179_v5  ;;  %5069 = vmatmul.mubr.msk.f32.vlgmr.msra.gmra.mrb[0].mxu1 %vm186_vm1, %v179_v5  ;;  %s10166_s30 = scalar_lea.hbm %s10215_s2, %s5221_s27  ;;  %s4956_s13 = scalar_lea.sflag [#allocation4], %s6334_s20 }
  0x5e   : > { %275 = vmatprep.mubr.f32.mxu0 %v10219_v0  ;;  %358 = vmatprep.mubr.f32.mxu1 %v10219_v0  ;;  %s6102_s3 = scalar_lea.vmem %s10168_s22, 2560  ;;  %s6187_s4 = smov [#allocation7]  }
  0x5f   : > { %p6103_p1 = scmp.ne.s32.totalorder %s10168_s22, %s6102_s3  ;;  %s6106_s5 = sshll.u32 %s6187_s4, 4  ;;  %s6107_s5 = int_to_ptr.vmem [resolvable:$false] %s6106_s5 }
  0x60   : > { %s6108_s6 = scalar_lea.vmem %s6107_s5, 5120  ;;  %p6109_p8 = scmp.lt.s32.totalorder %s10168_s22, %s6107_s5 }
  0x61   : > { %5065 = vmatmul.mubr.msk.f32.gmra.mrb[2].mxu0 %vm186_vm1, %v180_v6  ;;  %5070 = vmatmul.mubr.msk.f32.gmra.mrb[2].mxu1 %vm186_vm1, %v180_v6  ;;  %p6104_p4 = pnand %p6103_p1, %p6289_p12  ;;  %p6110_p13 = scmp.lt.s32.totalorder %s6108_s6, %s6102_s3 }
  0x62   : > { %281 = vmatprep.mubr.f32.mxu0 %v10219_v0  ;;  %364 = vmatprep.mubr.f32.mxu1 %v10219_v0 }
  0x63   : > { %p6105_p6 = pneg %p6104_p4  ;;  %p6111_p3 = por %p6110_p13, %p6109_p8 }
  0x65   : > { %5066 = vmatmul.mubr.msk.f32.gmra.mrb[4].mxu0 %vm186_vm1, %v181_v7  ;;  %5071 = vmatmul.mubr.msk.f32.gmra.mrb[4].mxu1 %vm186_vm1, %v181_v7  ;;  %p6112_p7 = pnand %p6111_p3, %p6105_p6 }
  0x66   : > { %1716 = vmatprep.mubr.f32.mxu0 %v10219_v0  ;;  %1829 = vmatprep.mubr.f32.mxu1 %v10219_v0 }
 0x130   : > { %v6374_v8 = vpop.f32.mrb[0].mxu0  ;;  %v6376_v9 = vpop.f32.mrb[0].mxu1 }
 0x131   : > { %10342 = vst [vmem:[#allocation13_spill] sm:$0xff] %v6374_v8  ;;  %10343 = vst [vmem:[#allocation14_spill] sm:$0xff] %v6376_v9  ;;  %v371_v10 = vand.u32 2147483647, %v6374_v8  ;;  %v374_v11 = vand.u32 2139095040, %v6374_v8  ;;  %v6380_v12 = vpop.f32.mrb[1].mxu0 }
 0x132   : > { %v6382_v13 = vpop.f32.mrb[1].mxu1  ;;  %v579_v14 = vand.u32 2147483647, %v6376_v9  ;;  %v582_v15 = vand.u32 2139095040, %v6376_v9  ;;  %v478_v20 = vand.u32 2139095040, %v6380_v12 }
 0x133   : > { %10344 = vst [vmem:[#allocation15_spill] sm:$0xff] %v6382_v13  ;;  %v375_v16 = vshrl.u32 %v374_v11, 23  ;;  %v378_v17 = vand.u32 8388607, %v371_v10 }
 0x134   : > { %v583_v18 = vshrl.u32 %v582_v15, 23  ;;  %v586_v19 = vand.u32 8388607, %v579_v14  ;;  %v479_v23 = vshrl.u32 %v478_v20, 23  ;;  %v6391_v24 = vpop.f32.mrb[2].mxu0  ;;  %v6393_v25 = vpop.f32.mrb[2].mxu1 }
 0x135   : > { %v5072_v21 = vadd.s32 4294967169, %v375_v16  ;;  %10345 = vst [vmem:[#allocation16_spill] sm:$0xff] %v6391_v24  ;;  %v379_v27 = vor.u32 8388608, %v378_v17  ;;  %v6395_v31 = vpop.f32.mrb[3].mxu0  ;;  %v6397_v32 = vpop.f32.mrb[3].mxu1 }
 0x136   : > { %v5080_v22 = vadd.s32 4294967169, %v583_v18  ;;  %v587_v28 = vor.u32 8388608, %v586_v19  ;;  %v5076_v30 = vadd.s32 4294967169, %v479_v23 }
 0x137   : > { %v381_v26 = vadd.s32 1, %v5072_v21  ;;  %v6399_v37 = vshll.u32 %v379_v27, 8 }
 0x138   : > { %v589_v29 = vadd.s32 1, %v5080_v22  ;;  %v6401_v38 = vshll.u32 %v587_v28, 8  ;;  %v6403_v39 = vadd.s32 1, %v5076_v30  ;;  %v6421_v15 = vpop.f32.mrb[4].mxu0 }
 0x139   : > { %vm382_vm2 = vcmp.gt.s32.totalorder %v381_v26, 0 }
 0x13a   : > { %v383_v33 = vsel %vm382_vm2, %v381_v26, 0  ;;  %vm590_vm3 = vcmp.gt.s32.totalorder %v589_v29, 0  ;;  %vm486_vm8 = vcmp.gt.s32.totalorder %v6403_v39, 0 }
 0x13b   : > { %v384_v34 = vshrl.u32 %v383_v33, 5  ;;  %v385_v35 = vand.u32 31, %v383_v33  ;;  %v591_v36 = vsel %vm590_vm3, %v589_v29, 0 }
 0x13c   : > { %v6406_v43 = vshrl.u32 %v591_v36, 5  ;;  %v593_v44 = vand.u32 31, %v591_v36 }
 0x13d   : > { %v386_v40 = vsub.s32 32, %v385_v35  ;;  %v388_v42 = vshll.u32 %v10235_v41, %v385_v35  ;;  %v391_v46 = vshll.u32 %v10226_v45, %v385_v35  ;;  %v394_v48 = vshll.u32 %v10224_v47, %v385_v35 }
 0x13e   : > { %v397_v50 = vshll.u32 %v10228_v49, %v385_v35  ;;  %v400_v52 = vshll.u32 %v10230_v51, %v385_v35  ;;  %vm403_vm4 = vcmp.lt.s32.totalorder %v384_v34, 1  ;;  %vm404_vm5 = vcmp.lt.s32.totalorder %v384_v34, 2 }
 0x13f   : > { %v389_v53 = vshrl.u32 %v10226_v45, %v386_v40  ;;  %v392_v54 = vshrl.u32 %v10224_v47, %v386_v40  ;;  %v395_v55 = vshrl.u32 %v10228_v49, %v386_v40  ;;  %v387_v56 = vshrl.u32 %v10235_v41, %v386_v40 }
 0x140   : > { %v398_v57 = vshrl.u32 %v10230_v51, %v386_v40  ;;  %v401_v59 = vshrl.u32 %v10233_v58, %v386_v40  ;;  %v594_v63 = vsub.s32 32, %v593_v44  ;;  %vm405_vm6 = vcmp.lt.s32.totalorder %v384_v34, 3 }
 0x141   : > { %v390_v60 = vor.u32 %v389_v53, %v388_v42  ;;  %v393_v61 = vor.u32 %v392_v54, %v391_v46  ;;  %v396_v62 = vor.u32 %v395_v55, %v394_v48  ;;  %vm406_vm7 = vcmp.lt.s32.totalorder %v384_v34, 4 }
 0x142   : > { %v399_v1 = vor.u32 %v398_v57, %v397_v50  ;;  %v402_v2 = vor.u32 %v401_v59, %v400_v52  ;;  %v596_v19 = vshll.u32 %v10235_v41, %v593_v44  ;;  %v597_v22 = vshrl.u32 %v10226_v45, %v594_v63 }
 0x143   : > { %v407_v5 = vsel %vm403_vm4, %v387_v56, %v390_v60  ;;  %v408_v6 = vsel %vm406_vm7, %v396_v62, 2102212464  ;;  %v411_v7 = vsel %vm403_vm4, %v390_v60, %v393_v61  ;;  %v415_v11 = vsel %vm403_vm4, %v393_v61, %v396_v62 }
 0x144   : > { %v409_v16 = vsel %vm405_vm6, %v393_v61, %v408_v6  ;;  %v412_v17 = vsel %vm406_vm7, %v399_v1, 920167782  ;;  %v416_v18 = vsel %vm406_vm7, %v402_v2, 1326507024  ;;  %v599_v23 = vshll.u32 %v10226_v45, %v593_v44 }
 0x145   : > { %v413_v20 = vsel %vm405_vm6, %v396_v62, %v412_v17  ;;  %v417_v21 = vsel %vm405_vm6, %v399_v1, %v416_v18  ;;  %v410_v26 = vsel %vm404_vm5, %v407_v5, %v409_v16  ;;  %v600_v29 = vshrl.u32 %v10224_v47, %v594_v63 }
 0x146   : > { %v414_v27 = vsel %vm404_vm5, %v411_v7, %v413_v20  ;;  %v418_v28 = vsel %vm404_vm5, %v415_v11, %v417_v21  ;;  %v598_v40 = vor.u32 %v597_v22, %v596_v19  ;;  %v602_v46 = vshll.u32 %v10224_v47, %v593_v44 }
 0x147   : > { %v6432_v30 = vmul.u32.u64.low %v6399_v37, %v418_v28  ;;  %v6433_v33 = vmul.u32.u64.high %v6399_v37, %v418_v28, %v6432_v30  ;;  %v6436_v35 = vmul.u32.u64.low %v6399_v37, %v414_v27  ;;  %v6437_v36 = vmul.u32.u64.high %v6399_v37, %v414_v27, %v6436_v35 }
 0x148   : > { %v601_v42 = vor.u32 %v600_v29, %v599_v23  ;;  %v603_v48 = vshrl.u32 %v10228_v49, %v594_v63  ;;  %v595_v34 = vshrl.u32 %v10235_v41, %v594_v63  ;;  %v605_v50 = vshll.u32 %v10228_v49, %v593_v44 }
 0x149   : > { %v606_v52 = vshrl.u32 %v10230_v51, %v594_v63  ;;  %v609_v53 = vshrl.u32 %v10233_v58, %v594_v63  ;;  %v426_v54 = vmul.u32 %v6399_v37, %v410_v26  ;;  %v608_v56 = vshll.u32 %v10230_v51, %v593_v44 }
 0x14a   : > { %v604_v55 = vor.u32 %v603_v48, %v602_v46  ;;  %vm611_vm9 = vcmp.lt.s32.totalorder %v6406_v43, 1  ;;  %vm428_vm10 = vc.u32 %v6433_v33, %v6436_v35  ;;  %v429_v57 = vadd.s32 1, %v6437_v36 }
 0x14b   : > { %v607_v59 = vor.u32 %v606_v52, %v605_v50  ;;  %vm612_vm11 = vcmp.lt.s32.totalorder %v6406_v43, 2  ;;  %v610_v60 = vor.u32 %v609_v53, %v608_v56  ;;  %vm613_vm12 = vcmp.lt.s32.totalorder %v6406_v43, 3 }
 0x14c   : > { %vm614_vm13 = vcmp.lt.s32.totalorder %v6406_v43, 4  ;;  %v619_v61 = vsel %vm611_vm9, %v598_v40, %v601_v42  ;;  %v430_v37 = vsel %vm428_vm10, %v429_v57, %v6437_v36  ;;  %v623_v63 = vsel %vm611_vm9, %v601_v42, %v604_v55 }
 0x14d   : > { %v616_v62 = vsel %vm614_vm13, %v604_v55, 2102212464  ;;  %v620_v44 = vsel %vm614_vm13, %v607_v59, 920167782  ;;  %v431_v1 = vadd.s32 %v430_v37, %v426_v54  ;;  %v615_v2 = vsel %vm611_vm9, %v595_v34, %v598_v40 }
 0x14e   : > { %v621_v5 = vsel %vm613_vm12, %v604_v55, %v620_v44  ;;  %v624_v6 = vsel %vm614_vm13, %v610_v60, 1326507024  ;;  %v617_v7 = vsel %vm613_vm12, %v601_v42, %v616_v62  ;;  %v487_v17 = vsel %vm486_vm8, %v6403_v39, 0 }
 0x14f   : > { %v622_v11 = vsel %vm612_vm11, %v619_v61, %v621_v5  ;;  %v625_v16 = vsel %vm613_vm12, %v607_v59, %v624_v6  ;;  %v432_v18 = vadd.s32 536870912, %v431_v1  ;;  %v618_v27 = vsel %vm612_vm11, %v615_v2, %v617_v7  ;;  %v6495_v61 = vpop.f32.mrb[4].mxu1 }
 0x150   : > { %v626_v19 = vsel %vm612_vm11, %v623_v63, %v625_v16  ;;  %v6464_v20 = vmul.u32.u64.low %v6401_v38, %v622_v11  ;;  %v6465_v21 = vmul.u32.u64.high %v6401_v38, %v622_v11, %v6464_v20  ;;  %v10223_v39 = vand.u32 2147483647, %v6380_v12  ;;  %10346 = vst [vmem:[#allocation17_spill] sm:$0xff] %v6495_v61 }
 0x151   : > { %v6469_v22 = vmul.u32.u64.low %v6401_v38, %v626_v19  ;;  %v6470_v23 = vmul.u32.u64.high %v6401_v38, %v626_v19, %v6469_v22  ;;  %v6472_v26 = vshrl.u32 %v432_v18, 30  ;;  %v489_v28 = vand.u32 31, %v487_v17 }
 0x152   : > { %v637_v30 = vadd.s32 1, %v6465_v21  ;;  %v634_v40 = vmul.u32 %v6401_v38, %v618_v27  ;;  %v482_v43 = vand.u32 8388607, %v10223_v39  ;;  %v686_v48 = vand.u32 2139095040, %v6382_v13 }
 0x153   : > { %v434_v29 = vshll.u32 %v6472_v26, 30  ;;  %v490_v36 = vsub.s32 32, %v489_v28  ;;  %vm636_vm14 = vc.u32 %v6470_v23, %v6464_v20  ;;  %v492_v50 = vshll.u32 %v10235_v41, %v489_v28 }
 0x154   : > { %v638_v46 = vsel %vm636_vm14, %v637_v30, %v6465_v21  ;;  %v488_v38 = vshrl.u32 %v487_v17, 5  ;;  %v495_v54 = vshll.u32 %v10226_v45, %v489_v28  ;;  %v498_v55 = vshll.u32 %v10224_v47, %v489_v28 }
 0x155   : > { %v6482_v42 = vsub.s32 %v431_v1, %v434_v29  ;;  %v639_v34 = vadd.s32 %v638_v46, %v634_v40  ;;  %v493_v52 = vshrl.u32 %v10226_v45, %v490_v36  ;;  %v496_v53 = vshrl.u32 %v10224_v47, %v490_v36 }
 0x156   : > { %v499_v56 = vshrl.u32 %v10228_v49, %v490_v36  ;;  %v501_v44 = vshll.u32 %v10228_v49, %v489_v28  ;;  %v502_v63 = vshrl.u32 %v10230_v51, %v490_v36  ;;  %v504_v2 = vshll.u32 %v10230_v51, %v489_v28 }
 0x157   : > { %v437_v57 = vsub.s32 0, %v6482_v42  ;;  %v640_v59 = vadd.s32 536870912, %v639_v34  ;;  %v494_v60 = vor.u32 %v493_v52, %v492_v50  ;;  %v497_v37 = vor.u32 %v496_v53, %v495_v54 }
 0x158   : > { %v500_v62 = vor.u32 %v499_v56, %v498_v55  ;;  %v505_v5 = vshrl.u32 %v10233_v58, %v490_v36  ;;  %v483_v6 = vor.u32 8388608, %v482_v43  ;;  %v503_v7 = vor.u32 %v502_v63, %v501_v44 }
 0x159   : > { %v6499_v1 = vshrl.u32 %v640_v59, 30  ;;  %vm507_vm15 = vcmp.lt.s32.totalorder %v488_v38, 1  ;;  %v687_v11 = vshrl.u32 %v686_v48, 23  ;;  %v5073_v16 = vmin.u32 %v437_v57, %v6482_v42 }
 0x15a   : > { %v506_v17 = vor.u32 %v505_v5, %v504_v2  ;;  %vm509_vm1 = vcmp.lt.s32.totalorder %v488_v38, 3  ;;  %vm510_vm2 = vcmp.lt.s32.totalorder %v488_v38, 4  ;;  %v515_v19 = vsel %vm507_vm15, %v494_v60, %v497_v37 }
 0x15b   : > { %v642_v18 = vshll.u32 %v6499_v1, 30  ;;  %v516_v21 = vsel %vm510_vm2, %v503_v7, 920167782  ;;  %v519_v22 = vsel %vm507_vm15, %v497_v37, %v500_v62  ;;  %vm508_vm3 = vcmp.lt.s32.totalorder %v488_v38, 2 }
 0x15c   : > { %v517_v27 = vsel %vm509_vm1, %v500_v62, %v516_v21  ;;  %v520_v28 = vsel %vm510_vm2, %v506_v17, 1326507024  ;;  %v512_v29 = vsel %vm510_vm2, %v500_v62, 2102212464  ;;  %v523_v40 = vshll.u32 %v483_v6, 8 }
 0x15d   : > { %v521_v30 = vsel %vm509_vm1, %v503_v7, %v520_v28  ;;  %v491_v46 = vshrl.u32 %v10235_v41, %v490_v36  ;;  %v518_v43 = vsel %vm508_vm3, %v515_v19, %v517_v27  ;;  %v5084_v50 = vadd.s32 4294967169, %v687_v11 }
 0x15e   : > { %v522_v48 = vsel %vm508_vm3, %v519_v22, %v521_v30  ;;  %v439_v52 = vclz %v5073_v16  ;;  %v6512_v53 = vsub.s32 %v639_v34, %v642_v18  ;;  %v513_v55 = vsel %vm509_vm1, %v497_v37, %v512_v29  ;;  %v6535_v22 = vpop.f32.mrb[5].mxu0 }
 0x15f   : > { %v511_v54 = vsel %vm507_vm15, %v491_v46, %v494_v60  ;;  %v6516_v56 = vmul.u32.u64.low %v523_v40, %v522_v48  ;;  %v6517_v57 = vmul.u32.u64.high %v523_v40, %v522_v48, %v6516_v56  ;;  %v693_v36 = vadd.s32 1, %v5084_v50 }
 0x160   : > { %v6519_v59 = vmul.u32.u64.low %v523_v40, %v518_v43  ;;  %v6520_v62 = vmul.u32.u64.high %v523_v40, %v518_v43, %v6519_v59  ;;  %v5074_v44 = vadd.s32 4294967294, %v439_v52  ;;  %v645_v63 = vsub.s32 0, %v6512_v53 }
 0x161   : > { %v514_v2 = vsel %vm508_vm3, %v511_v54, %v513_v55  ;;  %vm694_vm5 = vcmp.gt.s32.totalorder %v693_v36, 0  ;;  %v10221_v60 = vand.u32 2147483647, %v6382_v13  ;;  %v427_v30 = vadd.s32 %v6436_v35, %v6433_v33 }
 0x162   : > { %vm532_vm4 = vc.u32 %v6517_v57, %v6519_v59  ;;  %v533_v34 = vadd.s32 1, %v6520_v62  ;;  %v695_v37 = vsel %vm694_vm5, %v693_v36, 0  ;;  %v530_v5 = vmul.u32 %v523_v40, %v514_v2 }
 0x163   : > { %v697_v6 = vand.u32 31, %v695_v37  ;;  %vm5075_vm6 = vcmp.lt.s32.totalorder %v5074_v44, 0  ;;  %v5081_v7 = vmin.u32 %v645_v63, %v6512_v53  ;;  %v690_v38 = vand.u32 8388607, %v10221_v60 }
 0x164   : > { %v534_v11 = vsel %vm532_vm4, %v533_v34, %v6520_v62  ;;  %v6533_v18 = vsel %vm5075_vm6, 0, %v5074_v44  ;;  %v696_v36 = vshrl.u32 %v695_v37, 5  ;;  %vm373_vm12 = vcmp.lt.s32.totalorder %v6374_v8, 0 }
 0x165   : > { %v535_v16 = vadd.s32 %v534_v11, %v530_v5  ;;  %v698_v17 = vsub.s32 32, %v697_v6  ;;  %v647_v21 = vclz %v5081_v7  ;;  %v443_v40 = vsub.s32 32, %v6533_v18 }
 0x166   : > { %v691_v46 = vor.u32 8388608, %v690_v38  ;;  %v447_v48 = vsub.s32 4294967266, %v6533_v18  ;;  %v700_v52 = vshll.u32 %v10235_v41, %v697_v6  ;;  %v703_v54 = vshll.u32 %v10226_v45, %v697_v6 }
 0x167   : > { %v536_v19 = vadd.s32 536870912, %v535_v16  ;;  %v701_v28 = vshrl.u32 %v10226_v45, %v698_v17  ;;  %v704_v29 = vshrl.u32 %v10224_v47, %v698_v17  ;;  %v707_v43 = vshrl.u32 %v10228_v49, %v698_v17 }
 0x168   : > { %v5082_v55 = vadd.s32 4294967294, %v647_v21  ;;  %v706_v56 = vshll.u32 %v10224_v47, %v697_v6  ;;  %v709_v62 = vshll.u32 %v10228_v49, %v697_v6  ;;  %v710_v33 = vshrl.u32 %v10230_v51, %v698_v17 }
 0x169   : > { %v6537_v27 = vshrl.u32 %v536_v19, 30  ;;  %v702_v44 = vor.u32 %v701_v28, %v700_v52  ;;  %v705_v63 = vor.u32 %v704_v29, %v703_v54  ;;  %v712_v5 = vshll.u32 %v10230_v51, %v697_v6 }
 0x16a   : > { %v708_v2 = vor.u32 %v707_v43, %v706_v56  ;;  %v711_v34 = vor.u32 %v710_v33, %v709_v62  ;;  %v713_v7 = vshrl.u32 %v10233_v58, %v698_v17  ;;  %v457_v11 = vsub.s32 4, %v6472_v26 }
 0x16b   : > { %v538_v50 = vshll.u32 %v6537_v27, 30  ;;  %v790_v19 = vand.u32 2139095040, %v6391_v24  ;;  %v445_v21 = vshrl.u32 %v427_v30, %v443_v40  ;;  %v448_v0 = vadd.s32 127, %v447_v48 }
 0x16c   : > { %v714_v60 = vor.u32 %v713_v7, %v712_v5  ;;  %vm5083_vm7 = vcmp.lt.s32.totalorder %v5082_v55, 0  ;;  %vm715_vm8 = vcmp.lt.s32.totalorder %v696_v36, 1  ;;  %vm717_vm9 = vcmp.lt.s32.totalorder %v696_v36, 3 }
 0x16d   : > { %v6552_v35 = vsub.s32 %v535_v16, %v538_v50  ;;  %v731_v16 = vshll.u32 %v691_v46, 8  ;;  %vm718_vm10 = vcmp.lt.s32.totalorder %v696_v36, 4  ;;  %v723_v6 = vsel %vm715_vm8, %v702_v44, %v705_v63 }
 0x16e   : > { %v720_v28 = vsel %vm718_vm10, %v708_v2, 2102212464  ;;  %v724_v29 = vsel %vm718_vm10, %v711_v34, 920167782  ;;  %v699_v43 = vshrl.u32 %v10235_v41, %v698_v17  ;;  %vm716_vm11 = vcmp.lt.s32.totalorder %v696_v36, 2 }
 0x16f   : > { %v541_v38 = vsub.s32 0, %v6552_v35  ;;  %v725_v50 = vsel %vm717_vm9, %v708_v2, %v724_v29  ;;  %v791_v52 = vshrl.u32 %v790_v19, 23  ;;  %v449_v30 = vshll.u32 %v448_v0, 23 }
 0x170   : > { %v726_v40 = vsel %vm716_vm11, %v723_v6, %v725_v50  ;;  %v727_v46 = vsel %vm715_vm8, %v705_v63, %v708_v2  ;;  %v728_v48 = vsel %vm718_vm10, %v714_v60, 1326507024  ;;  %v6566_v54 = vsel %vm5083_vm7, 0, %v5082_v55 }
 0x171   : > { %v5077_v37 = vmin.u32 %v541_v38, %v6552_v35  ;;  %v719_v56 = vsel %vm715_vm8, %v699_v43, %v702_v44  ;;  %v721_v62 = vsel %vm717_vm9, %v705_v63, %v720_v28  ;;  %v729_v33 = vsel %vm717_vm9, %v711_v34, %v728_v48 }
 0x172   : > { %v730_v5 = vsel %vm716_vm11, %v727_v46, %v729_v33  ;;  %v6572_v7 = vmul.u32.u64.low %v731_v16, %v726_v40  ;;  %v6573_v38 = vmul.u32.u64.high %v731_v16, %v726_v40, %v6572_v7  ;;  %v665_v0 = vsub.s32 4, %v6499_v1 }
 0x173   : > { %v543_v17 = vclz %v5077_v37  ;;  %v6577_v2 = vmul.u32.u64.low %v731_v16, %v730_v5  ;;  %v6578_v60 = vmul.u32.u64.high %v731_v16, %v730_v5, %v6577_v2  ;;  %v5088_v55 = vadd.s32 4294967169, %v791_v52 }
 0x174   : > { %v444_v44 = vshll.u32 %v6482_v42, %v6533_v18  ;;  %v450_v19 = vor.u32 4788187, %v449_v30  ;;  %v655_v63 = vsub.s32 4294967266, %v6566_v54  ;;  %v722_v34 = vsel %vm716_vm11, %v719_v56, %v721_v62 }
 0x175   : > { %v10222_v37 = vand.u32 2147483647, %v6391_v24  ;;  %v797_v28 = vadd.s32 1, %v5088_v55  ;;  %vm581_vm13 = vcmp.lt.s32.totalorder %v6376_v9, 0  ;;  %v5078_v29 = vadd.s32 4294967294, %v543_v17 }
 0x176   : > { %v446_v6 = vor.u32 %v445_v21, %v444_v44  ;;  %v741_v43 = vadd.s32 1, %v6573_v38  ;;  %v6591_v42 = vsel %vm373_vm12, %v457_v11, %v6472_v26  ;;  %v6596_v18 = vsel %vm581_vm13, %v665_v0, %v6499_v1  ;;  %v6631_v44 = vpop.f32.mrb[5].mxu1 }
 0x177   : > { %v738_v36 = vmul.u32 %v731_v16, %v722_v34  ;;  %vm740_vm14 = vc.u32 %v6578_v60, %v6572_v7  ;;  %v451_v21 = vand.u32 2147483647, %v450_v19  ;;  %v656_v50 = vadd.s32 127, %v655_v63 }
 0x178   : > { %v742_v52 = vsel %vm740_vm14, %v741_v43, %v6573_v38  ;;  %vm798_vm15 = vcmp.gt.s32.totalorder %v797_v28, 0  ;;  %vm6603_vm1 = vcmp.le.f32.partialorder %v371_v10, 0.7853982  ;;  %v794_v1 = vand.u32 8388607, %v10222_v37 }
 0x179   : > { %v743_v26 = vadd.s32 %v742_v52, %v738_v36  ;;  %v799_v11 = vsel %vm798_vm15, %v797_v28, 0  ;;  %v453_v16 = vcvt.s32.f32 %v446_v6  ;;  %vm6611_vm2 = vcmp.le.f32.partialorder %v579_v14, 0.7853982 }
 0x17a   : > { %vm5079_vm3 = vcmp.lt.s32.totalorder %v5078_v29, 0  ;;  %v801_v46 = vand.u32 31, %v799_v11  ;;  %v460_v10 = vsel %vm6603_vm1, 0, %v6591_v42  ;;  %v635_v48 = vadd.s32 %v6464_v20, %v6470_v23 }
 0x17b   : > { %v668_v56 = vsel %vm6611_vm2, 0, %v6596_v18  ;;  %v744_v62 = vadd.s32 536870912, %v743_v26  ;;  %v6623_v33 = vmul.f32 %v453_v16, %v451_v21  ;;  %v651_v14 = vsub.s32 32, %v6566_v54 }
 0x17c   : > { %v657_v17 = vshll.u32 %v656_v50, 23  ;;  %v802_v5 = vsub.s32 32, %v801_v46  ;;  %v6626_v38 = vsel %vm5079_vm3, 0, %v5078_v29  ;;  %v795_v2 = vor.u32 8388608, %v794_v1 }
 0x17d   : > { %v6628_v0 = vshrl.u32 %v744_v62, 30  ;;  %v998_v55 = vand.u32 2139095040, %v6393_v25  ;;  %v804_v20 = vshll.u32 %v10235_v41, %v801_v46  ;;  %v807_v28 = vshll.u32 %v10226_v45, %v801_v46 }
 0x17e   : > { %v805_v23 = vshrl.u32 %v10226_v45, %v802_v5  ;;  %v808_v19 = vshrl.u32 %v10224_v47, %v802_v5  ;;  %v811_v63 = vshrl.u32 %v10228_v49, %v802_v5  ;;  %v810_v6 = vshll.u32 %v10224_v47, %v801_v46 }
 0x17f   : > { %v746_v34 = vshll.u32 %v6628_v0, 30  ;;  %v814_v29 = vshrl.u32 %v10230_v51, %v802_v5  ;;  %v800_v43 = vshrl.u32 %v799_v11, 5  ;;  %v813_v36 = vshll.u32 %v10228_v49, %v801_v46 }
 0x180   : > { %v816_v21 = vshll.u32 %v10230_v51, %v801_v46  ;;  %v817_v50 = vshrl.u32 %v10233_v58, %v802_v5  ;;  %v806_v1 = vor.u32 %v805_v23, %v804_v20  ;;  %v809_v16 = vor.u32 %v808_v19, %v807_v28 }
 0x181   : > { %v6644_v52 = vsub.s32 %v743_v26, %v746_v34  ;;  %v812_v62 = vor.u32 %v811_v63, %v810_v6  ;;  %v652_v37 = vshll.u32 %v6512_v53, %v6566_v54  ;;  %v653_v39 = vshrl.u32 %v635_v48, %v651_v14 }
 0x182   : > { %v531_v47 = vadd.s32 %v6519_v59, %v6517_v57  ;;  %v815_v45 = vor.u32 %v814_v29, %v813_v36  ;;  %v455_v11 = vxor.u32 2147483648, %v6623_v33  ;;  %v658_v49 = vor.u32 4788187, %v657_v17 }
 0x183   : > { %v749_v46 = vsub.s32 0, %v6644_v52  ;;  %v818_v51 = vor.u32 %v817_v50, %v816_v21  ;;  %v551_v26 = vsub.s32 4294967266, %v6626_v38  ;;  %vm819_vm4 = vcmp.lt.s32.totalorder %v800_v43, 1 }
 0x184   : > { %vm822_vm5 = vcmp.lt.s32.totalorder %v800_v43, 4  ;;  %v999_v20 = vshrl.u32 %v998_v55, 23  ;;  %v803_v23 = vshrl.u32 %v10235_v41, %v802_v5  ;;  %v827_v53 = vsel %vm819_vm4, %v806_v1, %v809_v16 }
 0x185   : > { %v824_v19 = vsel %vm822_vm5, %v812_v62, 2102212464  ;;  %v835_v54 = vshll.u32 %v795_v2, 8  ;;  %vm820_vm6 = vcmp.lt.s32.totalorder %v800_v43, 2  ;;  %vm821_vm7 = vcmp.lt.s32.totalorder %v800_v43, 3 }
 0x186   : > { %v828_v57 = vsel %vm822_vm5, %v815_v45, 920167782  ;;  %v831_v59 = vsel %vm819_vm4, %v809_v16, %v812_v62  ;;  %v5085_v48 = vmin.u32 %v749_v46, %v6644_v52  ;;  %v823_v14 = vsel %vm819_vm4, %v803_v23, %v806_v1 }
 0x187   : > { %v829_v17 = vsel %vm821_vm7, %v812_v62, %v828_v57  ;;  %v832_v63 = vsel %vm822_vm5, %v818_v51, 1326507024  ;;  %v825_v34 = vsel %vm821_vm7, %v809_v16, %v824_v19  ;;  %v5096_v29 = vadd.s32 4294967169, %v999_v20 }
 0x188   : > { %v830_v28 = vsel %vm820_vm6, %v827_v53, %v829_v17  ;;  %v833_v6 = vsel %vm821_vm7, %v815_v45, %v832_v63  ;;  %v547_v55 = vsub.s32 32, %v6626_v38  ;;  %v10232_v1 = vand.u32 2147483647, %v6393_v25 }
 0x189   : > { %v834_v5 = vsel %vm820_vm6, %v831_v59, %v833_v6  ;;  %v6658_v36 = vmul.u32.u64.low %v835_v54, %v830_v28  ;;  %v6659_v2 = vmul.u32.u64.high %v835_v54, %v830_v28, %v6658_v36  ;;  %v1005_v62 = vadd.s32 1, %v5096_v29 }
 0x18a   : > { %v6662_v21 = vmul.u32.u64.low %v835_v54, %v834_v5  ;;  %v6663_v50 = vmul.u32.u64.high %v835_v54, %v834_v5, %v6662_v21  ;;  %v654_v51 = vor.u32 %v653_v39, %v652_v37  ;;  %v552_v16 = vadd.s32 127, %v551_v26 }
 0x18b   : > { %v751_v46 = vclz %v5085_v48  ;;  %v826_v45 = vsel %vm820_vm6, %v823_v14, %v825_v34  ;;  %v464_v20 = vadd.s32 3, %v460_v10  ;;  %v672_v23 = vadd.s32 3, %v668_v56 }
 0x18c   : > { %vm1006_vm8 = vcmp.gt.s32.totalorder %v1005_v62, 0  ;;  %v456_v19 = vsel %vm373_vm12, %v455_v11, %v6623_v33  ;;  %v659_v39 = vand.u32 2147483647, %v658_v49  ;;  %v549_v37 = vshrl.u32 %v531_v47, %v547_v55 }
 0x18d   : > { %v845_v43 = vadd.s32 1, %v6659_v2  ;;  %v842_v26 = vmul.u32 %v835_v54, %v826_v45  ;;  %vm844_vm9 = vc.u32 %v6663_v50, %v6658_v36  ;;  %v1002_v42 = vand.u32 8388607, %v10232_v1 }
 0x18e   : > { %v1007_v10 = vsel %vm1006_vm8, %v1005_v62, 0  ;;  %v661_v53 = vcvt.s32.f32 %v654_v51  ;;  %v553_v18 = vshll.u32 %v552_v16, 23  ;;  %v5086_v56 = vadd.s32 4294967294, %v751_v46 }
 0x18f   : > { %v846_v57 = vsel %vm844_vm9, %v845_v43, %v6659_v2  ;;  %v548_v33 = vshll.u32 %v6552_v35, %v6626_v38  ;;  %v1009_v47 = vand.u32 31, %v1007_v10  ;;  %v6689_v11 = vsel %vm6603_vm1, %v6374_v8, %v456_v19 }
 0x190   : > { %v847_v49 = vadd.s32 %v846_v57, %v842_v26  ;;  %v6691_v54 = vand.u32 3, %v464_v20  ;;  %v6693_v59 = vmul.f32 %v661_v53, %v659_v39  ;;  %v6695_v48 = vand.u32 3, %v672_v23 }
 0x191   : > { %v550_v14 = vor.u32 %v549_v37, %v548_v33  ;;  %v1003_v63 = vor.u32 8388608, %v1002_v42  ;;  %v1010_v34 = vsub.s32 32, %v1009_v47  ;;  %v554_v28 = vor.u32 4788187, %v553_v18 }
 0x192   : > { %10351 = vst [vmem:[#allocation18_spill] sm:$0xff] %v6691_v54  ;;  %10352 = vst [vmem:[#allocation19_spill] sm:$0xff] %v6695_v48  ;;  %v848_v17 = vadd.s32 536870912, %v847_v49  ;;  %vm5087_vm10 = vcmp.lt.s32.totalorder %v5086_v56, 0  ;;  %v1012_v35 = vshll.u32 %v10235_v41, %v1009_v47  ;;  %v894_v38 = vand.u32 2139095040, %v6395_v31 }
 0x193   : > { %v10353_v30 = vmov 2475754826   ;;  %v10354_v5 = vmov 2131351028   ;;  %v10355_v62 = vmov 2102212464   ;;  %v1025_v42 = vshrl.u32 %v10233_v58, %v1010_v34 }
 0x194   : > { %v6699_v6 = vshrl.u32 %v848_v17, 30  ;;  %v1013_v29 = vshrl.u32 %v10353_v30, %v1010_v34  ;;  %v1015_v55 = vshll.u32 %v10353_v30, %v1009_v47  ;;  %v1016_v2 = vshrl.u32 %v10354_v5, %v1010_v34 }
 0x195   : > { %v1018_v21 = vshll.u32 %v10354_v5, %v1009_v47  ;;  %v1019_v51 = vshrl.u32 %v10355_v62, %v1010_v34  ;;  %v1021_v16 = vshll.u32 %v10355_v62, %v1009_v47  ;;  %v10356_v46 = vmov 920167782  }
 0x196   : > { %v1022_v45 = vshrl.u32 %v10356_v46, %v1010_v34  ;;  %v850_v20 = vshll.u32 %v6699_v6, 30  ;;  %v1008_v23 = vshrl.u32 %v1007_v10, 5  ;;  %v1014_v19 = vor.u32 %v1013_v29, %v1012_v35 }
 0x197   : > { %v1024_v39 = vshll.u32 %v10356_v46, %v1009_v47  ;;  %vm477_vm11 = vcmp.lt.s32.totalorder %v6380_v12, 0  ;;  %v1017_v37 = vor.u32 %v1016_v2, %v1015_v55  ;;  %v1020_v43 = vor.u32 %v1019_v51, %v1018_v21 }
 0x198   : > { %v1023_v26 = vor.u32 %v1022_v45, %v1021_v16  ;;  %v663_v53 = vxor.u32 2147483648, %v6693_v59  ;;  %v557_v18 = vcvt.s32.f32 %v550_v14  ;;  %v561_v57 = vsub.s32 4, %v6537_v27 }
 0x199   : > { %v6714_v33 = vsub.s32 %v847_v49, %v850_v20  ;;  %v555_v17 = vand.u32 2147483647, %v554_v28  ;;  %v6717_v10 = vsel %vm5087_vm10, 0, %v5086_v56  ;;  %v1026_v35 = vor.u32 %v1025_v42, %v1024_v39 }
 0x19a   : > { %v1043_v47 = vshll.u32 %v1003_v63, 8  ;;  %v10357_v29 = vand.u32 2147483647, %v6380_v12  ;;  %vm1027_vm14 = vcmp.lt.s32.totalorder %v1008_v23, 1  ;;  %vm1030_vm15 = vcmp.lt.s32.totalorder %v1008_v23, 4 }
 0x19b   : > { %v853_v2 = vsub.s32 0, %v6714_v33  ;;  %v895_v14 = vshrl.u32 %v894_v38, 23  ;;  %v1011_v49 = vshrl.u32 %v10235_v41, %v1010_v34  ;;  %v1032_v21 = vsel %vm1030_vm15, %v1020_v43, 2102212464 }
 0x19c   : > { %vm6721_vm12 = vcmp.le.f32.partialorder %v10357_v29, 0.7853982  ;;  %v1035_v28 = vsel %vm1027_vm14, %v1014_v19, %v1017_v37  ;;  %v1036_v51 = vsel %vm1030_vm15, %v1023_v26, 920167782  ;;  %v759_v56 = vsub.s32 4294967266, %v6717_v10 }
 0x19d   : > { %v5089_v63 = vmin.u32 %v853_v2, %v6714_v33  ;;  %vm1029_vm1 = vcmp.lt.s32.totalorder %v1008_v23, 3  ;;  %v1039_v16 = vsel %vm1027_vm14, %v1017_v37, %v1020_v43  ;;  %vm1028_vm3 = vcmp.lt.s32.totalorder %v1008_v23, 2 }
 0x19e   : > { %v1031_v45 = vsel %vm1027_vm14, %v1011_v49, %v1014_v19  ;;  %v1037_v20 = vsel %vm1029_vm1, %v1020_v43, %v1036_v51  ;;  %v1040_v39 = vsel %vm1030_vm15, %v1026_v35, 1326507024  ;;  %v1033_v29 = vsel %vm1029_vm1, %v1017_v37, %v1032_v21 }
 0x19f   : > { %v855_v42 = vclz %v5089_v63  ;;  %v1038_v1 = vsel %vm1028_vm3, %v1035_v28, %v1037_v20  ;;  %v1041_v38 = vsel %vm1029_vm1, %v1023_v26, %v1040_v39  ;;  %vm685_vm4 = vcmp.lt.s32.totalorder %v6382_v13, 0 }
 0x1a0   : > { %v1042_v34 = vsel %vm1028_vm3, %v1039_v16, %v1041_v38  ;;  %v6732_v58 = vmul.u32.u64.low %v1043_v47, %v1038_v1  ;;  %v6733_v41 = vmul.u32.u64.high %v1043_v47, %v1038_v1, %v6732_v58  ;;  %v5092_v2 = vadd.s32 4294967169, %v895_v14 }
 0x1a1   : > { %v558_v4 = vmul.f32 %v557_v18, %v555_v17  ;;  %v562_v19 = vsel %vm477_vm11, %v561_v57, %v6537_v27  ;;  %v6739_v43 = vmul.u32.u64.low %v1043_v47, %v1042_v34  ;;  %v6740_v35 = vmul.u32.u64.high %v1043_v47, %v1042_v34, %v6739_v43 }
 0x1a2   : > { %5530 = vcosq.f32 %v6689_v11  ;;  %v664_v37 = vsel %vm581_vm13, %v663_v53, %v6693_v59  ;;  %v760_v26 = vadd.s32 127, %v759_v56  ;;  %v901_v49 = vadd.s32 1, %v5092_v2 }
 0x1a3   : > { %5532 = vsinq.f32 %v6689_v11  ;;  %v1034_v1 = vsel %vm1028_vm3, %v1031_v45, %v1033_v29  ;;  %v10238_v18 = vand.u32 2147483647, %v6395_v31  ;;  %v1102_v17 = vand.u32 2139095040, %v6397_v32 }
 0x1a4   : > { %v564_v27 = vsel %vm6721_vm12, 0, %v562_v19  ;;  %v5090_v57 = vadd.s32 4294967294, %v855_v42  ;;  %v1053_v14 = vadd.s32 1, %v6733_v41  ;;  %vm902_vm5 = vcmp.gt.s32.totalorder %v901_v49, 0 }
 0x1a5   : > { %v6756_v59 = vsel %vm6611_vm2, %v6376_v9, %v664_v37  ;;  %v559_v53 = vxor.u32 2147483648, %v558_v4  ;;  %v755_v11 = vsub.s32 32, %v6717_v10  ;;  %v769_v23 = vsub.s32 4, %v6628_v0 }
 0x1a6   : > { %v761_v21 = vshll.u32 %v760_v26, 23  ;;  %v1050_v28 = vmul.u32 %v1043_v47, %v1034_v1  ;;  %vm1052_vm13 = vc.u32 %v6740_v35, %v6732_v58  ;;  %v903_v51 = vsel %vm902_vm5, %v901_v49, 0 }
 0x1a7   : > { %v6762_v56 = vadd.s32 3, %v564_v27  ;;  %v1054_v63 = vsel %vm1052_vm13, %v1053_v14, %v6733_v41  ;;  %v898_v40 = vand.u32 8388607, %v10238_v18  ;;  %v1103_v16 = vshrl.u32 %v1102_v17, 23 }
 0x1a8   : > { %v739_v45 = vadd.s32 %v6572_v7, %v6578_v60  ;;  %vm5091_vm2 = vcmp.lt.s32.totalorder %v5090_v57, 0  ;;  %v1055_v20 = vadd.s32 %v1054_v63, %v1050_v28  ;;  %v905_v39 = vand.u32 31, %v903_v51 }
 0x1a9   : > { %5534 = vcosq.f32 %v6756_v59  ;;  %v6772_v47 = vsel %vm477_vm11, %v559_v53, %v558_v4  ;;  %v756_v42 = vshll.u32 %v6644_v52, %v6717_v10  ;;  %v6779_v41 = vsel %vm685_vm4, %v769_v23, %v6628_v0 }
 0x1aa   : > { %v757_v29 = vshrl.u32 %v739_v45, %v755_v11  ;;  %v6781_v38 = vor.u32 4788187, %v761_v21  ;;  %v1056_v7 = vadd.s32 536870912, %v1055_v20  ;;  %v906_v60 = vsub.s32 32, %v905_v39 }
 0x1ab   : > { %v6783_v34 = vsel %vm5091_vm2, 0, %v5090_v57  ;;  %v899_v2 = vor.u32 8388608, %v898_v40  ;;  %v10360_v19 = vmov 683565275   ;;  %v5100_v4 = vadd.s32 4294967169, %v1103_v16 }
 0x1ac   : > { %v908_v43 = vshll.u32 %v10360_v19, %v905_v39  ;;  %v6786_v37 = vpop.eup %5530  ;;  %v6788_v26 = vshrl.u32 %v1056_v7, 30  ;;  %v909_v52 = vshrl.u32 %v10353_v30, %v906_v60  ;;  %v911_v0 = vshll.u32 %v10353_v30, %v905_v39 }
 0x1ad   : > { %10361 = vst [vmem:[#allocation20_spill] sm:$0xff] %v6786_v37  ;;  %v912_v10 = vshrl.u32 %v10354_v5, %v906_v60  ;;  %v6793_v49 = vpop.eup %5532  ;;  %v914_v1 = vshll.u32 %v10354_v5, %v905_v39  ;;  %v915_v17 = vshrl.u32 %v10355_v62, %v906_v60  ;;  %v917_v27 = vshll.u32 %v10355_v62, %v905_v39 }
 0x1ae   : > { %10362 = vst [vmem:[#allocation21_spill] sm:$0xff] %v6793_v49  ;;  %v918_v57 = vshrl.u32 %v10356_v46, %v906_v60  ;;  %v1058_v14 = vshll.u32 %v6788_v26, 30  ;;  %v904_v53 = vshrl.u32 %v903_v51, 5  ;;  %v910_v11 = vor.u32 %v909_v52, %v908_v43 }
 0x1af   : > { %v920_v23 = vshll.u32 %v10356_v46, %v905_v39  ;;  %v913_v21 = vor.u32 %v912_v10, %v911_v0  ;;  %v916_v28 = vor.u32 %v915_v17, %v914_v1  ;;  %v10363_v40 = vmov 1326507024  }
 0x1b0   : > { %v919_v63 = vor.u32 %v918_v57, %v917_v27  ;;  %v921_v16 = vshrl.u32 %v10363_v40, %v906_v60  ;;  %v758_v45 = vor.u32 %v757_v29, %v756_v42  ;;  %v763_v7 = vand.u32 2147483647, %v6781_v38 }
 0x1b1   : > { %v843_v18 = vadd.s32 %v6658_v36, %v6663_v50  ;;  %v6805_v3 = vsub.s32 %v1055_v20, %v1058_v14  ;;  %v10364_v48 = vand.u32 2147483647, %v6382_v13  ;;  %v859_v39 = vsub.s32 32, %v6783_v34 }
 0x1b2   : > { %v873_v43 = vsub.s32 4, %v6699_v6  ;;  %v922_v52 = vor.u32 %v921_v16, %v920_v23  ;;  %v939_v0 = vshll.u32 %v899_v2, 8  ;;  %vm923_vm7 = vcmp.lt.s32.totalorder %v904_v53, 1 }
 0x1b3   : > { %vm6809_vm6 = vcmp.le.f32.partialorder %v10364_v48, 0.7853982  ;;  %v1061_v42 = vsub.s32 0, %v6805_v3  ;;  %vm926_vm8 = vcmp.lt.s32.totalorder %v904_v53, 4  ;;  %v1109_v29 = vadd.s32 1, %v5100_v4  ;;  %v6816_v36 = vpop.eup %5534 }
 0x1b4   : > { %10367 = vst [vmem:[#allocation22_spill] sm:$0xff] %v6816_v36  ;;  %vm789_vm9 = vcmp.lt.s32.totalorder %v6391_v24, 0  ;;  %v907_v50 = vshrl.u32 %v10360_v19, %v906_v60  ;;  %v928_v48 = vsel %vm926_vm8, %v916_v28, 2102212464  ;;  %v931_v20 = vsel %vm923_vm7, %v910_v11, %v913_v21 }
 0x1b5   : > { %v932_v38 = vsel %vm926_vm8, %v919_v63, 920167782  ;;  %v863_v10 = vsub.s32 4294967266, %v6783_v34  ;;  %v5097_v1 = vmin.u32 %v1061_v42, %v6805_v3  ;;  %vm925_vm10 = vcmp.lt.s32.totalorder %v904_v53, 3 }
 0x1b6   : > { %v935_v2 = vsel %vm923_vm7, %v913_v21, %v916_v28  ;;  %vm924_vm11 = vcmp.lt.s32.totalorder %v904_v53, 2  ;;  %v927_v17 = vsel %vm923_vm7, %v907_v50, %v910_v11  ;;  %v933_v27 = vsel %vm925_vm10, %v916_v28, %v932_v38 }
 0x1b7   : > { %v936_v57 = vsel %vm926_vm8, %v922_v52, 1326507024  ;;  %v1063_v4 = vclz %v5097_v1  ;;  %v929_v14 = vsel %vm925_vm10, %v913_v21, %v928_v48  ;;  %v934_v23 = vsel %vm924_vm11, %v931_v20, %v933_v27 }
 0x1b8   : > { %v937_v16 = vsel %vm925_vm10, %v919_v63, %v936_v57  ;;  %v6824_v36 = vmul.u32.u64.low %v939_v0, %v934_v23  ;;  %v6825_v9 = vmul.u32.u64.high %v939_v0, %v934_v23, %v6824_v36  ;;  %vm1110_vm14 = vcmp.gt.s32.totalorder %v1109_v29, 0 }
 0x1b9   : > { %v938_v60 = vsel %vm924_vm11, %v935_v2, %v937_v16  ;;  %v864_v37 = vadd.s32 127, %v863_v10  ;;  %v1111_v49 = vsel %vm1110_vm14, %v1109_v29, 0  ;;  %5536 = vsinq.f32 %v6756_v59 }
 0x1ba   : > { %v6828_v42 = vmul.u32.u64.low %v939_v0, %v938_v60  ;;  %v6829_v54 = vmul.u32.u64.high %v939_v0, %v938_v60, %v6828_v42  ;;  %v6833_v11 = vand.u32 3, %v6762_v56  ;;  %v10247_v21 = vand.u32 2147483647, %v6397_v32 }
 0x1bb   : > { %v1113_v28 = vand.u32 31, %v1111_v49  ;;  %v765_v63 = vcvt.s32.f32 %v758_v45  ;;  %v772_v52 = vsel %vm6809_vm6, 0, %v6779_v41  ;;  %v861_v50 = vshrl.u32 %v843_v18, %v859_v39 }
 0x1bc   : > { %v930_v48 = vsel %vm924_vm11, %v927_v17, %v929_v14  ;;  %v6844_v29 = vsel %vm6721_vm12, %v6380_v12, %v6772_v47  ;;  %v5098_v59 = vadd.s32 4294967294, %v1063_v4  ;;  %v949_v56 = vadd.s32 1, %v6825_v9 }
 0x1bd   : > { %v1114_v20 = vsub.s32 32, %v1113_v28  ;;  %v6847_v38 = vmul.f32 %v765_v63, %v763_v7  ;;  %v860_v45 = vshll.u32 %v6714_v33, %v6783_v34  ;;  %v865_v10 = vshll.u32 %v864_v37, 23 }
 0x1be   : > { %v6854_v18 = vsel %vm789_vm9, %v873_v43, %v6699_v6  ;;  %v946_v53 = vmul.u32 %v939_v0, %v930_v48  ;;  %vm948_vm12 = vc.u32 %v6829_v54, %v6824_v36  ;;  %v1106_v55 = vand.u32 8388607, %v10247_v21 }
 0x1bf   : > { %v1117_v47 = vshrl.u32 %v10353_v30, %v1114_v20  ;;  %v862_v7 = vor.u32 %v861_v50, %v860_v45  ;;  %v950_v39 = vsel %vm948_vm12, %v949_v56, %v6825_v9  ;;  %v1116_v33 = vshll.u32 %v10360_v19, %v1113_v28 }
 0x1c0   : > { %v1120_v34 = vshrl.u32 %v10354_v5, %v1114_v20  ;;  %vm5099_vm15 = vcmp.lt.s32.totalorder %v5098_v59, 0  ;;  %v951_v37 = vadd.s32 %v950_v39, %v946_v53  ;;  %v1119_v6 = vshll.u32 %v10353_v30, %v1113_v28 }
 0x1c1   : > { %v1123_v43 = vshrl.u32 %v10355_v62, %v1114_v20  ;;  %v866_v0 = vor.u32 4788187, %v865_v10  ;;  %v1112_v1 = vshrl.u32 %v1111_v49, 5  ;;  %v1118_v2 = vor.u32 %v1117_v47, %v1116_v33 }
 0x1c2   : > { %v1122_v17 = vshll.u32 %v10354_v5, %v1113_v28  ;;  %v952_v27 = vadd.s32 536870912, %v951_v37  ;;  %v1121_v57 = vor.u32 %v1120_v34, %v1119_v6  ;;  %v1125_v4 = vshll.u32 %v10355_v62, %v1113_v28 }
 0x1c3   : > { %v1126_v9 = vshrl.u32 %v10356_v46, %v1114_v20  ;;  %v6869_v14 = vsel %vm5099_vm15, 0, %v5098_v59  ;;  %v1107_v23 = vor.u32 8388608, %v1106_v55  ;;  %v1128_v16 = vshll.u32 %v10356_v46, %v1113_v28  ;;  %v6873_v42 = vpop.eup %5536 }
 0x1c4   : > { %v1129_v60 = vshrl.u32 %v10363_v40, %v1114_v20  ;;  %10368 = vst [vmem:[#allocation23_spill] sm:$0xff] %v6873_v42  ;;  %v869_v63 = vcvt.s32.f32 %v862_v7  ;;  %v6875_v49 = vshrl.u32 %v952_v27, 30  ;;  %v1124_v50 = vor.u32 %v1123_v43, %v1122_v17 }
 0x1c5   : > { %v1127_v48 = vor.u32 %v1126_v9, %v1125_v4  ;;  %v10369_v56 = vand.u32 2147483647, %v6391_v24  ;;  %v867_v59 = vand.u32 2147483647, %v866_v0  ;;  %vm1131_vm3 = vcmp.lt.s32.totalorder %v1112_v1, 1 }
 0x1c6   : > { %v1130_v10 = vor.u32 %v1129_v60, %v1128_v16  ;;  %v1206_v28 = vand.u32 2139095040, %v6421_v15  ;;  %v1071_v53 = vsub.s32 4294967266, %v6869_v14  ;;  %v954_v55 = vshll.u32 %v6875_v49, 30 }
 0x1c7   : > { %vm6879_vm1 = vcmp.le.f32.partialorder %v10369_v56, 0.7853982  ;;  %vm1134_vm5 = vcmp.lt.s32.totalorder %v1112_v1, 4  ;;  %v1139_v47 = vsel %vm1131_vm3, %v1118_v2, %v1121_v57  ;;  %v1115_v7 = vshrl.u32 %v10360_v19, %v1114_v20 }
 0x1c8   : > { %vm1132_vm13 = vcmp.lt.s32.totalorder %v1112_v1, 2  ;;  %vm1133_vm2 = vcmp.lt.s32.totalorder %v1112_v1, 3  ;;  %v1140_v39 = vsel %vm1134_vm5, %v1127_v48, 920167782  ;;  %v6888_v33 = vsub.s32 %v951_v37, %v954_v55 }
 0x1c9   : > { %v1136_v34 = vsel %vm1134_vm5, %v1124_v50, 2102212464  ;;  %v1141_v6 = vsel %vm1133_vm2, %v1124_v50, %v1140_v39  ;;  %v1143_v43 = vsel %vm1131_vm3, %v1121_v57, %v1124_v50  ;;  %v767_v0 = vxor.u32 2147483648, %v6847_v38 }
 0x1ca   : > { %v1142_v17 = vsel %vm1132_vm13, %v1139_v47, %v1141_v6  ;;  %v1144_v27 = vsel %vm1134_vm5, %v1130_v10, 1326507024  ;;  %v1147_v4 = vshll.u32 %v1107_v23, 8  ;;  %v870_v9 = vmul.f32 %v869_v63, %v867_v59 }
 0x1cb   : > { %v957_v16 = vsub.s32 0, %v6888_v33  ;;  %v1135_v20 = vsel %vm1131_vm3, %v1115_v7, %v1118_v2  ;;  %v1145_v60 = vsel %vm1133_vm2, %v1127_v48, %v1144_v27  ;;  %v1137_v56 = vsel %vm1133_vm2, %v1121_v57, %v1136_v34 }
 0x1cc   : > { %v1146_v37 = vsel %vm1132_vm13, %v1143_v43, %v1145_v60  ;;  %v6896_v55 = vmul.u32.u64.low %v1147_v4, %v1142_v17  ;;  %v6897_v21 = vmul.u32.u64.high %v1147_v4, %v1142_v17, %v6896_v55  ;;  %v1067_v50 = vsub.s32 32, %v6869_v14 }
 0x1cd   : > { %v1072_v39 = vadd.s32 127, %v1071_v53  ;;  %v5093_v47 = vmin.u32 %v957_v16, %v6888_v33  ;;  %v1207_v10 = vshrl.u32 %v1206_v28, 23  ;;  %5538 = vcosq.f32 %v6844_v29 }
 0x1ce   : > { %v776_v2 = vadd.s32 3, %v772_v52  ;;  %v6907_v57 = vmul.u32.u64.low %v1147_v4, %v1146_v37  ;;  %v6908_v23 = vmul.u32.u64.high %v1147_v4, %v1146_v37, %v6907_v57  ;;  %v876_v63 = vsel %vm6879_vm1, 0, %v6854_v18 }
 0x1cf   : > { %v1051_v48 = vadd.s32 %v6732_v58, %v6740_v35  ;;  %v1138_v59 = vsel %vm1132_vm13, %v1135_v20, %v1137_v56  ;;  %v5104_v28 = vadd.s32 4294967169, %v1207_v10  ;;  %v768_v53 = vsel %vm685_vm4, %v767_v0, %v6847_v38 }
 0x1d0   : > { %v871_v7 = vxor.u32 2147483648, %v870_v9  ;;  %v1157_v41 = vadd.s32 1, %v6897_v21  ;;  %v10248_v52 = vand.u32 2147483647, %v6421_v15  ;;  %v1073_v6 = vshll.u32 %v1072_v39, 23 }
 0x1d1   : > { %v1069_v34 = vshrl.u32 %v1051_v48, %v1067_v50  ;;  %v959_v43 = vclz %v5093_v47  ;;  %v1213_v17 = vadd.s32 1, %v5104_v28  ;;  %v880_v18 = vadd.s32 3, %v876_v63 }
 0x1d2   : > { %v1154_v27 = vmul.u32 %v1147_v4, %v1138_v59  ;;  %vm1156_vm7 = vc.u32 %v6908_v23, %v6896_v55  ;;  %v1414_v58 = vand.u32 2139095040, %v6495_v61  ;;  %v6927_v35 = vsel %vm6809_vm6, %v6382_v13, %v768_v53 }
 0x1d3   : > { %v1068_v38 = vshll.u32 %v6805_v3, %v6869_v14  ;;  %v1158_v1 = vsel %vm1156_vm7, %v1157_v41, %v6897_v21  ;;  %vm1214_vm4 = vcmp.gt.s32.totalorder %v1213_v17, 0  ;;  %v872_v0 = vsel %vm789_vm9, %v871_v7, %v870_v9 }
 0x1d4   : > { %v1081_v4 = vsub.s32 4, %v6788_v26  ;;  %v1159_v16 = vadd.s32 %v1158_v1, %v1154_v27  ;;  %v1215_v20 = vsel %vm1214_vm4, %v1213_v17, 0  ;;  %v1074_v56 = vor.u32 4788187, %v1073_v6 }
 0x1d5   : > { %v1070_v60 = vor.u32 %v1069_v34, %v1068_v38  ;;  %v5094_v37 = vadd.s32 4294967294, %v959_v43  ;;  %v1210_v51 = vand.u32 8388607, %v10248_v52  ;;  %5540 = vsinq.f32 %v6844_v29 }
 0x1d6   : > { %v1160_v50 = vadd.s32 536870912, %v1159_v16  ;;  %v1217_v3 = vand.u32 31, %v1215_v20  ;;  %v1415_v14 = vshrl.u32 %v1414_v58, 23  ;;  %5542 = vcosq.f32 %v6927_v35 }
 0x1d7   : > { %v6939_v21 = vand.u32 3, %v776_v2  ;;  %v6941_v9 = vand.u32 3, %v880_v18  ;;  %vm997_vm6 = vcmp.lt.s32.totalorder %v6393_v25, 0  ;;  %v6944_v39 = vpop.eup %5538  ;;  %v6949_v47 = vsel %vm6879_vm1, %v6391_v24, %v872_v0 }
 0x1d8   : > { %v6954_v29 = vsel %vm997_vm6, %v1081_v4, %v6788_v26  ;;  %v6956_v10 = vshrl.u32 %v1160_v50, 30  ;;  %v1218_v2 = vsub.s32 32, %v1217_v3  ;;  %v1075_v57 = vand.u32 2147483647, %v1074_v56 }
 0x1d9   : > { %10372 = vst [vmem:[#allocation24_spill] sm:$0xff] %v6939_v21  ;;  %10373 = vst [vmem:[#allocation25_spill] sm:$0xff] %v6941_v9  ;;  %v1077_v63 = vcvt.s32.f32 %v1070_v60  ;;  %vm5095_vm8 = vcmp.lt.s32.totalorder %v5094_v37, 0  ;;  %v1211_v48 = vor.u32 8388608, %v1210_v51  ;;  %v1220_v28 = vshll.u32 %v10360_v19, %v1217_v3 }
 0x1da   : > { %v1162_v59 = vshll.u32 %v6956_v10, 30  ;;  %v1221_v45 = vshrl.u32 %v10353_v30, %v1218_v2  ;;  %v5112_v53 = vadd.s32 4294967169, %v1415_v14  ;;  %v1223_v7 = vshll.u32 %v10353_v30, %v1217_v3 }
 0x1db   : > { %v1224_v41 = vshrl.u32 %v10354_v5, %v1218_v2  ;;  %v1226_v26 = vshll.u32 %v10354_v5, %v1217_v3  ;;  %v1227_v34 = vshrl.u32 %v10355_v62, %v1218_v2  ;;  %v1216_v43 = vshrl.u32 %v1215_v20, 5 }
 0x1dc   : > { %v6965_v6 = vsub.s32 %v1159_v16, %v1162_v59  ;;  %v1229_v17 = vshll.u32 %v10355_v62, %v1217_v3  ;;  %v1230_v18 = vshrl.u32 %v10356_v46, %v1218_v2  ;;  %v10374_v27 = vand.u32 2147483647, %v6393_v25 }
 0x1dd   : > { %v1222_v38 = vor.u32 %v1221_v45, %v1220_v28  ;;  %v1225_v1 = vor.u32 %v1224_v41, %v1223_v7  ;;  %v1228_v0 = vor.u32 %v1227_v34, %v1226_v26  ;;  %v1078_v60 = vmul.f32 %v1077_v63, %v1075_v57 }
 0x1de   : > { %vm6971_vm9 = vcmp.le.f32.partialorder %v10374_v27, 0.7853982  ;;  %vm893_vm10 = vcmp.lt.s32.totalorder %v6395_v31, 0  ;;  %v977_v16 = vsub.s32 4, %v6875_v49  ;;  %v1165_v20 = vsub.s32 0, %v6965_v6 }
 0x1df   : > { %v1231_v56 = vor.u32 %v1230_v18, %v1229_v17  ;;  %v6980_v51 = vsel %vm5095_vm8, 0, %v5094_v37  ;;  %v1232_v50 = vshll.u32 %v10356_v46, %v1217_v3  ;;  %v1233_v14 = vshrl.u32 %v10363_v40, %v1218_v2  ;;  %v6984_v28 = vpop.eup %5540 }
 0x1e0   : > { %v1251_v59 = vshll.u32 %v1211_v48, 8  ;;  %v5101_v45 = vmin.u32 %v1165_v20, %v6965_v6  ;;  %vm1235_vm11 = vcmp.lt.s32.totalorder %v1216_v43, 1  ;;  %vm1238_vm14 = vcmp.lt.s32.totalorder %v1216_v43, 4  ;;  %v6987_v63 = vpop.eup %5542 }
 0x1e1   : > { %v1421_v57 = vadd.s32 1, %v5112_v53  ;;  %v1219_v7 = vshrl.u32 %v10360_v19, %v1218_v2  ;;  %v1234_v41 = vor.u32 %v1233_v14, %v1232_v50  ;;  %v1240_v26 = vsel %vm1238_vm14, %v1228_v0, 2102212464 }
 0x1e2   : > { %v1243_v37 = vsel %vm1235_vm11, %v1222_v38, %v1225_v1  ;;  %v1167_v34 = vclz %v5101_v45  ;;  %vm1237_vm12 = vcmp.lt.s32.totalorder %v1216_v43, 3  ;;  %v1244_v3 = vsel %vm1238_vm14, %v1231_v56, 920167782 }
 0x1e3   : > { %v1247_v17 = vsel %vm1235_vm11, %v1225_v1, %v1228_v0  ;;  %v10377_v48 = vand.u32 2147483647, %v6395_v31  ;;  %vm1236_vm1 = vcmp.lt.s32.totalorder %v1216_v43, 2  ;;  %v1239_v27 = vsel %vm1235_vm11, %v1219_v7, %v1222_v38 }
 0x1e4   : > { %v1245_v53 = vsel %vm1237_vm12, %v1228_v0, %v1244_v3  ;;  %v1248_v20 = vsel %vm1238_vm14, %v1234_v41, 1326507024  ;;  %v5102_v52 = vadd.s32 4294967294, %v1167_v34  ;;  %v1241_v4 = vsel %vm1237_vm12, %v1225_v1, %v1240_v26 }
 0x1e5   : > { %vm6992_vm15 = vcmp.le.f32.partialorder %v10377_v48, 0.7853982  ;;  %v1246_v2 = vsel %vm1236_vm1, %v1243_v37, %v1245_v53  ;;  %v1249_v50 = vsel %vm1237_vm12, %v1231_v56, %v1248_v20  ;;  %v967_v14 = vsub.s32 4294967266, %v6980_v51 }
 0x1e6   : > { %v1250_v45 = vsel %vm1236_vm1, %v1247_v17, %v1249_v50  ;;  %v6999_v42 = vmul.u32.u64.low %v1251_v59, %v1246_v2  ;;  %v7000_v9 = vmul.u32.u64.high %v1251_v59, %v1246_v2, %v6999_v42  ;;  %5544 = vsinq.f32 %v6927_v35 }
 0x1e7   : > { %v1084_v38 = vsel %vm6971_vm9, 0, %v6954_v29  ;;  %v7007_v0 = vmul.u32.u64.low %v1251_v59, %v1250_v45  ;;  %v7008_v7 = vmul.u32.u64.high %v1251_v59, %v1250_v45, %v7007_v0  ;;  %5546 = vcosq.f32 %v6949_v47 }
 0x1e8   : > { %v7014_v1 = vsel %vm893_vm10, %v977_v16, %v6875_v49  ;;  %v1242_v56 = vsel %vm1236_vm1, %v1239_v27, %v1241_v4  ;;  %vm1422_vm3 = vcmp.gt.s32.totalorder %v1421_v57, 0  ;;  %v1079_v41 = vxor.u32 2147483648, %v1078_v60 }
 0x1e9   : > { %vm5103_vm5 = vcmp.lt.s32.totalorder %v5102_v52, 0  ;;  %v10380_v35 = vand.u32 2147483647, %v6495_v61  ;;  %v1423_v37 = vsel %vm1422_vm3, %v1421_v57, 0  ;;  %v963_v29 = vsub.s32 32, %v6980_v51 }
 0x1ea   : > { %v968_v34 = vadd.s32 127, %v967_v14  ;;  %v1261_v3 = vadd.s32 1, %v7000_v9  ;;  %v1425_v17 = vand.u32 31, %v1423_v37  ;;  %5548 = vsinq.f32 %v6949_v47 }
 0x1eb   : > { %v1418_v26 = vand.u32 8388607, %v10380_v35  ;;  %v7022_v48 = vadd.s32 3, %v1084_v38  ;;  %v1258_v49 = vmul.u32 %v1251_v59, %v1242_v56  ;;  %vm1260_vm13 = vc.u32 %v7008_v7, %v6999_v42 }
 0x1ec   : > { %v947_v43 = vadd.s32 %v6824_v36, %v6829_v54  ;;  %v7028_v4 = vsel %vm5103_vm5, 0, %v5102_v52  ;;  %v1262_v16 = vsel %vm1260_vm13, %v1261_v3, %v7000_v9  ;;  %v1426_v57 = vsub.s32 32, %v1425_v17 }
 0x1ed   : > { %v1080_v27 = vsel %vm997_vm6, %v1079_v41, %v1078_v60  ;;  %v1263_v53 = vadd.s32 %v1262_v16, %v1258_v49  ;;  %v1419_v59 = vor.u32 8388608, %v1418_v26  ;;  %v969_v2 = vshll.u32 %v968_v34, 23 }
 0x1ee   : > { %v965_v20 = vshrl.u32 %v947_v43, %v963_v29  ;;  %v1429_v50 = vshrl.u32 %v10353_v30, %v1426_v57  ;;  %v1432_v54 = vshrl.u32 %v10354_v5, %v1426_v57  ;;  %v1175_v36 = vsub.s32 4294967266, %v7028_v4 }
 0x1ef   : > { %v1264_v52 = vadd.s32 536870912, %v1263_v53  ;;  %v7039_v9 = vshrl.u32 %v1423_v37, 5  ;;  %v1435_v14 = vshrl.u32 %v10355_v62, %v1426_v57  ;;  %v1428_v60 = vshll.u32 %v10360_v19, %v1425_v17 }
 0x1f0   : > { %v1431_v45 = vshll.u32 %v10353_v30, %v1425_v17  ;;  %v1437_v38 = vshll.u32 %v10355_v62, %v1425_v17  ;;  %v1438_v0 = vshrl.u32 %v10356_v46, %v1426_v57  ;;  %v7046_v56 = vpop.eup %5544  ;;  %v1434_v35 = vshll.u32 %v10354_v5, %v1425_v17 }
 0x1f1   : > { %v7048_v41 = vshrl.u32 %v1264_v52, 30  ;;  %v1440_v26 = vshll.u32 %v10356_v46, %v1425_v17  ;;  %v1441_v37 = vshrl.u32 %v10363_v40, %v1426_v57  ;;  %v7053_v29 = vpop.eup %5546  ;;  %v964_v34 = vshll.u32 %v6888_v33, %v6980_v51 }
 0x1f2   : > { %10381 = vst [vmem:[#allocation26_spill] sm:$0xff] %v7053_v29  ;;  %v1430_v3 = vor.u32 %v1429_v50, %v1428_v60  ;;  %v1433_v49 = vor.u32 %v1432_v54, %v1431_v45  ;;  %v1439_v43 = vor.u32 %v1438_v0, %v1437_v38  ;;  %vm1101_vm2 = vcmp.lt.s32.totalorder %v6397_v32, 0 }
 0x1f3   : > { %v1266_v16 = vshll.u32 %v7048_v41, 30  ;;  %v1436_v52 = vor.u32 %v1435_v14, %v1434_v35  ;;  %v1442_v47 = vor.u32 %v1441_v37, %v1440_v26  ;;  %v1459_v13 = vshll.u32 %v1419_v59, 8 }
 0x1f4   : > { %v966_v24 = vor.u32 %v965_v20, %v964_v34  ;;  %v970_v8 = vor.u32 4788187, %v969_v2  ;;  %v1171_v17 = vsub.s32 32, %v7028_v4  ;;  %v1185_v61 = vsub.s32 4, %v6956_v10  ;;  %v7061_v29 = vpop.eup %5548 }
 0x1f5   : > { %v1176_v21 = vadd.s32 127, %v1175_v36  ;;  %v7063_v33 = vsub.s32 %v1263_v53, %v1266_v16  ;;  %vm1443_vm7 = vcmp.lt.s32.totalorder %v7039_v9, 1  ;;  %vm1446_vm4 = vcmp.lt.s32.totalorder %v7039_v9, 4 }
 0x1f6   : > { %v10382_v51 = vand.u32 2147483647, %v6397_v32  ;;  %v1427_v59 = vshrl.u32 %v10360_v19, %v1426_v57  ;;  %v1451_v20 = vsel %vm1443_vm7, %v1430_v3, %v1433_v49  ;;  %v1452_v2 = vsel %vm1446_vm4, %v1439_v43, 920167782 }
 0x1f7   : > { %v1456_v54 = vsel %vm1446_vm4, %v1442_v47, 1326507024  ;;  %v1269_v53 = vsub.s32 0, %v7063_v33  ;;  %vm1445_vm8 = vcmp.lt.s32.totalorder %v7039_v9, 3  ;;  %v1448_v36 = vsel %vm1446_vm4, %v1436_v52, 2102212464 }
 0x1f8   : > { %vm7069_vm6 = vcmp.le.f32.partialorder %v10382_v51, 0.7853982  ;;  %v1455_v14 = vsel %vm1443_vm7, %v1433_v49, %v1436_v52  ;;  %vm1444_vm11 = vcmp.lt.s32.totalorder %v7039_v9, 2  ;;  %v1453_v60 = vsel %vm1445_vm8, %v1436_v52, %v1452_v2 }
 0x1f9   : > { %v1457_v45 = vsel %vm1445_vm8, %v1439_v43, %v1456_v54  ;;  %v1310_v38 = vand.u32 2139095040, %v6535_v22  ;;  %v1177_v57 = vshll.u32 %v1176_v21, 23  ;;  %v5105_v0 = vmin.u32 %v1269_v53, %v7063_v33 }
 0x1fa   : > { %v1447_v47 = vsel %vm1443_vm7, %v1427_v59, %v1430_v3  ;;  %v1454_v35 = vsel %vm1444_vm11, %v1451_v20, %v1453_v60  ;;  %v1449_v26 = vsel %vm1445_vm8, %v1433_v49, %v1448_v36  ;;  %v1458_v37 = vsel %vm1444_vm11, %v1455_v14, %v1457_v45 }
 0x1fb   : > { %v7089_v34 = vmul.u32.u64.low %v1459_v13, %v1454_v35  ;;  %v7090_v16 = vmul.u32.u64.high %v1459_v13, %v1454_v35, %v7089_v34  ;;  %v1083_v21 = vsel %vm6971_vm9, %v6393_v25, %v1080_v27  ;;  %v1155_v43 = vadd.s32 %v6896_v55, %v6908_v23 }
 0x1fc   : > { %v1271_v52 = vclz %v5105_v0  ;;  %v1307_v3 = vand.u32 2147483647, %v6535_v22  ;;  %v1186_v49 = vsel %vm1101_vm2, %v1185_v61, %v6956_v10  ;;  %v1311_v20 = vshrl.u32 %v1310_v38, 23 }
 0x1fd   : > { %v7102_v51 = vmul.u32.u64.low %v1459_v13, %v1458_v37  ;;  %v7103_v59 = vmul.u32.u64.high %v1459_v13, %v1458_v37, %v7102_v51  ;;  %v973_v2 = vcvt.s32.f32 %v966_v24  ;;  %v1173_v54 = vshrl.u32 %v1155_v43, %v1171_v17 }
 0x1fe   : > { %v5106_v53 = vadd.s32 4294967294, %v1271_v52  ;;  %v1450_v58 = vsel %vm1444_vm11, %v1447_v47, %v1449_v26  ;;  %v971_v27 = vand.u32 2147483647, %v970_v8  ;;  %v1178_v36 = vor.u32 4788187, %v1177_v57 }
 0x1ff   : > { %v1469_v55 = vadd.s32 1, %v7090_v16  ;;  %v5108_v23 = vadd.s32 4294967169, %v1311_v20  ;;  %v1172_v14 = vshll.u32 %v6965_v6, %v7028_v4  ;;  %v1188_v61 = vsel %vm7069_vm6, 0, %v1186_v49 }
 0x200   : > { %v1259_v10 = vadd.s32 %v6999_v42, %v7008_v7  ;;  %vm5107_vm9 = vcmp.lt.s32.totalorder %v5106_v53, 0  ;;  %v1466_v17 = vmul.u32 %v1459_v13, %v1450_v58  ;;  %vm1468_vm14 = vc.u32 %v7103_v59, %v7089_v34 }
 0x201   : > { %v1274_v24 = vsel %vm5107_vm9, 0, %v5106_v53  ;;  %v1317_v8 = vadd.s32 1, %v5108_v23  ;;  %v1174_v9 = vor.u32 %v1173_v54, %v1172_v14  ;;  %v1470_v38 = vsel %vm1468_vm14, %v1469_v55, %v7090_v16 }
 0x202   : > { %v1275_v60 = vsub.s32 32, %v1274_v24  ;;  %v1279_v45 = vsub.s32 4294967266, %v1274_v24  ;;  %v974_v57 = vmul.f32 %v973_v2, %v971_v27  ;;  %v1179_v6 = vand.u32 2147483647, %v1178_v36 }
 0x203   : > { %v1471_v4 = vadd.s32 %v1470_v38, %v1466_v17  ;;  %vm1318_vm12 = vcmp.gt.s32.totalorder %v1317_v8, 0  ;;  %v1276_v0 = vshll.u32 %v7063_v33, %v1274_v24  ;;  %v10385_v13 = vsel %vm6992_vm15, 0, %v7014_v1 }
 0x204   : > { %v1277_v47 = vshrl.u32 %v1259_v10, %v1275_v60  ;;  %v1280_v42 = vadd.s32 127, %v1279_v45  ;;  %v1319_v7 = vsel %vm1318_vm12, %v1317_v8, 0  ;;  %v7122_v35 = vadd.s32 3, %v10385_v13 }
 0x205   : > { %v1472_v26 = vadd.s32 536870912, %v1471_v4  ;;  %v1314_v37 = vand.u32 8388607, %v1307_v3  ;;  %v1321_v16 = vand.u32 31, %v1319_v7  ;;  %5550 = vcosq.f32 %v1083_v21 }
 0x206   : > { %v1181_v43 = vcvt.s32.f32 %v1174_v9  ;;  %vm1205_vm1 = vcmp.lt.s32.totalorder %v6421_v15, 0  ;;  %v1278_v52 = vor.u32 %v1277_v47, %v1276_v0  ;;  %v1281_v33 = vshll.u32 %v1280_v42, 23 }
 0x207   : > { %5552 = vsinq.f32 %v1083_v21  ;;  %v7127_v49 = vadd.s32 3, %v1188_v61  ;;  %v7129_v51 = vshrl.u32 %v1472_v26, 30  ;;  %v1322_v20 = vsub.s32 32, %v1321_v16 }
 0x208   : > { %v975_v1 = vxor.u32 2147483648, %v974_v57  ;;  %v1182_v2 = vmul.f32 %v1181_v43, %v1179_v6  ;;  %v1282_v54 = vor.u32 4788187, %v1281_v33  ;;  %v1289_v53 = vsub.s32 4, %v7048_v41 }
 0x209   : > { %v1474_v58 = vshll.u32 %v7129_v51, 30  ;;  %v1315_v27 = vor.u32 8388608, %v1314_v37  ;;  %v1325_v36 = vshrl.u32 %v10353_v30, %v1322_v20  ;;  %v1518_v55 = vand.u32 2139095040, %v6631_v44 }
 0x20a   : > { %v1283_v23 = vand.u32 2147483647, %v1282_v54  ;;  %v1285_v14 = vcvt.s32.f32 %v1278_v52  ;;  %v1328_v21 = vshrl.u32 %v10354_v5, %v1322_v20  ;;  %v1334_v61 = vshrl.u32 %v10356_v46, %v1322_v20 }
 0x20b   : > { %v7137_v10 = vsub.s32 %v1471_v4, %v1474_v58  ;;  %v1324_v24 = vshll.u32 %v10360_v19, %v1321_v16  ;;  %v1327_v17 = vshll.u32 %v10353_v30, %v1321_v16  ;;  %v1331_v8 = vshrl.u32 %v10355_v62, %v1322_v20 }
 0x20c   : > { %v1286_v9 = vmul.f32 %v1285_v14, %v1283_v23  ;;  %v1320_v60 = vshrl.u32 %v1319_v7, 5  ;;  %v1330_v45 = vshll.u32 %v10354_v5, %v1321_v16  ;;  %v1333_v38 = vshll.u32 %v10355_v62, %v1321_v16 }
 0x20d   : > { %v1477_v6 = vsub.s32 0, %v7137_v10  ;;  %v1326_v0 = vor.u32 %v1325_v36, %v1324_v24  ;;  %v1329_v47 = vor.u32 %v1328_v21, %v1327_v17  ;;  %v1337_v42 = vshrl.u32 %v10363_v40, %v1322_v20 }
 0x20e   : > { %v976_v4 = vsel %vm893_vm10, %v975_v1, %v974_v57  ;;  %v10386_v13 = vand.u32 2147483647, %v6421_v15  ;;  %v1335_v7 = vor.u32 %v1334_v61, %v1333_v38  ;;  %v1336_v37 = vshll.u32 %v10356_v46, %v1321_v16 }
 0x20f   : > { %v1519_v43 = vshrl.u32 %v1518_v55, 23  ;;  %v1183_v52 = vxor.u32 2147483648, %v1182_v2  ;;  %v1290_v33 = vsel %vm1205_vm1, %v1289_v53, %v7048_v41  ;;  %v5113_v54 = vmin.u32 %v1477_v6, %v7137_v10  ;;  %v7159_v36 = vpop.eup %5550 }
 0x210   : > { %vm7150_vm3 = vcmp.le.f32.partialorder %v10386_v13, 0.7853982  ;;  %v1332_v58 = vor.u32 %v1331_v8, %v1330_v45  ;;  %v1287_v57 = vxor.u32 2147483648, %v1286_v9  ;;  %v1338_v1 = vor.u32 %v1337_v42, %v1336_v37 }
 0x211   : > { %vm1339_vm10 = vcmp.lt.s32.totalorder %v1320_v60, 1  ;;  %v1515_v23 = vand.u32 2147483647, %v6631_v44  ;;  %v7162_v14 = vpop.eup %5552  ;;  %v1479_v21 = vclz %v5113_v54  ;;  %vm1342_vm5 = vcmp.lt.s32.totalorder %v1320_v60, 4 }
 0x212   : > { %v1347_v16 = vsel %vm1339_vm10, %v1326_v0, %v1329_v47  ;;  %v1355_v55 = vshll.u32 %v1315_v27, 8  ;;  %v1323_v61 = vshrl.u32 %v10360_v19, %v1322_v20  ;;  %vm1341_vm13 = vcmp.lt.s32.totalorder %v1320_v60, 3 }
 0x213   : > { %v1348_v41 = vsel %vm1342_vm5, %v1335_v7, 920167782  ;;  %v5116_v53 = vadd.s32 4294967169, %v1519_v43  ;;  %v5114_v24 = vadd.s32 4294967294, %v1479_v21  ;;  %vm1340_vm7 = vcmp.lt.s32.totalorder %v1320_v60, 2 }
 0x214   : > { %v1344_v17 = vsel %vm1342_vm5, %v1332_v58, 2102212464  ;;  %v1349_v8 = vsel %vm1341_vm13, %v1332_v58, %v1348_v41  ;;  %v1288_v45 = vsel %vm1205_vm1, %v1287_v57, %v1286_v9  ;;  %v1351_v6 = vsel %vm1339_vm10, %v1329_v47, %v1332_v58 }
 0x215   : > { %v1350_v38 = vsel %vm1340_vm7, %v1347_v16, %v1349_v8  ;;  %v1352_v42 = vsel %vm1342_vm5, %v1338_v1, 1326507024  ;;  %v1343_v13 = vsel %vm1339_vm10, %v1323_v61, %v1326_v0  ;;  %vm5115_vm4 = vcmp.lt.s32.totalorder %v5114_v24, 0 }
 0x216   : > { %v1353_v27 = vsel %vm1341_vm13, %v1335_v7, %v1352_v42  ;;  %v7171_v37 = vmul.u32.u64.low %v1355_v55, %v1350_v38  ;;  %v7172_v20 = vmul.u32.u64.high %v1355_v55, %v1350_v38, %v7171_v37  ;;  %v1345_v43 = vsel %vm1341_vm13, %v1329_v47, %v1344_v17 }
 0x217   : > { %v1354_v54 = vsel %vm1340_vm7, %v1351_v6, %v1353_v27  ;;  %v1525_v21 = vadd.s32 1, %v5116_v53  ;;  %v1184_v9 = vsel %vm1101_vm2, %v1183_v52, %v1182_v2  ;;  %v1291_v58 = vsel %vm7150_vm3, %v6421_v15, %v1288_v45 }
 0x218   : > { %v1292_v0 = vsel %vm7150_vm3, 0, %v1290_v33  ;;  %v1522_v7 = vand.u32 8388607, %v1515_v23  ;;  %v979_v47 = vsel %vm6992_vm15, %v6395_v31, %v976_v4  ;;  %v1482_v16 = vsel %vm5115_vm4, 0, %v5114_v24 }
 0x219   : > { %v7188_v57 = vmul.u32.u64.low %v1355_v55, %v1354_v54  ;;  %v7189_v1 = vmul.u32.u64.high %v1355_v55, %v1354_v54, %v7188_v57  ;;  %vm1526_vm8 = vcmp.gt.s32.totalorder %v1525_v21, 0  ;;  %v1346_v2 = vsel %vm1340_vm7, %v1343_v13, %v1345_v43 }
 0x21a   : > { %v1365_v52 = vadd.s32 1, %v7172_v20  ;;  %v1527_v61 = vsel %vm1526_vm8, %v1525_v21, 0  ;;  %v1187_v26 = vsel %vm7069_vm6, %v6397_v32, %v1184_v9  ;;  %5554 = vcosq.f32 %v1291_v58 }
 0x21b   : > { %v1296_v33 = vadd.s32 3, %v1292_v0  ;;  %v1529_v41 = vand.u32 31, %v1527_v61  ;;  %v7197_v18 = vand.u32 3, %v7022_v48  ;;  %5556 = vcosq.f32 %v979_v47 }
 0x21c   : > { %v7200_v4 = vand.u32 3, %v7122_v35  ;;  %v1523_v53 = vor.u32 8388608, %v1522_v7  ;;  %5558 = vsinq.f32 %v979_v47  ;;  %v1487_v60 = vsub.s32 4294967266, %v1482_v16 }
 0x21d   : > { %v1362_v24 = vmul.u32 %v1355_v55, %v1346_v2  ;;  %vm1364_vm15 = vc.u32 %v7189_v1, %v7171_v37  ;;  %5560 = vcosq.f32 %v1187_v26  ;;  %v1483_v50 = vsub.s32 32, %v1482_v16 }
 0x21e   : > { %v1366_v17 = vsel %vm1364_vm15, %v1365_v52, %v7172_v20  ;;  %v1530_v8 = vsub.s32 32, %v1529_v41  ;;  %5562 = vsinq.f32 %v1187_v26  ;;  %v7206_v48 = vand.u32 3, %v7127_v49 }
 0x21f   : > { %v7208_v45 = vand.u32 3, %v1296_v33  ;;  %v1367_v35 = vadd.s32 %v1366_v17, %v1362_v24  ;;  %5564 = vsinq.f32 %v1291_v58  ;;  %v1467_v38 = vadd.s32 %v7089_v34, %v7103_v59 }
 0x220   : > { %v7212_v55 = vshll.u32 %v1523_v53, 8  ;;  %v572_v6 = vxor.u32 2147483648, %v6984_v28  ;;  %v1484_v42 = vshll.u32 %v7137_v10, %v1482_v16  ;;  %v1488_v13 = vadd.s32 127, %v1487_v60 }
 0x221   : > { %v1368_v27 = vadd.s32 536870912, %v1367_v35  ;;  %vm571_vm2 = vcmp.eq.s32.totalorder %v6833_v11, 0  ;;  %v1485_v20 = vshrl.u32 %v1467_v38, %v1483_v50  ;;  %v1533_v49 = vshrl.u32 %v10353_v30, %v1530_v8 }
 0x222   : > { %v1536_v43 = vshrl.u32 %v10354_v5, %v1530_v8  ;;  %v1539_v54 = vshrl.u32 %v10355_v62, %v1530_v8  ;;  %v7222_v34 = vshrl.u32 %v1527_v61, 5  ;;  %v1538_v59 = vshll.u32 %v10354_v5, %v1529_v41 }
 0x223   : > { %v7220_v21 = vshrl.u32 %v1368_v27, 30  ;;  %v1542_v9 = vshrl.u32 %v10356_v46, %v1530_v8  ;;  %v1532_v10 = vshll.u32 %v10360_v19, %v1529_v41  ;;  %v1535_v58 = vshll.u32 %v10353_v30, %v1529_v41 }
 0x224   : > { %v1541_v0 = vshll.u32 %v10355_v62, %v1529_v41  ;;  %v7230_v7 = vsel %vm571_vm2, %v6944_v39, %v572_v6  ;;  %v7232_v47 = vpop.eup %5554  ;;  %v1489_v57 = vshll.u32 %v1488_v13, 23  ;;  %v1540_v2 = vor.u32 %v1539_v54, %v1538_v59 }
 0x225   : > { %v1370_v16 = vshll.u32 %v7220_v21, 30  ;;  %v1545_v52 = vshrl.u32 %v10363_v40, %v1530_v8  ;;  %v7236_v5 = vpop.eup %5556  ;;  %v1534_v61 = vor.u32 %v1533_v49, %v1532_v10  ;;  %v1537_v26 = vor.u32 %v1536_v43, %v1535_v58 }
 0x226   : > { %v1543_v33 = vor.u32 %v1542_v9, %v1541_v0  ;;  %v1544_v30 = vshll.u32 %v10356_v46, %v1529_v41  ;;  %v5559_v53 = vpop.eup %5558  ;;  %v1486_v62 = vor.u32 %v1485_v20, %v1484_v42  ;;  %vm574_vm6 = vcmp.eq.s32.totalorder %v6833_v11, 2 }
 0x227   : > { %v7239_v60 = vsub.s32 %v1367_v35, %v1370_v16  ;;  %v575_v24 = vxor.u32 2147483648, %v6944_v39  ;;  %v7243_v50 = vpop.eup %5560  ;;  %v1303_v17 = vxor.u32 2147483648, %v7232_v47  ;;  %v1363_v40 = vadd.s32 %v7171_v37, %v7189_v1 }
 0x228   : > { %v1546_v38 = vor.u32 %v1545_v52, %v1544_v30  ;;  %vm1550_vm11 = vcmp.lt.s32.totalorder %v7222_v34, 4  ;;  %v7249_v6 = vpop.eup %5562  ;;  %v1490_v46 = vor.u32 4788187, %v1489_v57  ;;  %vm1547_vm9 = vcmp.lt.s32.totalorder %v7222_v34, 1 }
 0x229   : > { %v1373_v41 = vsub.s32 0, %v7239_v60  ;;  %v1552_v39 = vsel %vm1550_vm11, %v1540_v2, 2102212464  ;;  %v7255_v35 = vpop.eup %5564  ;;  %v1531_v42 = vshrl.u32 %v10360_v19, %v1530_v8  ;;  %vm1549_vm14 = vcmp.lt.s32.totalorder %v7222_v34, 3 }
 0x22a   : > { %v1555_v37 = vsel %vm1547_vm9, %v1534_v61, %v1537_v26  ;;  %v1556_v1 = vsel %vm1550_vm11, %v1543_v33, 920167782  ;;  %vm570_vm12 = vcmp.lt.s32.totalorder %v6833_v11, 2  ;;  %vm1309_vm1 = vcmp.lt.s32.totalorder %v6535_v22, 0 }
 0x22b   : > { %v5109_v13 = vmin.u32 %v1373_v41, %v7239_v60  ;;  %vm1548_vm3 = vcmp.lt.s32.totalorder %v7222_v34, 2  ;;  %v1557_v27 = vsel %vm1549_vm14, %v1540_v2, %v1556_v1  ;;  %v1559_v20 = vsel %vm1547_vm9, %v1537_v26, %v1540_v2 }
 0x22c   : > { %v1551_v49 = vsel %vm1547_vm9, %v1531_v42, %v1534_v61  ;;  %v1553_v43 = vsel %vm1549_vm14, %v1537_v26, %v1552_v39  ;;  %v1558_v19 = vsel %vm1548_vm3, %v1555_v37, %v1557_v27  ;;  %v1560_v8 = vsel %vm1550_vm11, %v1546_v38, 1326507024 }
 0x22d   : > { %v1375_v54 = vclz %v5109_v13  ;;  %v1561_v59 = vsel %vm1549_vm14, %v1543_v33, %v1560_v8  ;;  %v7270_v9 = vmul.u32.u64.low %v7212_v55, %v1558_v19  ;;  %v7271_v10 = vmul.u32.u64.high %v7212_v55, %v1558_v19, %v7270_v9 }
 0x22e   : > { %vm567_vm10 = vweird.f32 %v6380_v12  ;;  %vm983_vm5 = vweird.f32 %v6395_v31  ;;  %v1300_v58 = vxor.u32 2147483648, %v7255_v35  ;;  %v1491_v0 = vand.u32 2147483647, %v1490_v46 }
 0x22f   : > { %v1493_v57 = vcvt.s32.f32 %v1486_v62  ;;  %v1562_v16 = vsel %vm1548_vm3, %v1559_v20, %v1561_v59  ;;  %vm1302_vm13 = vcmp.eq.s32.totalorder %v7208_v45, 2  ;;  %vm7282_vm7 = vcmp.le.f32.partialorder %v1307_v3, 0.7853982 }
 0x230   : > { %v5110_v52 = vadd.s32 4294967294, %v1375_v54  ;;  %v1393_v61 = vsub.s32 4, %v7220_v21  ;;  %v7288_v26 = vmul.u32.u64.low %v7212_v55, %v1562_v16  ;;  %v7289_v33 = vmul.u32.u64.high %v7212_v55, %v1562_v16, %v7288_v26 }
 0x231   : > { %vm1299_vm4 = vcmp.eq.s32.totalorder %v7208_v45, 0  ;;  %v1554_v30 = vsel %vm1548_vm3, %v1551_v49, %v1553_v43  ;;  %v576_v62 = vsel %vm574_vm6, %v575_v24, %v6984_v28  ;;  %v988_v3 = vxor.u32 2147483648, %v5559_v53 }
 0x232   : > { %v991_v38 = vxor.u32 2147483648, %v7236_v5  ;;  %vm5111_vm8 = vcmp.lt.s32.totalorder %v5110_v52, 0  ;;  %v1573_v46 = vadd.s32 1, %v7271_v10  ;;  %vm987_vm15 = vcmp.eq.s32.totalorder %v7200_v4, 0 }
 0x233   : > { %vm990_vm2 = vcmp.eq.s32.totalorder %v7200_v4, 2  ;;  %v7301_v41 = vmul.f32 %v1493_v57, %v1491_v0  ;;  %v1378_v39 = vsel %vm5111_vm8, 0, %v5110_v52  ;;  %v989_v34 = vsel %vm987_vm15, %v7236_v5, %v988_v3 }
 0x234   : > { %v992_v42 = vsel %vm990_vm2, %v991_v38, %v5559_v53  ;;  %v1379_v37 = vsub.s32 32, %v1378_v39  ;;  %v1383_v1 = vsub.s32 4294967266, %v1378_v39  ;;  %v577_v28 = vsel %vm570_vm12, %v7230_v7, %v576_v62 }
 0x235   : > { %vm986_vm6 = vcmp.lt.s32.totalorder %v7200_v4, 2  ;;  %v1394_v24 = vsel %vm1309_vm1, %v1393_v61, %v7220_v21  ;;  %v1570_v13 = vmul.u32 %v7212_v55, %v1554_v30  ;;  %vm1572_vm11 = vc.u32 %v7289_v33, %v7270_v9 }
 0x236   : > { %v993_v27 = vsel %vm986_vm6, %v989_v34, %v992_v42  ;;  %v1380_v5 = vshll.u32 %v7239_v60, %v1378_v39  ;;  %v1381_v53 = vshrl.u32 %v1363_v40, %v1379_v37  ;;  %v1384_v20 = vadd.s32 127, %v1383_v1  ;;  %v10395_v39 = vld [vmem:[#allocation21_spill] sm:$0xff]  ;;  %v10396_v42 = vld [vmem:[#allocation16_spill] sm:$0xff]  ;;  %v10397_v1 = vld [vmem:[#allocation15_spill] sm:$0xff] }
 0x237   : > { %v1574_v49 = vsel %vm1572_vm11, %v1573_v46, %v7271_v10  ;;  %v578_v4 = vsel %vm567_vm10, nan, %v577_v28  ;;  %v994_v7 = vsel %vm983_vm5, nan, %v993_v27  ;;  %v780_v21 = vxor.u32 2147483648, %v7046_v56  ;;  %v10392_v10 = vld [vmem:[#allocation24_spill] sm:$0xff]  ;;  %v10398_v27 = vld [vmem:[#allocation18_spill] sm:$0xff] }
 0x238   : > { %v1575_v11 = vadd.s32 %v1574_v49, %v1570_v13  ;;  %v1497_v55 = vsub.s32 4, %v7129_v51  ;;  %v1382_v43 = vor.u32 %v1381_v53, %v1380_v5  ;;  %v1385_v19 = vshll.u32 %v1384_v20, 23  ;;  %v10400_v5 = vld [vmem:[#allocation20_spill] sm:$0xff] }
 0x239   : > { %v7322_v8 = vpack.c.bf16 %v994_v7, %v578_v4  ;;  %v7329_v60 = vsel %vm1302_vm13, %v1303_v17, %v7255_v35  ;;  %v1396_v12 = vsel %vm7282_vm7, 0, %v1394_v24  ;;  %v783_v40 = vxor.u32 2147483648, %v6987_v63  ;;  %v10401_v4 = vld [vmem:[#allocation25_spill] sm:$0xff] }
 0x23a   : > { %v1576_v31 = vadd.s32 536870912, %v1575_v11  ;;  %v7337_v54 = vsel %vm1299_vm4, %v7232_v47, %v1300_v58  ;;  %v1386_v59 = vor.u32 4788187, %v1385_v19  ;;  %vm779_vm9 = vcmp.eq.s32.totalorder %v10392_v10, 0  ;;  %v10393_v58 = vld [vmem:[#allocation17_spill] sm:$0xff] }
 0x23b   : > { %10391 = vst [vmem:[#allocation27_spill] sm:$0xff] %v7322_v8  ;;  %5223 = vmatprep.subr.bf16.mxu0 %v7322_v8  ;;  %vm782_vm14 = vcmp.eq.s32.totalorder %v10392_v10, 2  ;;  %v1495_v17 = vxor.u32 2147483648, %v7301_v41  ;;  %v781_v0 = vsel %vm779_vm9, %v6987_v63, %v780_v21  ;;  %v1389_v52 = vcvt.s32.f32 %v1382_v43 }
 0x23c   : > { %v7343_v35 = vshrl.u32 %v1576_v31, 30  ;;  %v784_v57 = vsel %vm782_vm14, %v783_v40, %v7046_v56  ;;  %v1387_v16 = vand.u32 2147483647, %v1386_v59  ;;  %v1400_v61 = vadd.s32 3, %v1396_v12  ;;  %v10394_v56 = vld [vmem:[#allocation13_spill] sm:$0xff]  ;;  %v10405_v12 = vld [vmem:[#allocation26_spill] sm:$0xff] }
 0x23d   : > { %v1196_v47 = vxor.u32 2147483648, %v7249_v6  ;;  %vm1413_vm12 = vcmp.lt.s32.totalorder %v10393_v58, 0  ;;  %vm778_vm3 = vcmp.lt.s32.totalorder %v10392_v10, 2  ;;  %vm1195_vm10 = vcmp.eq.s32.totalorder %v7206_v48, 0 }
 0x23e   : > { %v1578_v26 = vshll.u32 %v7343_v35, 30  ;;  %v1199_v30 = vxor.u32 2147483648, %v7243_v50  ;;  %v1390_v62 = vmul.f32 %v1389_v52, %v1387_v16  ;;  %v785_v3 = vsel %vm778_vm3, %v781_v0, %v784_v57  ;;  %v10406_v0 = vld [vmem:[#allocation14_spill] sm:$0xff]  ;;  %v10407_v52 = vld [vmem:[#allocation23_spill] sm:$0xff] }
 0x23f   : > { %v1197_v63 = vsel %vm1195_vm10, %v7243_v50, %v1196_v47  ;;  %vm1198_vm5 = vcmp.eq.s32.totalorder %v7206_v48, 2  ;;  %vm463_vm13 = vweird.f32 %v10394_v56  ;;  %vm1194_vm4 = vcmp.lt.s32.totalorder %v7206_v48, 2 }
 0x240   : > { %v7356_v38 = vsub.s32 %v1575_v11, %v1578_v26  ;;  %v1200_v46 = vsel %vm1198_vm5, %v1199_v30, %v7249_v6  ;;  %v468_v34 = vxor.u32 2147483648, %v10395_v39  ;;  %vm879_vm8 = vweird.f32 %v10396_v42  ;;  %v10409_v26 = vld [vmem:[#allocation22_spill] sm:$0xff] }
 0x241   : > { %v1391_v37 = vxor.u32 2147483648, %v1390_v62  ;;  %vm775_vm15 = vweird.f32 %v10397_v1  ;;  %vm1191_vm2 = vweird.f32 %v6397_v32  ;;  %v1201_v50 = vsel %vm1194_vm4, %v1197_v63, %v1200_v46 }
 0x242   : > { %v1581_v28 = vsub.s32 0, %v7356_v38  ;;  %v786_v24 = vsel %vm775_vm15, nan, %v785_v3  ;;  %v1202_v13 = vsel %vm1191_vm2, nan, %v1201_v50  ;;  %vm467_vm6 = vcmp.eq.s32.totalorder %v10398_v27, 0 }
 0x243   : > { %v1392_v48 = vsel %vm1309_vm1, %v1391_v37, %v1390_v62  ;;  %v7368_v6 = vpack.c.bf16 %v1202_v13, %v786_v24  ;;  %v469_v53 = vsel %vm467_vm6, %v10400_v5, %v468_v34  ;;  %v471_v20 = vxor.u32 2147483648, %v10400_v5 }
 0x244   : > { %v1395_v32 = vsel %vm7282_vm7, %v6535_v22, %v1392_v48  ;;  %v5117_v49 = vmin.u32 %v1581_v28, %v7356_v38  ;;  %vm466_vm11 = vcmp.lt.s32.totalorder %v10398_v27, 2  ;;  %vm470_vm9 = vcmp.eq.s32.totalorder %v10398_v27, 2 }
 0x245   : > { %10399 = vst [vmem:[#allocation24_spill] sm:$0xff] %v7368_v6  ;;  %5566 = vcosq.f32 %v1395_v32  ;;  %5233 = vmatprep.subr.bf16.mxu1 %v7368_v6  ;;  %v472_v11 = vsel %vm470_vm9, %v471_v20, %v10395_v39  ;;  %vm883_vm1 = vcmp.eq.s32.totalorder %v10401_v4, 0  ;;  %v884_v7 = vxor.u32 2147483648, %v7061_v29 }
 0x246   : > { %vm1298_vm14 = vcmp.lt.s32.totalorder %v7208_v45, 2  ;;  %v10402_v2 = vand.u32 2147483647, %v10393_v58  ;;  %5568 = vsinq.f32 %v1395_v32  ;;  %v1583_v43 = vclz %v5117_v49 }
 0x247   : > { %v473_v19 = vsel %vm466_vm11, %v469_v53, %v472_v11  ;;  %v887_v31 = vxor.u32 2147483648, %v10405_v12  ;;  %v1496_v40 = vsel %vm1413_vm12, %v1495_v17, %v7301_v41  ;;  %v7393_v59 = vand.u32 3, %v1400_v61  ;;  %v10408_v61 = vld [vmem:[#allocation19_spill] sm:$0xff] }
 0x248   : > { %vm7385_vm7 = vcmp.le.f32.partialorder %v10402_v2, 0.7853982  ;;  %v885_v10 = vsel %vm883_vm1, %v10405_v12, %v884_v7  ;;  %vm886_vm3 = vcmp.eq.s32.totalorder %v10401_v4, 2  ;;  %vm671_vm10 = vweird.f32 %v10406_v0 }
 0x249   : > { %vm1087_vm5 = vweird.f32 %v6393_v25  ;;  %v5118_v57 = vadd.s32 4294967294, %v1583_v43  ;;  %vm882_vm4 = vcmp.lt.s32.totalorder %v10401_v4, 2  ;;  %v888_v16 = vsel %vm886_vm3, %v887_v31, %v7061_v29  ;;  %v10415_v31 = vld [vmem:[#allocation11_spill] sm:$0xff] }
 0x24a   : > { %v676_v47 = vxor.u32 2147483648, %v10407_v52  ;;  %v474_v41 = vsel %vm463_vm13, nan, %v473_v19  ;;  %v889_v17 = vsel %vm882_vm4, %v885_v10, %v888_v16  ;;  %vm675_vm15 = vcmp.eq.s32.totalorder %v10408_v61, 0 }
 0x24b   : > { %v679_v30 = vxor.u32 2147483648, %v10409_v26  ;;  %vm1295_vm2 = vweird.f32 %v6421_v15  ;;  %vm5119_vm6 = vcmp.lt.s32.totalorder %v5118_v57, 0  ;;  %v890_v62 = vsel %vm879_vm8, nan, %v889_v17  ;;  %v1620_v17 = vld [vmem:[#allocation5 + $0x20] sm:$0xff] }
 0x24c   : > { %vm678_vm11 = vcmp.eq.s32.totalorder %v10408_v61, 2  ;;  %v1092_v29 = vxor.u32 2147483648, %v7162_v14  ;;  %v1586_v3 = vsel %vm5119_vm6, 0, %v5118_v57  ;;  %v7411_v63 = vpack.c.bf16 %v890_v62, %v474_v41 }
 0x24d   : > { %v677_v56 = vsel %vm675_vm15, %v10409_v26, %v676_v47  ;;  %v680_v46 = vsel %vm678_vm11, %v679_v30, %v10407_v52  ;;  %vm1399_vm13 = vweird.f32 %v6535_v22  ;;  %v1571_v39 = vadd.s32 %v7270_v9, %v7289_v33 }
 0x24e   : > { %10410 = vst [vmem:[#allocation17_spill] sm:$0xff] %v7411_v63  ;;  %v1587_v34 = vsub.s32 32, %v1586_v3  ;;  %v1591_v37 = vsub.s32 4294967266, %v1586_v3  ;;  %vm1091_vm8 = vcmp.eq.s32.totalorder %v7197_v18, 0  ;;  %5225 = vmatpush1.bf16.msra.mxu0 %v7411_v63  ;;  %vm674_vm9 = vcmp.lt.s32.totalorder %v10408_v61, 2 }
 0x24f   : > { %v1093_v42 = vsel %vm1091_vm8, %v7159_v36, %v1092_v29  ;;  %vm1094_vm1 = vcmp.eq.s32.totalorder %v7197_v18, 2  ;;  %v1095_v1 = vxor.u32 2147483648, %v7159_v36  ;;  %v1588_v50 = vshll.u32 %v7356_v38, %v1586_v3  ;;  %v5567_v9 = vpop.eup %5566 }
 0x250   : > { %v1589_v28 = vshrl.u32 %v1571_v39, %v1587_v34  ;;  %v1592_v24 = vadd.s32 127, %v1591_v37  ;;  %v681_v13 = vsel %vm674_vm9, %v677_v56, %v680_v46  ;;  %v1305_v33 = vsel %vm1298_vm14, %v7337_v54, %v7329_v60  ;;  %v5569_v36 = vpop.eup %5568  ;;  %v1622_v46 = vld [vmem:[#allocation5 + $0x30] sm:$0xff] }
 0x251   : > { %v1499_v27 = vsel %vm7385_vm7, %v10393_v58, %v1496_v40  ;;  %vm1090_vm3 = vcmp.lt.s32.totalorder %v7197_v18, 2  ;;  %v1096_v48 = vsel %vm1094_vm1, %v1095_v1, %v7162_v14  ;;  %v1407_v20 = vxor.u32 2147483648, %v5567_v9 }
 0x252   : > { %v1590_v5 = vor.u32 %v1589_v28, %v1588_v50  ;;  %v1593_v38 = vshll.u32 %v1592_v24, 23  ;;  %v1097_v53 = vsel %vm1090_vm3, %v1093_v42, %v1096_v48  ;;  %v682_v32 = vsel %vm671_vm10, nan, %v681_v13  ;;  %v1623_v28 = vld [vmem:[#allocation5 + $0x38] sm:$0xff] }
 0x253   : > { %v1098_v45 = vsel %vm1087_vm5, nan, %v1097_v53  ;;  %v1404_v60 = vxor.u32 2147483648, %v5569_v36  ;;  %vm1406_vm14 = vcmp.eq.s32.totalorder %v7393_v59, 2  ;;  %vm1403_vm4 = vcmp.eq.s32.totalorder %v7393_v59, 0 }
 0x254   : > { %v1594_v54 = vor.u32 4788187, %v1593_v38  ;;  %v7439_v49 = vpack.c.bf16 %v1098_v45, %v682_v32  ;;  %v1408_v14 = vsel %vm1406_vm14, %v1407_v20, %v5569_v36  ;;  %v1306_v18 = vsel %vm1295_vm2, nan, %v1305_v33  ;;  %v1624_v36 = vld [vmem:[#allocation5 + $0x40] sm:$0xff] }
 0x255   : > { %5570 = vcosq.f32 %v1499_v27  ;;  %vm1402_vm15 = vcmp.lt.s32.totalorder %v7393_v59, 2  ;;  %v1405_v11 = vsel %vm1403_vm4, %v5567_v9, %v1404_v60  ;;  %v1597_v4 = vcvt.s32.f32 %v1590_v5  ;;  %v6042_v59 = vld [vmem:[%s6338_s29] sm:$0xff]  ;;  %v6043_v5 = vld [vmem:[%s6338_s29 + $0x8] sm:$0xff] }
 0x256   : > { %10411 = vst [vmem:[#allocation13_spill] sm:$0xff] %v7439_v49  ;;  %5572 = vsinq.f32 %v1499_v27  ;;  %v1595_v25 = vand.u32 2147483647, %v1594_v54  ;;  %5235 = vmatpush1.bf16.msra.mxu1 %v7439_v49  ;;  %v1409_v7 = vsel %vm1402_vm15, %v1405_v11, %v1408_v14  ;;  %vm6185_vm10 = vmmov 1   ;;  %v10419_v27 = vld [vmem:[#allocation12_spill] sm:$0xff] }
 0x257   : > { %vm7447_vm5 = vmpackc.low %vm196_vm0, %vm6185_vm10  ;;  %v10412_v2 = vmov 0  ;;  %v1410_v15 = vsel %vm1399_vm13, nan, %v1409_v7  ;;  %v1498_v43 = vsel %vm1413_vm12, %v1497_v55, %v7129_v51  ;;  %v1601_v12 = vsub.s32 4, %v7343_v35  ;;  %v1619_v51 = vld [vmem:[#allocation5 + $0x18] sm:$0xff] }
 0x258   : > { %v10413_v2 = vsel %vm7447_vm5, 4294967295, %v10412_v2  ;;  %v1598_v19 = vmul.f32 %v1597_v4, %v1595_v25  ;;  %v7460_v40 = vpack.c.bf16 %v10415_v31, %v1410_v15  ;;  %v7463_v10 = vpack.c.bf16 %v6042_v59, %v1306_v18 }
 0x259   : > { %10414 = vst [vmem:[#allocation21_spill] sm:$0xff] %v10413_v2  ;;  %v1500_v22 = vsel %vm7385_vm7, 0, %v1498_v43  ;;  %vm1517_vm0 = vcmp.lt.s32.totalorder %v6631_v44, 0  ;;  %vm1627_vm12 = vcmask 228352   ;;  %vm1516_vm2 = vcmp.le.f32.partialorder %v1515_v23, 0.7853982 }
 0x25a   : > { %10416 = vst [vmem:[#allocation16_spill] sm:$0xff] %v7460_v40  ;;  %10417 = vst [vmem:[#allocation15_spill] sm:$0xff] %v7463_v10  ;;  %v1599_v0 = vxor.u32 2147483648, %v1598_v19  ;;  %5228 = vmatprep.subr.msk.bf16.mxu0 %vm7447_vm5, %v7460_v40  ;;  %v1602_v57 = vsel %vm1517_vm0, %v1601_v12, %v7343_v35  ;;  %v1504_v52 = vadd.s32 3, %v1500_v22  ;;  %v10418_v41 = vmov 0.0   ;;  %v1621_v35 = vld [vmem:[#allocation5 + $0x28] sm:$0xff] }
 0x25b   : > { %5231 = vmatpush1.bf16.msk.msra.mxu0 %vm7447_vm5, %v7463_v10  ;;  %v1604_v47 = vsel %vm1516_vm2, 0, %v1602_v57  ;;  %vm1503_vm9 = vweird.f32 %v10393_v58  ;;  %vm1607_vm3 = vweird.f32 %v6631_v44  ;;  %v1626_v58 = vld [vmem:[#allocation5 + $0x50] sm:$0xff] }
 0x25c   : > { %v1600_v55 = vsel %vm1517_vm0, %v1599_v0, %v1598_v19  ;;  %v1505_v26 = vand.u32 3, %v1504_v52  ;;  %v1608_v30 = vadd.s32 3, %v1604_v47 }
 0x25d   : > { %v1603_v16 = vsel %vm1516_vm2, %v6631_v44, %v1600_v55  ;;  %v1625_v44 = vld [vmem:[#allocation5 + $0x48] sm:$0xff] }
 0x25e   : > { %5574 = vcosq.f32 %v1603_v16  ;;  %5122 = vmatmul.mubr.msk.f32.vlgmr.msra.gmra.mrb[6].mxu0 %vm1627_vm12, %v1619_v51  ;;  %vm1507_vm7 = vcmp.eq.s32.totalorder %v1505_v26, 0  ;;  %vm1510_vm6 = vcmp.eq.s32.totalorder %v1505_v26, 2  ;;  %v1609_v29 = vand.u32 3, %v1608_v30 }
 0x25f   : > { %v5571_v21 = vpop.eup %5570  ;;  %5576 = vsinq.f32 %v1603_v16  ;;  %1722 = vmatprep.mubr.f32.mxu0 %v10418_v41  ;;  %vm1506_vm11 = vcmp.lt.s32.totalorder %v1505_v26, 2 }
 0x260   : > { %v5573_v61 = vpop.eup %5572  ;;  %v1511_v62 = vxor.u32 2147483648, %v5571_v21  ;;  %vm1614_vm13 = vcmp.eq.s32.totalorder %v1609_v29, 2  ;;  %vm1611_vm8 = vcmp.eq.s32.totalorder %v1609_v29, 0  ;;  %vm1610_vm1 = vcmp.lt.s32.totalorder %v1609_v29, 2 }
 0x261   : > { %v1508_v23 = vxor.u32 2147483648, %v5573_v61 }
 0x262   : > { %5123 = vmatmul.mubr.msk.f32.gmra.mrb[8].mxu0 %vm1627_vm12, %v1620_v17  ;;  %v1512_v56 = vsel %vm1510_vm6, %v1511_v62, %v5573_v61 }
 0x263   : > { %1728 = vmatprep.mubr.f32.mxu0 %v10418_v41  ;;  %v1509_v3 = vsel %vm1507_vm7, %v5571_v21, %v1508_v23 }
 0x264   : > { %v1513_v42 = vsel %vm1506_vm11, %v1509_v3, %v1512_v56 }
 0x265   : > { %v1514_v13 = vsel %vm1503_vm9, nan, %v1513_v42 }
 0x266   : > { %5124 = vmatmul.mubr.msk.f32.gmra.mrb[10].mxu0 %vm1627_vm12, %v1621_v35  ;;  %v7494_v38 = vpack.c.bf16 %v6043_v5, %v1514_v13 }
 0x267   : > { %1734 = vmatprep.mubr.f32.mxu0 %v10418_v41 }
 0x268   : > { %v5575_v39 = vpop.eup %5574  ;;  %10421 = vst [vmem:[#allocation20_spill] sm:$0xff] %v7494_v38 }
 0x269   : > { %v5577_v34 = vpop.eup %5576  ;;  %v1615_v37 = vxor.u32 2147483648, %v5575_v39 }
 0x26a   : > { %v1612_v1 = vxor.u32 2147483648, %v5577_v34  ;;  %5125 = vmatmul.mubr.msk.f32.gmra.mrb[12].mxu0 %vm1627_vm12, %v1622_v46 }
 0x26b   : > { %v1616_v50 = vsel %vm1614_vm13, %v1615_v37, %v5577_v34  ;;  %1740 = vmatprep.mubr.f32.mxu0 %v10418_v41 }
 0x26c   : > { %v1613_v24 = vsel %vm1611_vm8, %v5575_v39, %v1612_v1 }
 0x26d   : > { %v1617_v9 = vsel %vm1610_vm1, %v1613_v24, %v1616_v50 }
 0x26e   : > { %v1618_v33 = vsel %vm1607_vm3, nan, %v1617_v9  ;;  %5126 = vmatmul.mubr.msk.f32.gmra.mrb[14].mxu0 %vm1627_vm12, %v1623_v28 }
 0x26f   : > { %v7490_v48 = vpack.c.bf16 %v10419_v27, %v1618_v33  ;;  %1746 = vmatprep.mubr.f32.mxu0 %v10418_v41 }
 0x271   : > { %10420 = vst [vmem:[#allocation18_spill] sm:$0xff] %v7490_v48  ;;  %5238 = vmatprep.subr.msk.bf16.mxu1 %vm7447_vm5, %v7490_v48 }
 0x272   : > { %5241 = vmatpush1.bf16.msk.msra.mxu1 %vm7447_vm5, %v7494_v38  ;;  %5127 = vmatmul.mubr.msk.f32.gmra.mrb[16].mxu0 %vm1627_vm12, %v1624_v36 }
 0x273   : > { %1752 = vmatprep.mubr.f32.mxu0 %v10418_v41 }
 0x275   : > { %5132 = vmatmul.mubr.msk.f32.vlgmr.msra.gmra.mrb[6].mxu1 %vm1627_vm12, %v1619_v51 }
 0x276   : > { %1835 = vmatprep.mubr.f32.mxu1 %v10418_v41  ;;  %5128 = vmatmul.mubr.msk.f32.gmra.mrb[18].mxu0 %vm1627_vm12, %v1625_v44 }
 0x277   : > { %1758 = vmatprep.mubr.f32.mxu0 %v10418_v41 }
 0x279   : > { %5133 = vmatmul.mubr.msk.f32.gmra.mrb[8].mxu1 %vm1627_vm12, %v1620_v17 }
 0x27a   : > { %1841 = vmatprep.mubr.f32.mxu1 %v10418_v41  ;;  %5129 = vmatmul.mubr.msk.f32.gmra.mrb[20].mxu0 %vm1627_vm12, %v1626_v58 }
 0x27b   : > { %2473 = vmatprep.mubr.f32.mxu0 %v10418_v41 }
 0x27d   : > { %5134 = vmatmul.mubr.msk.f32.gmra.mrb[10].mxu1 %vm1627_vm12, %v1621_v35 }
 0x27e   : > { %1847 = vmatprep.mubr.f32.mxu1 %v10418_v41 }
 0x281   : > { %5135 = vmatmul.mubr.msk.f32.gmra.mrb[12].mxu1 %vm1627_vm12, %v1622_v46 }
 0x282   : > { %1853 = vmatprep.mubr.f32.mxu1 %v10418_v41 }
 0x285   : > { %5136 = vmatmul.mubr.msk.f32.gmra.mrb[14].mxu1 %vm1627_vm12, %v1623_v28 }
 0x286   : > { %1859 = vmatprep.mubr.f32.mxu1 %v10418_v41 }
 0x289   : > { %5137 = vmatmul.mubr.msk.f32.gmra.mrb[16].mxu1 %vm1627_vm12, %v1624_v36 }
 0x28a   : > { %1865 = vmatprep.mubr.f32.mxu1 %v10418_v41 }
 0x28d   : > { %5138 = vmatmul.mubr.msk.f32.gmra.mrb[18].mxu1 %vm1627_vm12, %v1625_v44 }
 0x28e   : > { %1871 = vmatprep.mubr.f32.mxu1 %v10418_v41 }
 0x291   : > { %5139 = vmatmul.mubr.msk.f32.gmra.mrb[20].mxu1 %vm1627_vm12, %v1626_v58 }
 0x292   : > { %2568 = vmatprep.mubr.f32.mxu1 %v10418_v41 }
 0x331   : > { %v7524_v53 = vpop.f32.mrb[6].mxu0 }
 0x332   : > { %v7527_v20 = vmul.f32 100.0, %v7524_v53  ;;  %v7529_v32 = vpop.f32.mrb[7].mxu0 }
 0x333   : > { %v7532_v45 = vmul.f32 100.0, %v7529_v32 }
 0x334   : > { %v1942_v60 = vmul.f32 1.442695, %v7527_v20  ;;  %vm1910_vm15 = vcmp.gt.f32.partialorder %v7527_v20, 20.0 }
 0x335   : > { %v1944_v54 = vmul.f32 1.442695, %v7532_v45  ;;  %v7536_v14 = vpop.f32.mrb[8].mxu0  ;;  %vm1911_vm10 = vcmp.gt.f32.partialorder %v7532_v45, 20.0 }
 0x336   : > { %5578 = vpow2.f32 %v1942_v60  ;;  %v7539_v18 = vmul.f32 100.0, %v7536_v14  ;;  %v7541_v11 = vpop.f32.mrb[9].mxu0 }
 0x337   : > { %5580 = vpow2.f32 %v1944_v54  ;;  %v7544_v25 = vmul.f32 100.0, %v7541_v11 }
 0x338   : > { %v1950_v4 = vmul.f32 1.442695, %v7539_v18  ;;  %vm1914_vm7 = vcmp.gt.f32.partialorder %v7539_v18, 20.0 }
 0x339   : > { %v1952_v7 = vmul.f32 1.442695, %v7544_v25  ;;  %v7548_v15 = vpop.f32.mrb[10].mxu0  ;;  %vm1915_vm6 = vcmp.gt.f32.partialorder %v7544_v25, 20.0 }
 0x33a   : > { %5582 = vpow2.f32 %v1950_v4  ;;  %v7551_v43 = vmul.f32 100.0, %v7548_v15  ;;  %v7553_v19 = vpop.f32.mrb[11].mxu0 }
 0x33b   : > { %5584 = vpow2.f32 %v1952_v7  ;;  %v7556_v12 = vmul.f32 100.0, %v7553_v19 }
 0x33c   : > { %v1958_v31 = vmul.f32 1.442695, %v7551_v43  ;;  %vm1918_vm13 = vcmp.gt.f32.partialorder %v7551_v43, 20.0 }
 0x33d   : > { %v1960_v59 = vmul.f32 1.442695, %v7556_v12  ;;  %v7560_v0 = vpop.f32.mrb[12].mxu0 }
 0x33e   : > { %5586 = vpow2.f32 %v1958_v31  ;;  %v7563_v22 = vmul.f32 100.0, %v7560_v0  ;;  %v7565_v51 = vpop.f32.mrb[13].mxu0 }
 0x33f   : > { %5588 = vpow2.f32 %v1960_v59  ;;  %v7605_v27 = vmul.f32 100.0, %v7565_v51 }
 0x340   : > { %v5579_v55 = vpop.eup %5578  ;;  %v1966_v47 = vmul.f32 1.442695, %v7563_v22  ;;  %vm1922_vm1 = vcmp.gt.f32.partialorder %v7563_v22, 20.0 }
 0x341   : > { %v5581_v57 = vpop.eup %5580  ;;  %v2006_v16 = vadd.f32 1.0, %v5579_v55  ;;  %v7567_v52 = vpop.f32.mrb[14].mxu0  ;;  %v2009_v30 = vmul.f32 -0.5, %v5579_v55  ;;  %v2012_v35 = vand.u32 2147483647, %v5579_v55 }
 0x342   : > { %10422 = vst [vmem:[#allocation25_spill] sm:$0xff] %v7567_v52  ;;  %v2015_v21 = vadd.f32 1.0, %v5581_v57  ;;  %v7570_v17 = vpop.f32.mrb[15].mxu0  ;;  %v2018_v56 = vmul.f32 -0.5, %v5581_v57  ;;  %v2021_v46 = vand.u32 2147483647, %v5581_v57 }
 0x343   : > { %5590 = vlog2.f32 %v2006_v16  ;;  %v2010_v42 = vadd.f32 1.0, %v2009_v30  ;;  %vm7596_vm14 = vcmp.lt.f32.partialorder %v2012_v35, 0.0004427343  ;;  %v7682_v18 = vmul.f32 1.442695, %v7605_v27 }
 0x344   : > { %v7572_v61 = vpop.eup %5582  ;;  %5592 = vlog2.f32 %v2015_v21  ;;  %v2019_v44 = vadd.f32 1.0, %v2018_v56  ;;  %vm7610_vm4 = vcmp.lt.f32.partialorder %v2021_v46, 0.0004427343 }
 0x345   : > { %v7574_v26 = vpop.eup %5584  ;;  %v2042_v23 = vadd.f32 1.0, %v7572_v61  ;;  %v7577_v62 = vpop.f32.mrb[16].mxu0  ;;  %5594 = vpow2.f32 %v1966_v47  ;;  %v2045_v33 = vmul.f32 -0.5, %v7572_v61  ;;  %v2048_v4 = vand.u32 2147483647, %v7572_v61 }
 0x346   : > { %v2051_v29 = vadd.f32 1.0, %v7574_v26  ;;  %v7580_v3 = vpop.f32.mrb[17].mxu0  ;;  %v2054_v60 = vmul.f32 -0.5, %v7574_v26  ;;  %v2011_v16 = vmul.f32 %v5579_v55, %v2010_v42  ;;  %v2057_v47 = vand.u32 2147483647, %v7574_v26 }
 0x347   : > { %5596 = vlog2.f32 %v2042_v23  ;;  %v2046_v56 = vadd.f32 1.0, %v2045_v33  ;;  %vm7648_vm0 = vcmp.lt.f32.partialorder %v2048_v4, 0.0004427343 }
 0x348   : > { %v7582_v39 = vpop.eup %5586  ;;  %v7584_v34 = vpop.f32.mrb[6].mxu1  ;;  %5598 = vlog2.f32 %v2051_v29  ;;  %v2055_v38 = vadd.f32 1.0, %v2054_v60  ;;  %vm7658_vm2 = vcmp.lt.f32.partialorder %v2057_v47, 0.0004427343 }
 0x349   : > { %v7586_v37 = vpop.eup %5588  ;;  %v7589_v1 = vmul.f32 100.0, %v7584_v34  ;;  %v7591_v50 = vpop.f32.mrb[7].mxu1  ;;  %v2078_v28 = vadd.f32 1.0, %v7582_v39  ;;  %v2081_v2 = vmul.f32 -0.5, %v7582_v39 }
 0x34a   : > { %v7594_v24 = vpop.f32.mrb[18].mxu0  ;;  %v7601_v9 = vmul.f32 100.0, %v7591_v50  ;;  %v2087_v31 = vadd.f32 1.0, %v7586_v37 }
 0x34b   : > { %v7607_v36 = vpop.f32.mrb[19].mxu0  ;;  %v1946_v5 = vmul.f32 1.442695, %v7589_v1  ;;  %5600 = vlog2.f32 %v2078_v28  ;;  %v2020_v28 = vmul.f32 %v5581_v57, %v2019_v44 }
 0x34c   : > { %10425 = vst [vmem:[#allocation26_spill] sm:$0xff] %v7607_v36  ;;  %v1948_v54 = vmul.f32 1.442695, %v7601_v9  ;;  %v7617_v7 = vpop.f32.mrb[8].mxu1 }
 0x34d   : > { %v5591_v59 = vpop.eup %5590  ;;  %5602 = vpow2.f32 %v1946_v5  ;;  %v7621_v21 = vmul.f32 100.0, %v7617_v7  ;;  %v7624_v30 = vpop.f32.mrb[9].mxu1 }
 0x34e   : > { %v7626_v23 = vpop.f32.mrb[20].mxu0  ;;  %v5593_v35 = vpop.eup %5592  ;;  %v2008_v29 = vmul.f32 0.6931472, %v5591_v59  ;;  %5604 = vpow2.f32 %v1948_v54  ;;  %v7630_v46 = vmul.f32 100.0, %v7624_v30  ;;  %v7644_v59 = vmul.f32 100.0, %v7567_v52 }
 0x34f   : > { %10428 = vst [vmem:[#allocation14_spill] sm:$0xff] %v7626_v23  ;;  %v7632_v55 = vpop.f32.mrb[21].mxu0  ;;  %v2017_v42 = vmul.f32 0.6931472, %v5593_v35  ;;  %v1954_v5 = vmul.f32 1.442695, %v7621_v21  ;;  %v7636_v48 = vpop.eup %5594  ;;  %5606 = vlog2.f32 %v2087_v31  ;;  %v2047_v31 = vmul.f32 %v7572_v61, %v2046_v56 }
 0x350   : > { %10429 = vst [vmem:[#allocation23_spill] sm:$0xff] %v7632_v55  ;;  %v2014_v49 = vsel %vm7596_vm14, %v2011_v16, %v2008_v29  ;;  %v1956_v54 = vmul.f32 1.442695, %v7630_v46  ;;  %v7641_v33 = vpop.f32.mrb[10].mxu1  ;;  %v2120_v52 = vand.u32 2147483647, %v7636_v48 }
 0x351   : > { %v5597_v6 = vpop.eup %5596  ;;  %v2023_v57 = vsel %vm7610_vm4, %v2020_v28, %v2017_v42  ;;  %5608 = vpow2.f32 %v1954_v5  ;;  %v7653_v13 = vmul.f32 100.0, %v7641_v33  ;;  %v7655_v60 = vpop.f32.mrb[11].mxu1  ;;  %v2294_v58 = vmul.f32 0.01, %v2014_v49 }
 0x352   : > { %v5599_v16 = vpop.eup %5598  ;;  %v2044_v35 = vmul.f32 0.6931472, %v5597_v6  ;;  %5610 = vpow2.f32 %v1956_v54  ;;  %v2056_v42 = vmul.f32 %v7574_v26, %v2055_v38  ;;  %v2295_v5 = vmul.f32 0.01, %v2023_v57 }
 0x353   : > { %v2053_v4 = vmul.f32 0.6931472, %v5599_v16  ;;  %v1962_v28 = vmul.f32 1.442695, %v7653_v13  ;;  %v2114_v6 = vadd.f32 1.0, %v7636_v48  ;;  %v2326_v44 = vsel %vm1910_vm15, %v7524_v53, %v2294_v58 }
 0x354   : > { %v2050_v10 = vsel %vm7648_vm0, %v2047_v31, %v2044_v35  ;;  %v7668_v61 = vpop.f32.mrb[12].mxu1  ;;  %v2084_v54 = vand.u32 2147483647, %v7582_v39  ;;  %v7685_v16 = vmul.f32 1.442695, %v7644_v59  ;;  %v2327_v29 = vsel %vm1911_vm10, %v7529_v32, %v2295_v5 }
 0x355   : > { %v2298_v47 = vmul.f32 0.01, %v2050_v10  ;;  %v2059_v49 = vsel %vm7658_vm2, %v2056_v42, %v2053_v4  ;;  %5612 = vpow2.f32 %v1962_v28  ;;  %v7673_v38 = vpop.f32.mrb[13].mxu1  ;;  %v5601_v26 = vpop.eup %5600  ;;  %v2082_v42 = vadd.f32 1.0, %v2081_v2 }
 0x356   : > { %v2299_v56 = vmul.f32 0.01, %v2059_v49  ;;  %5614 = vlog2.f32 %v2114_v6  ;;  %v7696_v58 = vmul.f32 100.0, %v7655_v60  ;;  %vm7700_vm11 = vcmp.lt.f32.partialorder %v2084_v54, 0.0004427343 }
 0x357   : > { %v5603_v57 = vpop.eup %5602  ;;  %v2330_v10 = vsel %vm1914_vm7, %v7536_v14, %v2298_v47  ;;  %v2080_v5 = vmul.f32 0.6931472, %v5601_v26  ;;  %vm1912_vm14 = vcmp.gt.f32.partialorder %v7589_v1, 20.0  ;;  %vm1916_vm4 = vcmp.gt.f32.partialorder %v7621_v21, 20.0 }
 0x358   : > { %v5605_v35 = vpop.eup %5604  ;;  %v2024_v31 = vadd.f32 1.0, %v5603_v57  ;;  %v5244_v4 = vpack.c.bf16 %v2330_v10, %v2326_v44  ;;  %v7690_v28 = vpop.f32.mrb[14].mxu1  ;;  %v2027_v20 = vmul.f32 -0.5, %v5603_v57  ;;  %v2331_v14 = vsel %vm1915_vm6, %v7541_v11, %v2299_v56 }
 0x359   : > { %v2033_v53 = vadd.f32 1.0, %v5605_v35  ;;  %v7698_v6 = vpop.f32.mrb[15].mxu1  ;;  %v5607_v47 = vpop.eup %5606  ;;  %v2036_v49 = vmul.f32 -0.5, %v5605_v35  ;;  %v5242_v45 = vpack.c.bf16 %v2331_v14, %v2327_v29  ;;  %v2090_v44 = vmul.f32 -0.5, %v7586_v37 }
 0x35a   : > { %5616 = vlog2.f32 %v2024_v31  ;;  %v2117_v11 = vmul.f32 -0.5, %v7636_v48  ;;  %v2030_v56 = vand.u32 2147483647, %v5603_v57  ;;  %v2039_v10 = vand.u32 2147483647, %v5605_v35 }
 0x35b   : > { %v5609_v2 = vpop.eup %5608  ;;  %5618 = vlog2.f32 %v2033_v53  ;;  %v2083_v31 = vmul.f32 %v7582_v39, %v2082_v42  ;;  %5243 = vmatprep.subr.bf16.mxu0 %v5242_v45  ;;  %v2028_v54 = vadd.f32 1.0, %v2027_v20  ;;  %v1964_v26 = vmul.f32 1.442695, %v7696_v58 }
 0x35c   : > { %v7706_v25 = vpop.eup %5610  ;;  %v2060_v40 = vadd.f32 1.0, %v5609_v2  ;;  %v7709_v41 = vpop.f32.mrb[16].mxu1  ;;  %v2063_v29 = vmul.f32 -0.5, %v5609_v2  ;;  %5245 = vmatpush1.bf16.msra.mxu0 %v5244_v4  ;;  %v2037_v63 = vadd.f32 1.0, %v2036_v49  ;;  %v2066_v8 = vand.u32 2147483647, %v5609_v2 }
 0x35d   : > { %v2069_v14 = vadd.f32 1.0, %v7706_v25  ;;  %v7713_v53 = vpop.f32.mrb[17].mxu1  ;;  %v7719_v42 = vmul.f32 0.6931472, %v5607_v47  ;;  %v7721_v20 = vadd.f32 1.0, %v2090_v44  ;;  %v2118_v45 = vadd.f32 1.0, %v2117_v11 }
 0x35e   : > { %5620 = vlog2.f32 %v2060_v40  ;;  %vm7723_vm8 = vcmp.lt.f32.partialorder %v2030_v56, 0.0004427343  ;;  %vm7727_vm9 = vcmp.lt.f32.partialorder %v2039_v10, 0.0004427343  ;;  %v2086_v4 = vsel %vm7700_vm11, %v2083_v31, %v2080_v5 }
 0x35f   : > { %v7717_v39 = vpop.eup %5612  ;;  %5622 = vlog2.f32 %v2069_v14  ;;  %v2029_v44 = vmul.f32 %v5603_v57, %v2028_v54  ;;  %v2064_v11 = vadd.f32 1.0, %v2063_v29  ;;  %v2072_v56 = vmul.f32 -0.5, %v7706_v25 }
 0x360   : > { %v5615_v23 = vpop.eup %5614  ;;  %v2096_v49 = vadd.f32 1.0, %v7717_v39  ;;  %v7735_v47 = vpop.f32.mrb[18].mxu1  ;;  %5624 = vpow2.f32 %v1964_v26  ;;  %v2038_v10 = vmul.f32 %v5605_v35, %v2037_v63  ;;  %vm7740_vm3 = vcmp.lt.f32.partialorder %v2066_v8, 0.0004427343 }
 0x361   : > { %v7738_v14 = vpop.f32.mrb[19].mxu1  ;;  %v2075_v32 = vand.u32 2147483647, %v7706_v25  ;;  %v2116_v5 = vmul.f32 0.6931472, %v5615_v23  ;;  %v7747_v57 = vmul.f32 100.0, %v7668_v61  ;;  %v2119_v29 = vmul.f32 %v7636_v48, %v2118_v45 }
 0x362   : > { %10440 = vst [vmem:[#allocation19_spill] sm:$0xff] %v7738_v14  ;;  %v2302_v31 = vmul.f32 0.01, %v2086_v4  ;;  %5626 = vlog2.f32 %v2096_v49  ;;  %v7752_v8 = vmul.f32 100.0, %v7673_v38  ;;  %v7755_v63 = vmul.f32 100.0, %v7690_v28 }
 0x363   : > { %5628 = vpow2.f32 %v7682_v18  ;;  %v2065_v4 = vmul.f32 %v5609_v2, %v2064_v11  ;;  %v2073_v49 = vadd.f32 1.0, %v2072_v56  ;;  %vm2121_vm15 = vcmp.lt.f32.partialorder %v2120_v52, 0.0004427343 }
 0x364   : > { %v5617_v54 = vpop.eup %5616  ;;  %v7757_v35 = vpop.f32.mrb[20].mxu1  ;;  %vm1913_vm10 = vcmp.gt.f32.partialorder %v7601_v9, 20.0  ;;  %v2122_v45 = vsel %vm2121_vm15, %v2119_v29, %v2116_v5  ;;  %v1970_v14 = vmul.f32 1.442695, %v7747_v57  ;;  %5630 = vpow2.f32 %v7685_v16 }
 0x365   : > { %10443 = vst [vmem:[#allocation22_spill] sm:$0xff] %v7757_v35  ;;  %v5619_v23 = vpop.eup %5618  ;;  %v2026_v26 = vmul.f32 0.6931472, %v5617_v54  ;;  %v7761_v48 = vpop.f32.mrb[21].mxu1  ;;  %v7771_v54 = vsel %vm1918_vm13, %v7548_v15, %v2302_v31  ;;  %v2306_v2 = vmul.f32 0.01, %v2122_v45 }
 0x366   : > { %v2035_v18 = vmul.f32 0.6931472, %v5619_v23  ;;  %v1972_v52 = vmul.f32 1.442695, %v7752_v8  ;;  %v2099_v5 = vmul.f32 -0.5, %v7717_v39  ;;  %5632 = vpow2.f32 %v1970_v14 }
 0x367   : > { %v2032_v35 = vsel %vm7723_vm8, %v2029_v44, %v2026_v26  ;;  %v1978_v16 = vmul.f32 1.442695, %v7755_v63  ;;  %v2074_v44 = vmul.f32 %v7706_v25, %v2073_v49  ;;  %v7782_v15 = vsel %vm1922_vm1, %v7560_v0, %v2306_v2 }
 0x368   : > { %v5621_v11 = vpop.eup %5620  ;;  %v2041_v56 = vsel %vm7727_vm9, %v2038_v10, %v2035_v18  ;;  %5634 = vpow2.f32 %v1972_v52  ;;  %v2296_v43 = vmul.f32 0.01, %v2032_v35  ;;  %v5248_v40 = vpack.c.bf16 %v7782_v15, %v7771_v54 }
 0x369   : > { %v5623_v29 = vpop.eup %5622  ;;  %v2062_v36 = vmul.f32 0.6931472, %v5621_v11  ;;  %5636 = vpow2.f32 %v1978_v16  ;;  %v2297_v14 = vmul.f32 0.01, %v2041_v56  ;;  %vm2076_vm0 = vcmp.lt.f32.partialorder %v2075_v32, 0.0004427343 }
 0x36a   : > { %v2071_v31 = vmul.f32 0.6931472, %v5623_v29  ;;  %v5625_v10 = vpop.eup %5624  ;;  %v2092_v25 = vmul.f32 %v7586_v37, %v7721_v20  ;;  %v10444_v0 = vand.u32 2147483647, %v7586_v37  ;;  %vm1917_vm7 = vcmp.gt.f32.partialorder %v7630_v46, 20.0 }
 0x36b   : > { %v2068_v23 = vsel %vm7740_vm3, %v2065_v4, %v2062_v36  ;;  %v2105_v49 = vadd.f32 1.0, %v5625_v10  ;;  %v2102_v55 = vand.u32 2147483647, %v7717_v39  ;;  %v2328_v37 = vsel %vm1912_vm14, %v7584_v34, %v2296_v43 }
 0x36c   : > { %v2300_v26 = vmul.f32 0.01, %v2068_v23  ;;  %v2077_v22 = vsel %vm2076_vm0, %v2074_v44, %v2071_v31  ;;  %vm7792_vm2 = vcmp.lt.f32.partialorder %v10444_v0, 0.0004427343  ;;  %v5627_v18 = vpop.eup %5626  ;;  %v2100_v2 = vadd.f32 1.0, %v2099_v5 }
 0x36d   : > { %v2301_v45 = vmul.f32 0.01, %v2077_v22  ;;  %v2095_v32 = vsel %vm7792_vm2, %v2092_v25, %v7719_v42  ;;  %v7801_v20 = vpop.eup %5628  ;;  %5638 = vlog2.f32 %v2105_v49  ;;  %v2329_v46 = vsel %vm1913_vm10, %v7591_v50, %v2297_v14 }
 0x36e   : > { %v2332_v4 = vsel %vm1916_vm4, %v7617_v7, %v2300_v26  ;;  %v2108_v42 = vmul.f32 -0.5, %v5625_v10  ;;  %v7813_v56 = vpop.eup %5630  ;;  %v2098_v29 = vmul.f32 0.6931472, %v5627_v18  ;;  %v2123_v34 = vadd.f32 1.0, %v7801_v20 }
 0x36f   : > { %v5260_v52 = vpack.c.bf16 %v2332_v4, %v2328_v37  ;;  %v2333_v11 = vsel %vm1917_vm7, %v7624_v30, %v2301_v45  ;;  %v2303_v1 = vmul.f32 0.01, %v2095_v32  ;;  %v2101_v7 = vmul.f32 %v7717_v39, %v2100_v2 }
 0x370   : > { %v5258_v16 = vpack.c.bf16 %v2333_v11, %v2329_v46  ;;  %v7816_v36 = vpop.eup %5632  ;;  %v2111_v21 = vand.u32 2147483647, %v5625_v10  ;;  %5640 = vlog2.f32 %v2123_v34  ;;  %v7820_v9 = vmul.f32 100.0, %v7570_v17 }
 0x371   : > { %vm7824_vm6 = vcmp.lt.f32.partialorder %v2102_v55, 0.0004427343  ;;  %v2109_v5 = vadd.f32 1.0, %v2108_v42  ;;  %v2132_v44 = vadd.f32 1.0, %v7816_v36  ;;  %v2150_v43 = vadd.f32 1.0, %v7813_v56 }
 0x372   : > { %5259 = vmatprep.subr.bf16.mxu1 %v5258_v16  ;;  %v7822_v50 = vpop.eup %5634  ;;  %v2104_v39 = vsel %vm7824_vm6, %v2101_v7, %v2098_v29  ;;  %vm1919_vm11 = vcmp.gt.f32.partialorder %v7556_v12, 20.0  ;;  %v2126_v14 = vmul.f32 -0.5, %v7801_v20  ;;  %v7841_v26 = vmul.f32 100.0, %v7698_v6 }
 0x373   : > { %5261 = vmatpush1.bf16.msra.mxu1 %v5260_v52  ;;  %v7830_v31 = vpop.eup %5636  ;;  %v2141_v23 = vadd.f32 1.0, %v7822_v50  ;;  %v7838_v25 = vsel %vm1919_vm11, %v7553_v19, %v2303_v1  ;;  %5642 = vlog2.f32 %v2132_v44  ;;  %vm7843_vm13 = vcmp.lt.f32.partialorder %v2111_v21, 0.0004427343 }
 0x374   : > { %v2135_v0 = vmul.f32 -0.5, %v7816_v36  ;;  %v2129_v35 = vand.u32 2147483647, %v7801_v20  ;;  %v1976_v12 = vmul.f32 1.442695, %v7820_v9  ;;  %v2110_v18 = vmul.f32 %v5625_v10, %v2109_v5 }
 0x375   : > { %5644 = vlog2.f32 %v2141_v23  ;;  %v7850_v49 = vmul.f32 0.01, %v2104_v39  ;;  %v2168_v19 = vadd.f32 1.0, %v7830_v31  ;;  %v2138_v55 = vand.u32 2147483647, %v7816_v36 }
 0x376   : > { %5646 = vlog2.f32 %v2150_v43  ;;  %v2127_v32 = vadd.f32 1.0, %v2126_v14  ;;  %v2147_v37 = vand.u32 2147483647, %v7822_v50  ;;  %v2153_v4 = vmul.f32 -0.5, %v7813_v56 }
 0x377   : > { %v5639_v45 = vpop.eup %5638  ;;  %vm1923_vm8 = vcmp.gt.f32.partialorder %v7605_v27, 20.0  ;;  %v2144_v2 = vmul.f32 -0.5, %v7822_v50  ;;  %v2156_v46 = vand.u32 2147483647, %v7813_v56  ;;  %5648 = vlog2.f32 %v2168_v19 }
 0x378   : > { %v1980_v10 = vmul.f32 1.442695, %v7841_v26  ;;  %v2136_v52 = vadd.f32 1.0, %v2135_v0  ;;  %vm7860_vm9 = vcmp.lt.f32.partialorder %v2129_v35, 0.0004427343  ;;  %5650 = vpow2.f32 %v1976_v12 }
 0x379   : > { %v7865_v42 = vmul.f32 100.0, %v7577_v62  ;;  %vm1920_vm1 = vcmp.gt.f32.partialorder %v7653_v13, 20.0  ;;  %v2107_v16 = vmul.f32 0.6931472, %v5639_v45  ;;  %v7869_v29 = vmul.f32 100.0, %v7709_v41 }
 0x37a   : > { %5652 = vpow2.f32 %v1980_v10  ;;  %v7872_v34 = vmul.f32 100.0, %v7580_v3  ;;  %v5641_v1 = vpop.eup %5640  ;;  %vm1924_vm3 = vcmp.gt.f32.partialorder %v7747_v57, 20.0  ;;  %vm7875_vm14 = vcmp.lt.f32.partialorder %v2138_v55, 0.0004427343 }
 0x37b   : > { %v2128_v21 = vmul.f32 %v7801_v20, %v2127_v32  ;;  %vm7880_vm4 = vcmp.lt.f32.partialorder %v2147_v37, 0.0004427343  ;;  %v1982_v5 = vmul.f32 1.442695, %v7865_v42  ;;  %vm1921_vm15 = vcmp.gt.f32.partialorder %v7696_v58, 20.0 }
 0x37c   : > { %v2125_v44 = vmul.f32 0.6931472, %v5641_v1  ;;  %vm1925_vm10 = vcmp.gt.f32.partialorder %v7752_v8, 20.0  ;;  %v2145_v43 = vadd.f32 1.0, %v2144_v2  ;;  %v2171_v39 = vmul.f32 -0.5, %v7830_v31 }
 0x37d   : > { %v1986_v14 = vmul.f32 1.442695, %v7869_v29  ;;  %v2154_v23 = vadd.f32 1.0, %v2153_v4  ;;  %5654 = vpow2.f32 %v1982_v5  ;;  %v1984_v20 = vmul.f32 1.442695, %v7872_v34  ;;  %v5643_v35 = vpop.eup %5642 }
 0x37e   : > { %v7891_v0 = vmul.f32 100.0, %v7713_v53  ;;  %v2113_v12 = vsel %vm7843_vm13, %v2110_v18, %v2107_v16  ;;  %v2131_v19 = vsel %vm7860_vm9, %v2128_v21, %v2125_v44  ;;  %v7898_v45 = vmul.f32 100.0, %v7594_v24 }
 0x37f   : > { %5656 = vpow2.f32 %v1986_v14  ;;  %v5645_v55 = vpop.eup %5644  ;;  %v2134_v32 = vmul.f32 0.6931472, %v5643_v35  ;;  %v2137_v37 = vmul.f32 %v7816_v36, %v2136_v52  ;;  %v2307_v4 = vmul.f32 0.01, %v2131_v19 }
 0x380   : > { %5658 = vpow2.f32 %v1984_v20  ;;  %v5647_v2 = vpop.eup %5646  ;;  %v2143_v10 = vmul.f32 0.6931472, %v5645_v55  ;;  %v2146_v1 = vmul.f32 %v7822_v50, %v2145_v43  ;;  %v2172_v5 = vadd.f32 1.0, %v2171_v39 }
 0x381   : > { %v1988_v22 = vmul.f32 1.442695, %v7891_v0  ;;  %v2305_v18 = vmul.f32 0.01, %v2113_v12  ;;  %v2140_v11 = vsel %vm7875_vm14, %v2137_v37, %v2134_v32  ;;  %v2339_v16 = vsel %vm1923_vm8, %v7565_v51, %v2307_v4  ;;  %v5649_v36 = vpop.eup %5648 }
 0x382   : > { %v1990_v21 = vmul.f32 1.442695, %v7898_v45  ;;  %v2308_v52 = vmul.f32 0.01, %v2140_v11  ;;  %v5246_v44 = vpack.c.bf16 %v2339_v16, %v7838_v25  ;;  %v2149_v50 = vsel %vm7880_vm4, %v2146_v1, %v2143_v10  ;;  %v5651_v43 = vpop.eup %5650 }
 0x383   : > { %5660 = vpow2.f32 %v1988_v22  ;;  %v2336_v7 = vsel %vm1920_vm1, %v7641_v33, %v7850_v49  ;;  %v2309_v39 = vmul.f32 0.01, %v2149_v50  ;;  %v2152_v14 = vmul.f32 0.6931472, %v5647_v2 }
 0x384   : > { %v2174_v51 = vand.u32 2147483647, %v7830_v31  ;;  %v5653_v27 = vpop.eup %5652  ;;  %v2340_v20 = vsel %vm1924_vm3, %v7668_v61, %v2308_v52  ;;  %v2155_v25 = vmul.f32 %v7813_v56, %v2154_v23  ;;  %v2170_v30 = vmul.f32 0.6931472, %v5649_v36  ;;  %5247 = vmatprep.subr.bf16.mxu0 %v5246_v44  ;;  %v10461_v36 = vld [vmem:[#allocation25_spill] sm:$0xff] }
 0x385   : > { %v2159_v35 = vadd.f32 1.0, %v5651_v43  ;;  %v2337_v12 = vsel %vm1921_vm15, %v7655_v60, %v2305_v18  ;;  %v5264_v13 = vpack.c.bf16 %v2340_v20, %v2336_v7  ;;  %v2341_v33 = vsel %vm1925_vm10, %v7673_v38, %v2309_v39  ;;  %5249 = vmatpush1.bf16.msra.mxu0 %v5248_v40 }
 0x386   : > { %5662 = vpow2.f32 %v1990_v21  ;;  %v5262_v61 = vpack.c.bf16 %v2341_v33, %v2337_v12  ;;  %vm7932_vm0 = vcmp.lt.f32.partialorder %v2156_v46, 0.0004427343  ;;  %v2173_v58 = vmul.f32 %v7830_v31, %v2172_v5 }
 0x387   : > { %5664 = vlog2.f32 %v2159_v35  ;;  %v5655_v60 = vpop.eup %5654  ;;  %v2158_v8 = vsel %vm7932_vm0, %v2155_v25, %v2152_v14  ;;  %vm7939_vm2 = vcmp.lt.f32.partialorder %v2174_v51, 0.0004427343  ;;  %v2162_v54 = vmul.f32 -0.5, %v5651_v43  ;;  %v10478_v25 = vld [vmem:[#allocation23_spill] sm:$0xff] }
 0x388   : > { %v2177_v15 = vadd.f32 1.0, %v5653_v27  ;;  %v2176_v56 = vsel %vm7939_vm2, %v2173_v58, %v2170_v30  ;;  %v2186_v49 = vadd.f32 1.0, %v5655_v60  ;;  %5263 = vmatprep.subr.bf16.mxu1 %v5262_v61  ;;  %vm1926_vm7 = vcmp.gt.f32.partialorder %v7644_v59, 20.0  ;;  %v10468_v58 = vld [vmem:[#allocation26_spill] sm:$0xff] }
 0x389   : > { %v5657_v40 = vpop.eup %5656  ;;  %vm1928_vm6 = vcmp.gt.f32.partialorder %v7755_v63, 20.0  ;;  %v2180_v31 = vmul.f32 -0.5, %v5653_v27  ;;  %5265 = vmatpush1.bf16.msra.mxu1 %v5264_v13  ;;  %v2310_v23 = vmul.f32 0.01, %v2158_v8  ;;  %v2165_v19 = vand.u32 2147483647, %v5651_v43 }
 0x38a   : > { %v5659_v46 = vpop.eup %5658  ;;  %5666 = vlog2.f32 %v2177_v15  ;;  %v2204_v55 = vadd.f32 1.0, %v5657_v40  ;;  %v2312_v32 = vmul.f32 0.01, %v2176_v56  ;;  %v2163_v37 = vadd.f32 1.0, %v2162_v54 }
 0x38b   : > { %5668 = vlog2.f32 %v2186_v49  ;;  %v2183_v4 = vand.u32 2147483647, %v5653_v27  ;;  %v2189_v2 = vmul.f32 -0.5, %v5655_v60  ;;  %v2192_v1 = vand.u32 2147483647, %v5655_v60 }
 0x38c   : > { %5670 = vlog2.f32 %v2204_v55  ;;  %v2207_v5 = vmul.f32 -0.5, %v5657_v40  ;;  %v2195_v22 = vadd.f32 1.0, %v5659_v46  ;;  %v2181_v18 = vadd.f32 1.0, %v2180_v31 }
 0x38d   : > { %v5661_v10 = vpop.eup %5660  ;;  %v2198_v11 = vmul.f32 -0.5, %v5659_v46  ;;  %v7948_v21 = vmul.f32 100.0, %v7735_v47  ;;  %v7953_v52 = vsel %vm1926_vm7, %v10461_v36, %v2310_v23  ;;  %vm7955_vm11 = vcmp.lt.f32.partialorder %v2165_v19, 0.0004427343  ;;  %v10472_v19 = vld [vmem:[#allocation19_spill] sm:$0xff] }
 0x38e   : > { %v2213_v16 = vadd.f32 1.0, %v5661_v10  ;;  %5672 = vlog2.f32 %v2195_v22  ;;  %v2216_v50 = vmul.f32 -0.5, %v5661_v10  ;;  %v7964_v39 = vsel %vm1928_vm6, %v7690_v28, %v2312_v32 }
 0x38f   : > { %vm7966_vm13 = vcmp.lt.f32.partialorder %v2183_v4, 0.0004427343  ;;  %v2190_v59 = vadd.f32 1.0, %v2189_v2  ;;  %v2164_v20 = vmul.f32 %v5651_v43, %v2163_v37  ;;  %vm7970_vm8 = vcmp.lt.f32.partialorder %v2192_v1, 0.0004427343 }
 0x390   : > { %v7959_v7 = vpop.eup %5662  ;;  %5674 = vlog2.f32 %v2213_v16  ;;  %v2208_v30 = vadd.f32 1.0, %v2207_v5  ;;  %v2210_v35 = vand.u32 2147483647, %v5657_v40  ;;  %v2182_v12 = vmul.f32 %v5653_v27, %v2181_v18  ;;  %v10469_v27 = vld [vmem:[#allocation14_spill] sm:$0xff] }
 0x391   : > { %v5665_v51 = vpop.eup %5664  ;;  %vm1930_vm9 = vcmp.gt.f32.partialorder %v7865_v42, 20.0  ;;  %v2199_v63 = vadd.f32 1.0, %v2198_v11  ;;  %v2201_v28 = vand.u32 2147483647, %v5659_v46  ;;  %v1994_v13 = vmul.f32 1.442695, %v7948_v21 }
 0x392   : > { %v2217_v33 = vadd.f32 1.0, %v2216_v50  ;;  %v2219_v61 = vand.u32 2147483647, %v5661_v10  ;;  %v2222_v57 = vadd.f32 1.0, %v7959_v7  ;;  %v7978_v8 = vmul.f32 100.0, %v10468_v58  ;;  %v10477_v50 = vld [vmem:[#allocation22_spill] sm:$0xff] }
 0x393   : > { %v2161_v38 = vmul.f32 0.6931472, %v5665_v51  ;;  %v2191_v54 = vmul.f32 %v5655_v60, %v2190_v59  ;;  %vm1932_vm1 = vcmp.gt.f32.partialorder %v7869_v29, 20.0  ;;  %5676 = vpow2.f32 %v1994_v13 }
 0x394   : > { %v5667_v43 = vpop.eup %5666  ;;  %v7982_v15 = vmul.f32 100.0, %v10469_v27  ;;  %v2209_v31 = vmul.f32 %v5657_v40, %v2208_v30  ;;  %vm7984_vm3 = vcmp.lt.f32.partialorder %v2210_v35, 0.0004427343  ;;  %v7989_v55 = vmul.f32 100.0, %v10472_v19 }
 0x395   : > { %v5669_v56 = vpop.eup %5668  ;;  %v2179_v49 = vmul.f32 0.6931472, %v5667_v43  ;;  %vm1927_vm14 = vcmp.gt.f32.partialorder %v7820_v9, 20.0  ;;  %vm1931_vm4 = vcmp.gt.f32.partialorder %v7872_v34, 20.0  ;;  %v2200_v60 = vmul.f32 %v5659_v46, %v2199_v63 }
 0x396   : > { %v2188_v32 = vmul.f32 0.6931472, %v5669_v56  ;;  %vm7993_vm15 = vcmp.lt.f32.partialorder %v2201_v28, 0.0004427343  ;;  %v1992_v4 = vmul.f32 1.442695, %v7978_v8  ;;  %v5671_v40 = vpop.eup %5670  ;;  %v2218_v2 = vmul.f32 %v5661_v10, %v2217_v33 }
 0x397   : > { %vm1929_vm10 = vcmp.gt.f32.partialorder %v7841_v26, 20.0  ;;  %vm7999_vm0 = vcmp.lt.f32.partialorder %v2219_v61, 0.0004427343  ;;  %5678 = vlog2.f32 %v2222_v57  ;;  %v1998_v5 = vmul.f32 1.442695, %v7982_v15 }
 0x398   : > { %v2167_v46 = vsel %vm7955_vm11, %v2164_v20, %v2161_v38  ;;  %v2194_v22 = vsel %vm7970_vm8, %v2191_v54, %v2188_v32  ;;  %v2206_v18 = vmul.f32 0.6931472, %v5671_v40  ;;  %5680 = vpow2.f32 %v1992_v4  ;;  %v5673_v11 = vpop.eup %5672  ;;  %v2363_v4 = vld [vmem:[#allocation5 + $0x168] sm:$0xff]  ;;  %v2365_v40 = vld [vmem:[#allocation5 + $0x178] sm:$0xff] }
 0x399   : > { %v2185_v16 = vsel %vm7966_vm13, %v2182_v12, %v2179_v49  ;;  %v2314_v10 = vmul.f32 0.01, %v2194_v22  ;;  %v1996_v36 = vmul.f32 1.442695, %v7989_v55  ;;  %v8012_v59 = vmul.f32 100.0, %v10477_v50 }
 0x39a   : > { %v5675_v51 = vpop.eup %5674  ;;  %v2212_v44 = vsel %vm7984_vm3, %v2209_v31, %v2206_v18  ;;  %v2197_v20 = vmul.f32 0.6931472, %v5673_v11  ;;  %5682 = vpow2.f32 %v1998_v5  ;;  %v8017_v30 = vmul.f32 100.0, %v10478_v25 }
 0x39b   : > { %v2311_v35 = vmul.f32 0.01, %v2167_v46  ;;  %v2346_v14 = vsel %vm1930_vm9, %v7577_v62, %v2314_v10  ;;  %v2316_v12 = vmul.f32 0.01, %v2212_v44  ;;  %v2215_v63 = vmul.f32 0.6931472, %v5675_v51 }
 0x39c   : > { %v2313_v28 = vmul.f32 0.01, %v2185_v16  ;;  %v5252_v13 = vpack.c.bf16 %v2346_v14, %v7953_v52  ;;  %v2203_v33 = vsel %vm7993_vm15, %v2200_v60, %v2197_v20  ;;  %v2002_v61 = vmul.f32 1.442695, %v8012_v59  ;;  %v2366_v51 = vld [vmem:[#allocation5 + $0x180] sm:$0xff]  ;;  %v3920_v10 = vld [vmem:[#allocation5 + $0x1a8] sm:$0xff] }
 0x39d   : > { %v2348_v57 = vsel %vm1932_vm1, %v7709_v41, %v2316_v12  ;;  %v2315_v43 = vmul.f32 0.01, %v2203_v33  ;;  %v2221_v38 = vsel %vm7999_vm0, %v2218_v2, %v2215_v63  ;;  %5684 = vpow2.f32 %v1996_v36  ;;  %v8031_v62 = vpop.eup %5676  ;;  %v2364_v36 = vld [vmem:[#allocation5 + $0x170] sm:$0xff] }
 0x39e   : > { %v5268_v42 = vpack.c.bf16 %v2348_v57, %v7964_v39  ;;  %v2317_v54 = vmul.f32 0.01, %v2221_v38  ;;  %5686 = vpow2.f32 %v2002_v61  ;;  %v2000_v52 = vmul.f32 1.442695, %v8017_v30  ;;  %v3917_v33 = vld [vmem:[#allocation5 + $0x190] sm:$0xff] }
 0x39f   : > { %v2343_v56 = vsel %vm1927_vm14, %v7570_v17, %v2311_v35  ;;  %v2347_v41 = vsel %vm1931_vm4, %v7580_v3, %v2315_v43  ;;  %vm1933_vm2 = vcmp.gt.f32.partialorder %v7891_v0, 20.0  ;;  %v2240_v29 = vadd.f32 1.0, %v8031_v62 }
 0x3a0   : > { %v2345_v39 = vsel %vm1929_vm10, %v7698_v6, %v2313_v28  ;;  %v5250_v49 = vpack.c.bf16 %v2347_v41, %v2343_v56  ;;  %v2349_v31 = vsel %vm1933_vm2, %v7713_v53, %v2317_v54  ;;  %v2225_v17 = vmul.f32 -0.5, %v7959_v7 }
 0x3a1   : > { %v5679_v23 = vpop.eup %5678  ;;  %v5266_v32 = vpack.c.bf16 %v2349_v31, %v2345_v39  ;;  %5688 = vpow2.f32 %v2000_v52  ;;  %v8052_v9 = vmul.f32 100.0, %v7761_v48  ;;  %v2228_v0 = vand.u32 2147483647, %v7959_v7 }
 0x3a2   : > { %v8047_v60 = vpop.eup %5680  ;;  %5251 = vmatprep.subr.bf16.mxu0 %v5250_v49  ;;  %5690 = vlog2.f32 %v2240_v29  ;;  %v2226_v26 = vadd.f32 1.0, %v2225_v17  ;;  %v2224_v1 = vmul.f32 0.6931472, %v5679_v23  ;;  %v2243_v5 = vmul.f32 -0.5, %v8031_v62 }
 0x3a3   : > { %v2231_v3 = vadd.f32 1.0, %v8047_v60  ;;  %5267 = vmatprep.subr.bf16.mxu1 %v5266_v32  ;;  %5253 = vmatpush1.bf16.msra.mxu0 %v5252_v13  ;;  %v2004_v37 = vmul.f32 1.442695, %v8052_v9  ;;  %v6186_v22 = vmov 0   ;;  %vm8068_vm7 = vcmp.lt.f32.partialorder %v2228_v0, 0.0004427343 }
 0x3a4   : > { %v8054_v6 = vpop.eup %5682  ;;  %5269 = vmatpush1.bf16.msra.mxu1 %v5268_v42  ;;  %5526 = vset.pattern.permute.xlu0 %v6186_v22  ;;  %v2227_v18 = vmul.f32 %v7959_v7, %v2226_v26  ;;  %v2244_v35 = vadd.f32 1.0, %v2243_v5  ;;  %v2234_v14 = vmul.f32 -0.5, %v8047_v60  ;;  %v2367_v13 = vld [vmem:[#allocation5 + $0x188] sm:$0x1f]  ;;  %v2246_v57 = vand.u32 2147483647, %v8031_v62 }
 0x3a5   : > { %v2258_v53 = vadd.f32 1.0, %v8054_v6  ;;  %5692 = vlog2.f32 %v2231_v3  ;;  %5527 = vset.pattern.permute.xlu1 %v6186_v22  ;;  %v2261_v16 = vmul.f32 -0.5, %v8054_v6  ;;  %2370 = vperm.xlu0 %5526, %v2363_v4   ;;  %v2264_v43 = vand.u32 2147483647, %v8054_v6  ;;  %v3918_v32 = vld [vmem:[#allocation5 + $0x198] sm:$0xff]  ;;  %v10494_v4 = vld [vmem:[#allocation13_spill] sm:$0xff] }
 0x3a6   : > { %2380 = vperm.xlu1 %5527, %v2365_v40   ;;  %v2230_v20 = vsel %vm8068_vm7, %v2227_v18, %v2224_v1  ;;  %vm1934_vm6 = vcmp.gt.f32.partialorder %v7898_v45, 20.0  ;;  %v2245_v52 = vmul.f32 %v8031_v62, %v2244_v35  ;;  %v2235_v56 = vadd.f32 1.0, %v2234_v14  ;;  %v3919_v62 = vld [vmem:[#allocation5 + $0x1a0] sm:$0xff] }
 0x3a7   : > { %v8057_v34 = vpop.eup %5684  ;;  %5694 = vlog2.f32 %v2258_v53  ;;  %v2262_v63 = vadd.f32 1.0, %v2261_v16  ;;  %v2318_v61 = vmul.f32 0.01, %v2230_v20  ;;  %v2237_v41 = vand.u32 2147483647, %v8047_v60  ;;  %v2907_v22 = vld [vmem:[#allocation5 + $0xc0] sm:$0xff] }
 0x3a8   : > { %v8061_v2 = vpop.eup %5686  ;;  %v2249_v11 = vadd.f32 1.0, %v8057_v34  ;;  %5696 = vpow2.f32 %v2004_v37  ;;  %vm8090_vm11 = vcmp.lt.f32.partialorder %v2246_v57, 0.0004427343  ;;  %vm1938_vm13 = vcmp.gt.f32.partialorder %v7982_v15, 20.0  ;;  %v3923_v57 = vld [vmem:[#allocation5 + $0x1c0] sm:$0xff] }
 0x3a9   : > { %v2276_v46 = vadd.f32 1.0, %v8061_v2  ;;  %v2279_v28 = vmul.f32 -0.5, %v8061_v2  ;;  %2375 = vperm.xlu0 %5526, %v2364_v36   ;;  %v2282_v29 = vand.u32 2147483647, %v8061_v2  ;;  %v2263_v49 = vmul.f32 %v8054_v6, %v2262_v63  ;;  %v3921_v36 = vld [vmem:[#allocation5 + $0x1b0] sm:$0xff] }
 0x3aa   : > { %2385 = vperm.xlu1 %5527, %v2366_v51   ;;  %v8088_v45 = vsel %vm1934_vm6, %v7594_v24, %v2318_v61  ;;  %vm2265_vm8 = vcmp.lt.f32.partialorder %v2264_v43, 0.0004427343  ;;  %v2252_v26 = vmul.f32 -0.5, %v8057_v34  ;;  %v2236_v24 = vmul.f32 %v8047_v60, %v2235_v56  ;;  %v3924_v56 = vld [vmem:[#allocation5 + $0x1c8] sm:$0xff] }
 0x3ab   : > { %5698 = vlog2.f32 %v2276_v46  ;;  %v8072_v44 = vpop.eup %5688  ;;  %v2280_v31 = vadd.f32 1.0, %v2279_v28  ;;  %vm8101_vm9 = vcmp.lt.f32.partialorder %v2237_v41, 0.0004427343  ;;  %vm8107_vm1 = vcmp.lt.f32.partialorder %v2282_v29, 0.0004427343 }
 0x3ac   : > { %v5691_v7 = vpop.eup %5690  ;;  %v2267_v12 = vadd.f32 1.0, %v8072_v44  ;;  %5700 = vlog2.f32 %v2249_v11  ;;  %v2270_v23 = vmul.f32 -0.5, %v8072_v44  ;;  %v2273_v16 = vand.u32 2147483647, %v8072_v44 }
 0x3ad   : > { %v2242_v42 = vmul.f32 0.6931472, %v5691_v7  ;;  %2390 = vperm.xlu0 %5526, %v2367_v13   ;;  %v2281_v46 = vmul.f32 %v8061_v2, %v2280_v31  ;;  %vm1936_vm3 = vcmp.gt.f32.partialorder %v7948_v21, 20.0  ;;  %v2255_v15 = vand.u32 2147483647, %v8057_v34  ;;  %v3922_v21 = vld [vmem:[#allocation5 + $0x1b8] sm:$0xff] }
 0x3ae   : > { %5702 = vlog2.f32 %v2267_v12  ;;  %3927 = vperm.xlu1 %5527, %v3917_v33   ;;  %v2271_v18 = vadd.f32 1.0, %v2270_v23  ;;  %vm1940_vm14 = vcmp.gt.f32.partialorder %v8012_v59, 20.0  ;;  %v2253_v14 = vadd.f32 1.0, %v2252_v26  ;;  %v10487_v23 = vld [vmem:[#allocation27_spill] sm:$0xff] }
 0x3af   : > { %v5693_v38 = vpop.eup %5692  ;;  %v2248_v6 = vsel %vm8090_vm11, %v2245_v52, %v2242_v42  ;;  %vm2274_vm4 = vcmp.lt.f32.partialorder %v2273_v16, 0.0004427343  ;;  %vm1935_vm15 = vcmp.gt.f32.partialorder %v7978_v8, 20.0  ;;  %vm1939_vm10 = vcmp.gt.f32.partialorder %v8017_v30, 20.0  ;;  %v2358_v30 = vld [vmem:[#allocation5 + $0x58] sm:$0xff]  ;;  %v2911_v16 = vld [vmem:[#allocation5 + $0xe0] sm:$0xff] }
 0x3b0   : > { %v2233_v53 = vmul.f32 0.6931472, %v5693_v38  ;;  %v2320_v11 = vmul.f32 0.01, %v2248_v6  ;;  %v2272_v63 = vmul.f32 %v8072_v44, %v2271_v18  ;;  %v2254_v44 = vmul.f32 %v8057_v34, %v2253_v14  ;;  %v2908_v18 = vld [vmem:[#allocation5 + $0xc8] sm:$0xff] }
 0x3b1   : > { %v5695_v54 = vpop.eup %5694  ;;  %3932 = vperm.xlu0 %5526, %v3918_v32   ;;  %vm2256_vm0 = vcmp.lt.f32.partialorder %v2255_v15, 0.0004427343  ;;  %vm2393_vm7 = vcmask 523264   ;;  %vm1937_vm6 = vcmp.gt.f32.partialorder %v7989_v55, 20.0  ;;  %vm1941_vm11 = vcmp.gt.f32.partialorder %v8052_v9, 20.0  ;;  %v4703_v55 = vld [vmem:[#allocation5 + $0x1e8] sm:$0xff] }
 0x3b2   : > { %v2260_v39 = vmul.f32 0.6931472, %v5695_v54  ;;  %v8095_v3 = vpop.eup %5696  ;;  %3937 = vperm.xlu1 %5527, %v3919_v62   ;;  %v2239_v2 = vsel %vm8101_vm9, %v2236_v24, %v2233_v53  ;;  %v2352_v13 = vsel %vm1936_vm3, %v7735_v47, %v2320_v11  ;;  %v10489_v6 = vmov 0.0   ;;  %v2359_v53 = vld [vmem:[#allocation5 + $0x60] sm:$0xff]  ;;  %v4704_v9 = vld [vmem:[#allocation5 + $0x1f0] sm:$0xff] }
 0x3b3   : > { %v2285_v1 = vadd.f32 1.0, %v8095_v3  ;;  %v2288_v28 = vmul.f32 -0.5, %v8095_v3  ;;  %v2319_v33 = vmul.f32 0.01, %v2239_v2  ;;  %v2291_v52 = vand.u32 2147483647, %v8095_v3 }
 0x3b4   : > { %v2266_v0 = vsel %vm2265_vm8, %v2263_v49, %v2260_v39  ;;  %v4700_v39 = vld [vmem:[#allocation5 + $0x1d0] sm:$0xff]  ;;  %v10493_v24 = vld [vmem:[#allocation24_spill] sm:$0xff] }
 0x3b5   : > { %v5699_v37 = vpop.eup %5698  ;;  %v2322_v40 = vmul.f32 0.01, %v2266_v0  ;;  %5704 = vlog2.f32 %v2285_v1  ;;  %3942 = vperm.xlu0 %5526, %v3920_v10   ;;  %v2289_v54 = vadd.f32 1.0, %v2288_v28  ;;  %v2351_v47 = vsel %vm1935_vm15, %v10468_v58, %v2319_v33  ;;  %v4701_v58 = vld [vmem:[#allocation5 + $0x1d8] sm:$0xff]  ;;  %v10490_v0 = vld [vmem:[#allocation16_spill] sm:$0xff]  ;;  %v10495_v1 = vld [vmem:[#allocation18_spill] sm:$0xff] }
 0x3b6   : > { %v2278_v5 = vmul.f32 0.6931472, %v5699_v37  ;;  %v5701_v51 = vpop.eup %5700  ;;  %3947 = vperm.xlu1 %5527, %v3921_v36   ;;  %vm2292_vm2 = vcmp.lt.f32.partialorder %v2291_v52, 0.0004427343  ;;  %v2909_v11 = vld [vmem:[#allocation5 + $0xd0] sm:$0xff]  ;;  %v2912_v10 = vld [vmem:[#allocation5 + $0xe8] sm:$0xff] }
 0x3b7   : > { %v2354_v60 = vsel %vm1938_vm13, %v10469_v27, %v2322_v40  ;;  %v2251_v43 = vmul.f32 0.6931472, %v5701_v51  ;;  %v2290_v34 = vmul.f32 %v8095_v3, %v2289_v54  ;;  %v10488_v3 = vld [vmem:[#allocation17_spill] sm:$0xff]  ;;  %v2361_v40 = vld [vmem:[#allocation5 + $0x70] sm:$0xff]  ;;  %v2914_v51 = vld [vmem:[#allocation5 + $0xf8] sm:$0xff] }
 0x3b8   : > { %v5256_v20 = vpack.c.bf16 %v2354_v60, %v8088_v45  ;;  %v2284_v7 = vsel %vm8107_vm1, %v2281_v46, %v2278_v5  ;;  %v5703_v35 = vpop.eup %5702  ;;  %v4702_v45 = vld [vmem:[#allocation5 + $0x1e0] sm:$0xff]  ;;  %v2362_v46 = vld [vmem:[#allocation5 + $0x78] sm:$0x1f]  ;;  %v2913_v36 = vld [vmem:[#allocation5 + $0xf0] sm:$0xff] }
 0x3b9   : > { %v2324_v27 = vmul.f32 0.01, %v2284_v7  ;;  %v2269_v12 = vmul.f32 0.6931472, %v5703_v35  ;;  %3952 = vperm.xlu0 %5526, %v3922_v21   ;;  %v2257_v41 = vsel %vm2256_vm0, %v2254_v44, %v2251_v43  ;;  %v10496_v5 = vld [vmem:[#allocation20_spill] sm:$0xff]  ;;  %v2910_v60 = vld [vmem:[#allocation5 + $0xd8] sm:$0xff] }
 0x3ba   : > { %3957 = vperm.xlu1 %5527, %v3923_v57   ;;  %v2321_v31 = vmul.f32 0.01, %v2257_v41 }
 0x3bb   : > { %v2356_v61 = vsel %vm1940_vm14, %v10477_v50, %v2324_v27  ;;  %v2275_v59 = vsel %vm2274_vm4, %v2272_v63, %v2269_v12 }
 0x3bc   : > { %v5272_v38 = vpack.c.bf16 %v2356_v61, %v2352_v13  ;;  %v2323_v42 = vmul.f32 0.01, %v2275_v59  ;;  %v2353_v17 = vsel %vm1937_vm6, %v10472_v19, %v2321_v31  ;;  %v10492_v19 = vld [vmem:[#allocation15_spill] sm:$0xff] }
 0x3bd   : > { %3962 = vperm.xlu0 %5526, %v3924_v56  }
 0x3be   : > { %v2355_v50 = vsel %vm1939_vm10, %v10478_v25, %v2323_v42  ;;  %4707 = vperm.xlu1 %5527, %v4700_v39  }
 0x3bf   : > { %v5254_v29 = vpack.c.bf16 %v2355_v50, %v2351_v47  ;;  %v5705_v49 = vpop.eup %5704 }
 0x3c0   : > { %v2287_v8 = vmul.f32 0.6931472, %v5705_v49 }
 0x3c1   : > { %5255 = vmatprep.subr.bf16.mxu0 %v5254_v29  ;;  %4712 = vperm.xlu0 %5526, %v4701_v58  }
 0x3c2   : > { %5257 = vmatpush1.bf16.msra.mxu0 %v5256_v20  ;;  %v2293_v25 = vsel %vm2292_vm2, %v2290_v34, %v2287_v8  ;;  %4717 = vperm.xlu1 %5527, %v4702_v45  }
 0x3c3   : > { %5275 = vmatprep.subr.bf16.mxu0 %v10487_v23  ;;  %v2325_v32 = vmul.f32 0.01, %v2293_v25 }
 0x3c5   : > { %5140 = vmatmul.mubr.msk.f32.vlgmr.msra.gmra.mrb[22].mxu0 %vm2393_vm7, %v2358_v30  ;;  %v2357_v62 = vsel %vm1941_vm11, %v7761_v48, %v2325_v32  ;;  %v2360_v48 = vld [vmem:[#allocation5 + $0x68] sm:$0xff]  ;;  %4722 = vperm.xlu0 %5526, %v4703_v55  }
 0x3c6   : > { %5277 = vmatpush1.bf16.msra.mxu0 %v10488_v3  ;;  %2479 = vmatprep.mubr.f32.mxu0 %v10489_v6  ;;  %v5270_v26 = vpack.c.bf16 %v2357_v62, %v2353_v17 }
 0x3c7   : > { %5280 = vmatprep.subr.msk.bf16.mxu0 %vm7447_vm5, %v10490_v0  ;;  %4727 = vperm.xlu1 %5527, %v4704_v9  }
 0x3c8   : > { %5271 = vmatprep.subr.bf16.mxu1 %v5270_v26 }
 0x3c9   : > { %5141 = vmatmul.mubr.msk.f32.gmra.mrb[24].mxu0 %vm2393_vm7, %v2359_v53  ;;  %5273 = vmatpush1.bf16.msra.mxu1 %v5272_v38 }
 0x3ca   : > { %5283 = vmatpush1.bf16.msk.msra.mxu0 %vm7447_vm5, %v10492_v19  ;;  %5285 = vmatprep.subr.bf16.mxu1 %v10493_v24 }
 0x3cb   : > { %2485 = vmatprep.mubr.f32.mxu0 %v10489_v6 }
 0x3cc   : > { %5145 = vmatmul.mubr.msk.f32.vlgmr.msra.gmra.mrb[22].mxu1 %vm2393_vm7, %v2358_v30 }
 0x3cd   : > { %5142 = vmatmul.mubr.msk.f32.gmra.mrb[26].mxu0 %vm2393_vm7, %v2360_v48  ;;  %5287 = vmatpush1.bf16.msra.mxu1 %v10494_v4 }
 0x3ce   : > { %2574 = vmatprep.mubr.f32.mxu1 %v10489_v6  ;;  %5290 = vmatprep.subr.msk.bf16.mxu1 %vm7447_vm5, %v10495_v1 }
 0x3cf   : > { %2491 = vmatprep.mubr.f32.mxu0 %v10489_v6 }
 0x3d0   : > { %5146 = vmatmul.mubr.msk.f32.gmra.mrb[24].mxu1 %vm2393_vm7, %v2359_v53 }
 0x3d1   : > { %5143 = vmatmul.mubr.msk.f32.gmra.mrb[28].mxu0 %vm2393_vm7, %v2361_v40  ;;  %5293 = vmatpush1.bf16.msk.msra.mxu1 %vm7447_vm5, %v10496_v5 }
 0x3d2   : > { %2580 = vmatprep.mubr.f32.mxu1 %v10489_v6  ;;  %2497 = vmatprep.mubr.f32.mxu0 %v10489_v6 }
 0x3d4   : > { %5147 = vmatmul.mubr.msk.f32.gmra.mrb[26].mxu1 %vm2393_vm7, %v2360_v48 }
 0x3d5   : > { %5144 = vmatmul.mubr.msk.f32.gmra.mrb[30].mxu0 %vm2393_vm7, %v2362_v46  ;;  %2586 = vmatprep.mubr.f32.mxu1 %v10489_v6 }
 0x3d6   : > { %3003 = vmatprep.mubr.f32.mxu0 %v10489_v6 }
 0x3d8   : > { %5148 = vmatmul.mubr.msk.f32.gmra.mrb[28].mxu1 %vm2393_vm7, %v2361_v40 }
 0x3d9   : > { %2592 = vmatprep.mubr.f32.mxu1 %v10489_v6  ;;  %5152 = vmatmul.mubr.msk.f32.vlgmr.msra.gmra.mrb[32].mxu0 %vm1627_vm12, %v2907_v22 }
 0x3da   : > { %3009 = vmatprep.mubr.f32.mxu0 %v10489_v6 }
 0x3dc   : > { %5149 = vmatmul.mubr.msk.f32.gmra.mrb[30].mxu1 %vm2393_vm7, %v2362_v46 }
 0x3dd   : > { %3116 = vmatprep.mubr.f32.mxu1 %v10489_v6  ;;  %5153 = vmatmul.mubr.msk.f32.gmra.mrb[34].mxu0 %vm1627_vm12, %v2908_v18 }
 0x3de   : > { %3015 = vmatprep.mubr.f32.mxu0 %v10489_v6 }
 0x3e0   : > { %5162 = vmatmul.mubr.msk.f32.vlgmr.msra.gmra.mrb[32].mxu1 %vm1627_vm12, %v2907_v22 }
 0x3e1   : > { %3122 = vmatprep.mubr.f32.mxu1 %v10489_v6  ;;  %5154 = vmatmul.mubr.msk.f32.gmra.mrb[36].mxu0 %vm1627_vm12, %v2909_v11 }
 0x3e2   : > { %3021 = vmatprep.mubr.f32.mxu0 %v10489_v6 }
 0x3e4   : > { %5163 = vmatmul.mubr.msk.f32.gmra.mrb[34].mxu1 %vm1627_vm12, %v2908_v18 }
 0x3e5   : > { %3128 = vmatprep.mubr.f32.mxu1 %v10489_v6  ;;  %5155 = vmatmul.mubr.msk.f32.gmra.mrb[38].mxu0 %vm1627_vm12, %v2910_v60 }
 0x3e6   : > { %3027 = vmatprep.mubr.f32.mxu0 %v10489_v6 }
 0x3e8   : > { %5164 = vmatmul.mubr.msk.f32.gmra.mrb[36].mxu1 %vm1627_vm12, %v2909_v11 }
 0x3e9   : > { %3134 = vmatprep.mubr.f32.mxu1 %v10489_v6  ;;  %5156 = vmatmul.mubr.msk.f32.gmra.mrb[40].mxu0 %vm1627_vm12, %v2911_v16 }
 0x3ea   : > { %3033 = vmatprep.mubr.f32.mxu0 %v10489_v6 }
 0x3ec   : > { %5165 = vmatmul.mubr.msk.f32.gmra.mrb[38].mxu1 %vm1627_vm12, %v2910_v60 }
 0x3ed   : > { %3140 = vmatprep.mubr.f32.mxu1 %v10489_v6  ;;  %5157 = vmatmul.mubr.msk.f32.gmra.mrb[42].mxu0 %vm1627_vm12, %v2912_v10 }
 0x3ee   : > { %3039 = vmatprep.mubr.f32.mxu0 %v10489_v6 }
 0x3f0   : > { %5166 = vmatmul.mubr.msk.f32.gmra.mrb[40].mxu1 %vm1627_vm12, %v2911_v16 }
 0x3f1   : > { %3146 = vmatprep.mubr.f32.mxu1 %v10489_v6  ;;  %5158 = vmatmul.mubr.msk.f32.gmra.mrb[44].mxu0 %vm1627_vm12, %v2913_v36 }
 0x3f2   : > { %3045 = vmatprep.mubr.f32.mxu0 %v10489_v6 }
 0x3f4   : > { %5167 = vmatmul.mubr.msk.f32.gmra.mrb[42].mxu1 %vm1627_vm12, %v2912_v10 }
 0x3f5   : > { %3152 = vmatprep.mubr.f32.mxu1 %v10489_v6  ;;  %5159 = vmatmul.mubr.msk.f32.gmra.mrb[46].mxu0 %vm1627_vm12, %v2914_v51 }
 0x3f6   : > { %3267 = vmatprep.mubr.f32.mxu0 %v10489_v6 }
 0x3f8   : > { %5168 = vmatmul.mubr.msk.f32.gmra.mrb[44].mxu1 %vm1627_vm12, %v2913_v36 }
 0x3f9   : > { %3158 = vmatprep.mubr.f32.mxu1 %v10489_v6 }
 0x3fc   : > { %5169 = vmatmul.mubr.msk.f32.gmra.mrb[46].mxu1 %vm1627_vm12, %v2914_v51 }
 0x3fd   : > { %3380 = vmatprep.mubr.f32.mxu1 %v10489_v6 }
 0x424   : > { %v2371_v2 = vpop.permute.xlu0 %2370 }
 0x425   : > { %v8214_v13 = vpop.permute.xlu1 %2380 }
 0x428   : > { %v2376_v27 = vpop.permute.xlu0 %2375 }
 0x429   : > { %v8239_v8 = vpop.permute.xlu1 %2385 }
 0x498   : > { %v2475_v20 = vpop.f32.mrb[22].mxu0 }
 0x499   : > { %v8206_v7 = vadd.f32 %v2475_v20, %v2371_v2  ;;  %v2477_v35 = vpop.f32.mrb[23].mxu0 }
 0x49a   : > { %v8236_v39 = vadd.f32 %v2477_v35, %v2371_v2 }
 0x49b   : > { %v8209_v15 = vmul.f32 100.0, %v8206_v7 }
 0x49c   : > { %v2481_v14 = vpop.f32.mrb[24].mxu0  ;;  %v8258_v53 = vmul.f32 100.0, %v8236_v39 }
 0x49d   : > { %v2639_v12 = vmul.f32 1.442695, %v8209_v15  ;;  %v8212_v63 = vadd.f32 %v2481_v14, %v2376_v27  ;;  %v2483_v28 = vpop.f32.mrb[25].mxu0  ;;  %vm2619_vm5 = vcmp.gt.f32.partialorder %v8209_v15, 20.0 }
 0x49e   : > { %v8244_v30 = vadd.f32 %v2483_v28, %v2376_v27  ;;  %v2641_v4 = vmul.f32 1.442695, %v8258_v53 }
 0x49f   : > { %5706 = vpow2.f32 %v2639_v12  ;;  %v8217_v33 = vmul.f32 100.0, %v8212_v63  ;;  %v2570_v61 = vpop.f32.mrb[22].mxu1 }
 0x4a0   : > { %v2487_v21 = vpop.f32.mrb[26].mxu0  ;;  %v8219_v57 = vadd.f32 %v2570_v61, %v2371_v2  ;;  %v2572_v43 = vpop.f32.mrb[23].mxu1  ;;  %v8263_v0 = vmul.f32 100.0, %v8244_v30 }
 0x4a1   : > { %v2647_v38 = vmul.f32 1.442695, %v8217_v33  ;;  %v8223_v59 = vadd.f32 %v2487_v21, %v8214_v13  ;;  %v2489_v42 = vpop.f32.mrb[27].mxu0  ;;  %v8260_v26 = vadd.f32 %v2572_v43, %v2371_v2  ;;  %vm2623_vm13 = vcmp.gt.f32.partialorder %v8217_v33, 20.0 }
 0x4a2   : > { %v8226_v44 = vmul.f32 100.0, %v8219_v57  ;;  %v2649_v46 = vmul.f32 1.442695, %v8263_v0  ;;  %v8289_v60 = vadd.f32 %v2489_v42, %v8214_v13 }
 0x4a3   : > { %5708 = vpow2.f32 %v2647_v38  ;;  %v8229_v54 = vmul.f32 100.0, %v8223_v59  ;;  %v2576_v47 = vpop.f32.mrb[24].mxu1  ;;  %v8278_v40 = vmul.f32 100.0, %v8260_v26 }
 0x4a4   : > { %v2493_v50 = vpop.f32.mrb[28].mxu0  ;;  %v2643_v52 = vmul.f32 1.442695, %v8226_v44  ;;  %v8232_v56 = vadd.f32 %v2576_v47, %v2376_v27  ;;  %v2578_v41 = vpop.f32.mrb[25].mxu1  ;;  %v8312_v43 = vmul.f32 100.0, %v8289_v60  ;;  %vm2621_vm9 = vcmp.gt.f32.partialorder %v8226_v44, 20.0 }
 0x4a5   : > { %v8234_v29 = vpop.f32.mrb[29].mxu0  ;;  %v2655_v49 = vmul.f32 1.442695, %v8229_v54  ;;  %v8253_v17 = vadd.f32 %v2493_v50, %v8239_v8  ;;  %v8282_v22 = vadd.f32 %v2578_v41, %v2376_v27  ;;  %v2645_v2 = vmul.f32 1.442695, %v8278_v40 }
 0x4a6   : > { %5710 = vpow2.f32 %v2643_v52  ;;  %v8242_v34 = vmul.f32 100.0, %v8232_v56  ;;  %vm2627_vm15 = vcmp.gt.f32.partialorder %v8229_v54, 20.0 }
 0x4a7   : > { %v2582_v31 = vpop.f32.mrb[26].mxu1  ;;  %5712 = vpow2.f32 %v2655_v49  ;;  %v8272_v48 = vmul.f32 100.0, %v8253_v17  ;;  %v8303_v14 = vmul.f32 100.0, %v8282_v22 }
 0x4a8   : > { %v8246_v58 = vpop.f32.mrb[30].mxu0  ;;  %v2651_v23 = vmul.f32 1.442695, %v8242_v34  ;;  %v8250_v32 = vadd.f32 %v2582_v31, %v8214_v13  ;;  %v2584_v45 = vpop.f32.mrb[27].mxu1  ;;  %vm2625_vm3 = vcmp.gt.f32.partialorder %v8242_v34, 20.0 }
 0x4a9   : > { %v5707_v25 = vpop.eup %5706  ;;  %v8255_v62 = vpop.f32.mrb[31].mxu0  ;;  %v2663_v16 = vmul.f32 1.442695, %v8272_v48  ;;  %v8315_v38 = vadd.f32 %v2584_v45, %v8214_v13  ;;  %v2653_v31 = vmul.f32 1.442695, %v8303_v14  ;;  %vm2631_vm10 = vcmp.gt.f32.partialorder %v8272_v48, 20.0 }
 0x4aa   : > { %v2679_v3 = vadd.f32 1.0, %v5707_v25  ;;  %5714 = vpow2.f32 %v2651_v23  ;;  %v8266_v37 = vmul.f32 100.0, %v8250_v32  ;;  %v2682_v5 = vmul.f32 -0.5, %v5707_v25 }
 0x4ab   : > { %v2588_v55 = vpop.f32.mrb[28].mxu1  ;;  %v2685_v12 = vand.u32 2147483647, %v5707_v25 }
 0x4ac   : > { %5716 = vlog2.f32 %v2679_v3  ;;  %v2659_v19 = vmul.f32 1.442695, %v8266_v37  ;;  %v8274_v24 = vpop.f32.mrb[29].mxu1  ;;  %v8293_v10 = vadd.f32 %v2588_v55, %v8239_v8  ;;  %v2683_v27 = vadd.f32 1.0, %v2682_v5 }
 0x4ad   : > { %v8268_v9 = vpop.eup %5708  ;;  %vm8321_vm12 = vcmp.lt.f32.partialorder %v2685_v12, 0.0004427343  ;;  %v8345_v12 = vpop.permute.xlu0 %2390  ;;  %v8392_v33 = vadd.f32 %v8274_v24, %v8239_v8  ;;  %vm2629_vm2 = vcmp.gt.f32.partialorder %v8266_v37, 20.0 }
 0x4ae   : > { %v2715_v1 = vadd.f32 1.0, %v8268_v9  ;;  %5718 = vpow2.f32 %v2659_v19  ;;  %v2718_v20 = vmul.f32 -0.5, %v8268_v9  ;;  %v8306_v28 = vmul.f32 100.0, %v8293_v10 }
 0x4af   : > { %v8284_v18 = vpop.f32.mrb[30].mxu1  ;;  %v2684_v41 = vmul.f32 %v5707_v25, %v2683_v27  ;;  %v2721_v13 = vand.u32 2147483647, %v8268_v9  ;;  %v2657_v25 = vmul.f32 1.442695, %v8312_v43  ;;  %v8333_v19 = vmul.f32 100.0, %v8315_v38 }
 0x4b0   : > { %5720 = vlog2.f32 %v2715_v1  ;;  %v8286_v11 = vpop.eup %5710  ;;  %v8295_v36 = vpop.f32.mrb[31].mxu1  ;;  %v2719_v47 = vadd.f32 1.0, %v2718_v20  ;;  %v2667_v45 = vmul.f32 1.442695, %v8306_v28  ;;  %v8436_v44 = vadd.f32 %v8255_v62, %v8345_v12 }
 0x4b1   : > { %v2697_v51 = vadd.f32 1.0, %v8286_v11  ;;  %5722 = vpow2.f32 %v2641_v4  ;;  %v8300_v35 = vpop.eup %5712  ;;  %v2700_v49 = vmul.f32 -0.5, %v8286_v11  ;;  %v2703_v1 = vand.u32 2147483647, %v8286_v11 }
 0x4b2   : > { %5724 = vpow2.f32 %v2649_v46  ;;  %v2751_v21 = vadd.f32 1.0, %v8300_v35  ;;  %v2720_v5 = vmul.f32 %v8268_v9, %v2719_v47  ;;  %vm2722_vm8 = vcmp.lt.f32.partialorder %v2721_v13, 0.0004427343 }
 0x4b3   : > { %5726 = vlog2.f32 %v2697_v51  ;;  %v2701_v51 = vadd.f32 1.0, %v2700_v49  ;;  %v8353_v47 = vadd.f32 %v8246_v58, %v8345_v12  ;;  %vm8363_vm1 = vcmp.lt.f32.partialorder %v2703_v1, 0.0004427343 }
 0x4b4   : > { %v8308_v61 = vpop.eup %5714  ;;  %5728 = vpow2.f32 %v2663_v16  ;;  %v8340_v16 = vadd.f32 %v8234_v29, %v8239_v8  ;;  %v2661_v29 = vmul.f32 1.442695, %v8333_v19  ;;  %v8451_v62 = vmul.f32 100.0, %v8392_v33 }
 0x4b5   : > { %5730 = vpow2.f32 %v2645_v2  ;;  %v2733_v50 = vadd.f32 1.0, %v8308_v61  ;;  %v2736_v20 = vmul.f32 -0.5, %v8308_v61  ;;  %v2702_v13 = vmul.f32 %v8286_v11, %v2701_v51 }
 0x4b6   : > { %v5717_v42 = vpop.eup %5716  ;;  %v8357_v49 = vmul.f32 100.0, %v8340_v16  ;;  %v2757_v51 = vand.u32 2147483647, %v8300_v35  ;;  %vm2633_vm11 = vcmp.gt.f32.partialorder %v8306_v28, 20.0 }
 0x4b7   : > { %v2681_v52 = vmul.f32 0.6931472, %v5717_v42  ;;  %5732 = vlog2.f32 %v2733_v50  ;;  %v2737_v58 = vadd.f32 1.0, %v2736_v20 }
 0x4b8   : > { %v8327_v3 = vpop.eup %5718  ;;  %5734 = vlog2.f32 %v2751_v21  ;;  %vm8403_vm4 = vcmp.lt.f32.partialorder %v2757_v51, 0.0004427343  ;;  %v2665_v24 = vmul.f32 1.442695, %v8357_v49 }
 0x4b9   : > { %v2687_v55 = vsel %vm8321_vm12, %v2684_v41, %v2681_v52  ;;  %v2769_v46 = vadd.f32 1.0, %v8327_v3  ;;  %5736 = vpow2.f32 %v2667_v45  ;;  %v2754_v41 = vmul.f32 -0.5, %v8300_v35 }
 0x4ba   : > { %v5721_v4 = vpop.eup %5720  ;;  %v2859_v21 = vmul.f32 0.01, %v2687_v55  ;;  %5738 = vpow2.f32 %v2653_v31  ;;  %vm2620_vm12 = vcmp.gt.f32.partialorder %v8258_v53, 20.0 }
 0x4bb   : > { %v2717_v2 = vmul.f32 0.6931472, %v5721_v4  ;;  %v8343_v27 = vpop.eup %5722  ;;  %5740 = vlog2.f32 %v2769_v46 }
 0x4bc   : > { %v8348_v9 = vpop.eup %5724  ;;  %5742 = vpow2.f32 %v2657_v25  ;;  %v8372_v25 = vsel %vm2619_vm5, %v8206_v7, %v2859_v21  ;;  %v8387_v7 = vmul.f32 100.0, %v8353_v47  ;;  %v2738_v21 = vmul.f32 %v8308_v61, %v2737_v58 }
 0x4bd   : > { %v2723_v42 = vsel %vm2722_vm8, %v2720_v5, %v2717_v2  ;;  %v5727_v50 = vpop.eup %5726  ;;  %v2739_v5 = vand.u32 2147483647, %v8308_v61 }
 0x4be   : > { %v2863_v52 = vmul.f32 0.01, %v2723_v42  ;;  %v8359_v23 = vpop.eup %5728  ;;  %v2699_v31 = vmul.f32 0.6931472, %v5727_v50  ;;  %v2772_v42 = vmul.f32 -0.5, %v8327_v3  ;;  %v8398_v50 = vadd.f32 %v8284_v18, %v8345_v12 }
 0x4bf   : > { %v8367_v55 = vpop.eup %5730  ;;  %v2787_v11 = vadd.f32 1.0, %v8359_v23  ;;  %vm2740_vm14 = vcmp.lt.f32.partialorder %v2739_v5, 0.0004427343  ;;  %v2671_v61 = vmul.f32 1.442695, %v8387_v7 }
 0x4c0   : > { %v8377_v4 = vsel %vm2623_vm13, %v8212_v63, %v2863_v52  ;;  %v2705_v1 = vsel %vm8363_vm1, %v2702_v13, %v2699_v31  ;;  %v2755_v63 = vadd.f32 1.0, %v2754_v41  ;;  %v2790_v41 = vmul.f32 -0.5, %v8359_v23 }
 0x4c1   : > { %v5296_v46 = vpack.c.bf16 %v8377_v4, %v8372_v25  ;;  %v5733_v15 = vpop.eup %5732  ;;  %5744 = vlog2.f32 %v2787_v11  ;;  %v2861_v52 = vmul.f32 0.01, %v2705_v1  ;;  %v2773_v1 = vadd.f32 1.0, %v2772_v42 }
 0x4c2   : > { %v5735_v2 = vpop.eup %5734  ;;  %v2735_v20 = vmul.f32 0.6931472, %v5733_v15  ;;  %5746 = vpow2.f32 %v2661_v29  ;;  %v2756_v5 = vmul.f32 %v8300_v35, %v2755_v63  ;;  %v2775_v15 = vand.u32 2147483647, %v8327_v3 }
 0x4c3   : > { %v8401_v31 = vpop.eup %5736  ;;  %v2753_v58 = vmul.f32 0.6931472, %v5735_v2  ;;  %v2793_v51 = vand.u32 2147483647, %v8359_v23  ;;  %v2791_v63 = vadd.f32 1.0, %v2790_v41  ;;  %v2706_v41 = vadd.f32 1.0, %v8367_v55 }
 0x4c4   : > { %v2741_v13 = vsel %vm2740_vm14, %v2738_v21, %v2735_v20  ;;  %v8409_v45 = vpop.eup %5738  ;;  %v2805_v29 = vadd.f32 1.0, %v8401_v31  ;;  %v8416_v20 = vmul.f32 100.0, %v8398_v50  ;;  %v2808_v42 = vmul.f32 -0.5, %v8401_v31 }
 0x4c5   : > { %v2865_v18 = vmul.f32 0.01, %v2741_v13  ;;  %v5741_v11 = vpop.eup %5740  ;;  %v8423_v13 = vsel %vm2621_vm9, %v8219_v57, %v2861_v52  ;;  %v8440_v57 = vadd.f32 %v8295_v36, %v8345_v12  ;;  %v2688_v52 = vadd.f32 1.0, %v8343_v27 }
 0x4c6   : > { %v8418_v21 = vpop.eup %5742  ;;  %5748 = vlog2.f32 %v2805_v29  ;;  %v2771_v34 = vmul.f32 0.6931472, %v5741_v11  ;;  %vm8446_vm0 = vcmp.lt.f32.partialorder %v2775_v15, 0.0004427343  ;;  %v2774_v12 = vmul.f32 %v8327_v3, %v2773_v1 }
 0x4c7   : > { %v8428_v35 = vsel %vm2625_vm3, %v8232_v56, %v2865_v18  ;;  %5750 = vpow2.f32 %v2671_v61  ;;  %v2759_v56 = vsel %vm8403_vm4, %v2756_v5, %v2753_v58  ;;  %v2724_v61 = vadd.f32 1.0, %v8348_v9 }
 0x4c8   : > { %5752 = vpow2.f32 %v2665_v24  ;;  %v2792_v8 = vmul.f32 %v8359_v23, %v2791_v63  ;;  %vm2794_vm6 = vcmp.lt.f32.partialorder %v2793_v51, 0.0004427343  ;;  %v2675_v18 = vmul.f32 1.442695, %v8416_v20 }
 0x4c9   : > { %v2867_v58 = vmul.f32 0.01, %v2759_v56  ;;  %v8459_v29 = vmul.f32 100.0, %v8436_v44  ;;  %5754 = vlog2.f32 %v2688_v52  ;;  %v2777_v11 = vsel %vm8446_vm0, %v2774_v12, %v2771_v34 }
 0x4ca   : > { %v2809_v15 = vadd.f32 1.0, %v2808_v42  ;;  %v8466_v2 = vmul.f32 100.0, %v8440_v57  ;;  %5756 = vlog2.f32 %v2724_v61  ;;  %v2669_v23 = vmul.f32 1.442695, %v8451_v62 }
 0x4cb   : > { %v5745_v36 = vpop.eup %5744  ;;  %v2691_v1 = vmul.f32 -0.5, %v8343_v27  ;;  %v2811_v63 = vand.u32 2147483647, %v8401_v31  ;;  %5758 = vpow2.f32 %v2675_v18  ;;  %v2727_v56 = vmul.f32 -0.5, %v8348_v9 }
 0x4cc   : > { %v2789_v5 = vmul.f32 0.6931472, %v5745_v36  ;;  %v8461_v24 = vpop.eup %5746  ;;  %v8476_v34 = vsel %vm2627_vm15, %v8223_v59, %v2867_v58  ;;  %v2869_v42 = vmul.f32 0.01, %v2777_v11  ;;  %v2673_v52 = vmul.f32 1.442695, %v8459_v29 }
 0x4cd   : > { %v2810_v12 = vmul.f32 %v8401_v31, %v2809_v15  ;;  %v2694_v18 = vand.u32 2147483647, %v8343_v27  ;;  %5760 = vlog2.f32 %v2706_v41  ;;  %vm2812_vm5 = vcmp.lt.f32.partialorder %v2811_v63, 0.0004427343 }
 0x4ce   : > { %v2795_v3 = vsel %vm2794_vm6, %v2792_v8, %v2789_v5  ;;  %v2677_v8 = vmul.f32 1.442695, %v8466_v2  ;;  %v2692_v5 = vadd.f32 1.0, %v2691_v1  ;;  %5762 = vpow2.f32 %v2669_v23 }
 0x4cf   : > { %v2871_v51 = vmul.f32 0.01, %v2795_v3  ;;  %v2728_v11 = vadd.f32 1.0, %v2727_v56  ;;  %vm2624_vm13 = vcmp.gt.f32.partialorder %v8263_v0, 20.0  ;;  %v8500_v31 = vsel %vm2629_vm2, %v8250_v32, %v2869_v42 }
 0x4d0   : > { %v5749_v61 = vpop.eup %5748  ;;  %5764 = vpow2.f32 %v2673_v52  ;;  %v2742_v3 = vadd.f32 1.0, %v8409_v45  ;;  %vm8503_vm8 = vcmp.lt.f32.partialorder %v2694_v18, 0.0004427343  ;;  %v2693_v41 = vmul.f32 %v8343_v27, %v2692_v5 }
 0x4d1   : > { %v8483_v36 = vsel %vm2631_vm10, %v8253_v17, %v2871_v51  ;;  %v8488_v54 = vpop.eup %5750  ;;  %v2807_v58 = vmul.f32 0.6931472, %v5749_v61  ;;  %v2709_v17 = vmul.f32 -0.5, %v8367_v55  ;;  %5766 = vpow2.f32 %v2677_v8 }
 0x4d2   : > { %v5300_v59 = vpack.c.bf16 %v8483_v36, %v8476_v34  ;;  %v8493_v48 = vpop.eup %5752  ;;  %v2730_v51 = vand.u32 2147483647, %v8348_v9  ;;  %v2823_v56 = vadd.f32 1.0, %v8488_v54  ;;  %5768 = vlog2.f32 %v2742_v3 }
 0x4d3   : > { %v2813_v15 = vsel %vm2812_vm5, %v2810_v12, %v2807_v58  ;;  %v5755_v63 = vpop.eup %5754  ;;  %v2760_v32 = vadd.f32 1.0, %v8418_v21  ;;  %v2729_v61 = vmul.f32 %v8348_v9, %v2728_v11  ;;  %v2710_v12 = vadd.f32 1.0, %v2709_v17 }
 0x4d4   : > { %v2873_v1 = vmul.f32 0.01, %v2813_v15  ;;  %v5757_v37 = vpop.eup %5756  ;;  %v2690_v52 = vmul.f32 0.6931472, %v5755_v63  ;;  %v2745_v58 = vmul.f32 -0.5, %v8409_v45  ;;  %v2826_v5 = vmul.f32 -0.5, %v8488_v54 }
 0x4d5   : > { %v2726_v18 = vmul.f32 0.6931472, %v5757_v37  ;;  %5770 = vlog2.f32 %v2760_v32  ;;  %v8520_v27 = vpop.eup %5758  ;;  %vm2731_vm9 = vcmp.lt.f32.partialorder %v2730_v51, 0.0004427343  ;;  %v2712_v17 = vand.u32 2147483647, %v8367_v55 }
 0x4d6   : > { %v8514_v42 = vsel %vm2633_vm11, %v8293_v10, %v2873_v1  ;;  %v2696_v28 = vsel %vm8503_vm8, %v2693_v41, %v2690_v52  ;;  %v2796_v10 = vadd.f32 1.0, %v8493_v48  ;;  %5772 = vlog2.f32 %v2823_v56 }
 0x4d7   : > { %v5308_v8 = vpack.c.bf16 %v8514_v42, %v8500_v31  ;;  %v2732_v9 = vsel %vm2731_vm9, %v2729_v61, %v2726_v18  ;;  %v2860_v11 = vmul.f32 0.01, %v2696_v28  ;;  %v2829_v15 = vand.u32 2147483647, %v8488_v54  ;;  %v5761_v63 = vpop.eup %5760 }
 0x4d8   : > { %v2864_v3 = vmul.f32 0.01, %v2732_v9  ;;  %v2763_v1 = vmul.f32 -0.5, %v8418_v21  ;;  %5774 = vlog2.f32 %v2796_v10  ;;  %v2841_v32 = vadd.f32 1.0, %v8520_v27  ;;  %v8532_v37 = vpop.eup %5762 }
 0x4d9   : > { %v2711_v23 = vmul.f32 %v8367_v55, %v2710_v12  ;;  %v2746_v41 = vadd.f32 1.0, %v2745_v58  ;;  %v2778_v51 = vadd.f32 1.0, %v8461_v24  ;;  %vm2622_vm1 = vcmp.gt.f32.partialorder %v8278_v40, 20.0 }
 0x4da   : > { %vm2626_vm3 = vcmp.gt.f32.partialorder %v8303_v14, 20.0  ;;  %v2880_v56 = vsel %vm2620_vm12, %v8236_v39, %v2860_v11  ;;  %v2884_v52 = vsel %vm2624_vm13, %v8244_v30, %v2864_v3  ;;  %v2708_v61 = vmul.f32 0.6931472, %v5761_v63  ;;  %v8543_v12 = vpop.eup %5764 }
 0x4db   : > { %v2799_v55 = vmul.f32 -0.5, %v8493_v48  ;;  %v5294_v18 = vpack.c.bf16 %v2884_v52, %v2880_v56  ;;  %vm8545_vm14 = vcmp.lt.f32.partialorder %v2712_v17, 0.0004427343  ;;  %v2748_v28 = vand.u32 2147483647, %v8409_v45  ;;  %v8550_v10 = vpop.eup %5766 }
 0x4dc   : > { %5776 = vlog2.f32 %v2778_v51  ;;  %v8552_v39 = vadd.f32 1.0, %v2826_v5  ;;  %v2714_v30 = vsel %vm8545_vm14, %v2711_v23, %v2708_v61  ;;  %v2764_v53 = vadd.f32 1.0, %v2763_v1  ;;  %v5769_v9 = vpop.eup %5768 }
 0x4dd   : > { %v2766_v0 = vand.u32 2147483647, %v8418_v21  ;;  %5778 = vlog2.f32 %v2841_v32  ;;  %5295 = vmatprep.subr.bf16.mxu0 %v5294_v18  ;;  %v2747_v11 = vmul.f32 %v8409_v45, %v2746_v41  ;;  %v2802_v17 = vand.u32 2147483647, %v8493_v48 }
 0x4de   : > { %v2814_v3 = vadd.f32 1.0, %v8532_v37  ;;  %v2744_v63 = vmul.f32 0.6931472, %v5769_v9  ;;  %5297 = vmatpush1.bf16.msra.mxu0 %v5296_v46  ;;  %v2800_v5 = vadd.f32 1.0, %v2799_v55  ;;  %v2781_v23 = vmul.f32 -0.5, %v8461_v24 }
 0x4df   : > { %v2832_v1 = vadd.f32 1.0, %v8543_v12  ;;  %v5771_v51 = vpop.eup %5770  ;;  %vm2628_vm4 = vcmp.gt.f32.partialorder %v8312_v43, 20.0  ;;  %vm2632_vm15 = vcmp.gt.f32.partialorder %v8357_v49, 20.0  ;;  %v2844_v45 = vmul.f32 -0.5, %v8520_v27 }
 0x4e0   : > { %vm2749_vm10 = vcmp.lt.f32.partialorder %v2748_v28, 0.0004427343  ;;  %v2862_v32 = vmul.f32 0.01, %v2714_v30  ;;  %5780 = vlog2.f32 %v2814_v3  ;;  %v2762_v56 = vmul.f32 0.6931472, %v5771_v51  ;;  %v5773_v46 = vpop.eup %5772 }
 0x4e1   : > { %v2750_v41 = vsel %vm2749_vm10, %v2747_v11, %v2744_v63  ;;  %v2765_v25 = vmul.f32 %v8418_v21, %v2764_v53  ;;  %vm8569_vm0 = vcmp.lt.f32.partialorder %v2766_v0, 0.0004427343  ;;  %vm8573_vm2 = vcmp.lt.f32.partialorder %v2802_v17, 0.0004427343 }
 0x4e2   : > { %v2866_v52 = vmul.f32 0.01, %v2750_v41  ;;  %v2817_v55 = vmul.f32 -0.5, %v8532_v37  ;;  %5782 = vlog2.f32 %v2832_v1  ;;  %v5775_v18 = vpop.eup %5774  ;;  %v2801_v28 = vmul.f32 %v8493_v48, %v2800_v5 }
 0x4e3   : > { %v2768_v58 = vsel %vm8569_vm0, %v2765_v25, %v2762_v56  ;;  %v2782_v21 = vadd.f32 1.0, %v2781_v23  ;;  %v2850_v30 = vadd.f32 1.0, %v8550_v10  ;;  %v2882_v53 = vsel %vm2622_vm1, %v8260_v26, %v2862_v32 }
 0x4e4   : > { %v2886_v0 = vsel %vm2626_vm3, %v8282_v22, %v2866_v52  ;;  %v2798_v9 = vmul.f32 0.6931472, %v5775_v18  ;;  %v2784_v11 = vand.u32 2147483647, %v8461_v24  ;;  %v2868_v3 = vmul.f32 0.01, %v2768_v58 }
 0x4e5   : > { %v5302_v17 = vpack.c.bf16 %v2886_v0, %v2882_v53  ;;  %v2835_v63 = vmul.f32 -0.5, %v8543_v12  ;;  %5784 = vlog2.f32 %v2850_v30  ;;  %vm8592_vm6 = vcmp.lt.f32.partialorder %v2829_v15, 0.0004427343 }
 0x4e6   : > { %v5777_v48 = vpop.eup %5776  ;;  %v2845_v26 = vadd.f32 1.0, %v2844_v45  ;;  %v2804_v40 = vsel %vm8573_vm2, %v2801_v28, %v2798_v9  ;;  %v2818_v22 = vadd.f32 1.0, %v2817_v55  ;;  %vm2630_vm11 = vcmp.gt.f32.partialorder %v8333_v19, 20.0 }
 0x4e7   : > { %vm2634_vm5 = vcmp.gt.f32.partialorder %v8451_v62, 20.0  ;;  %5303 = vmatprep.subr.bf16.mxu1 %v5302_v17  ;;  %v2872_v14 = vmul.f32 0.01, %v2804_v40  ;;  %v2780_v23 = vmul.f32 0.6931472, %v5777_v48  ;;  %v2783_v1 = vmul.f32 %v8461_v24, %v2782_v21  ;;  %v5779_v15 = vpop.eup %5778  ;;  %v2905_v62 = vld [vmem:[#allocation5 + $0xb0] sm:$0xff] }
 0x4e8   : > { %v2853_v51 = vmul.f32 -0.5, %v8550_v10  ;;  %v2825_v32 = vmul.f32 0.6931472, %v5773_v46  ;;  %v10515_v45 = vpack.c.bf16 %v8428_v35, %v8423_v13  ;;  %vm8605_vm12 = vcmp.lt.f32.partialorder %v2784_v11, 0.0004427343 }
 0x4e9   : > { %v2820_v56 = vand.u32 2147483647, %v8532_v37  ;;  %vm3190_vm13 = vcmask 1044480   ;;  %v2888_v25 = vsel %vm2628_vm4, %v8289_v60, %v2868_v3  ;;  %v2892_v24 = vsel %vm2632_vm15, %v8340_v16, %v2872_v14 }
 0x4ea   : > { %5305 = vmatpush1.bf16.msra.mxu1 %v10515_v45  ;;  %v2786_v4 = vsel %vm8605_vm12, %v2783_v1, %v2780_v23  ;;  %v2836_v13 = vadd.f32 1.0, %v2835_v63  ;;  %v5781_v35 = vpop.eup %5780  ;;  %v2828_v46 = vmul.f32 %v8488_v54, %v8552_v39  ;;  %v2847_v52 = vand.u32 2147483647, %v8520_v27 }
 0x4eb   : > { %v5298_v61 = vpack.c.bf16 %v2892_v24, %v2888_v25  ;;  %v2838_v55 = vand.u32 2147483647, %v8543_v12  ;;  %v2843_v18 = vmul.f32 0.6931472, %v5779_v15  ;;  %v2816_v43 = vmul.f32 0.6931472, %v5781_v35 }
 0x4ec   : > { %v2819_v60 = vmul.f32 %v8532_v37, %v2818_v22  ;;  %v2854_v58 = vadd.f32 1.0, %v2853_v51  ;;  %v5783_v49 = vpop.eup %5782  ;;  %v2831_v16 = vsel %vm8592_vm6, %v2828_v46, %v2825_v32  ;;  %v2846_v28 = vmul.f32 %v8520_v27, %v2845_v26 }
 0x4ed   : > { %5299 = vmatprep.subr.bf16.mxu0 %v5298_v61  ;;  %vm2821_vm8 = vcmp.lt.f32.partialorder %v2820_v56, 0.0004427343  ;;  %v2870_v21 = vmul.f32 0.01, %v2786_v4  ;;  %v2834_v39 = vmul.f32 0.6931472, %v5783_v49  ;;  %v2837_v30 = vmul.f32 %v8543_v12, %v2836_v13 }
 0x4ee   : > { %v2822_v54 = vsel %vm2821_vm8, %v2819_v60, %v2816_v43  ;;  %5301 = vmatpush1.bf16.msra.mxu0 %v5300_v59  ;;  %v2856_v37 = vand.u32 2147483647, %v8550_v10  ;;  %vm8631_vm9 = vcmp.lt.f32.partialorder %v2847_v52, 0.0004427343  ;;  %vm2839_vm1 = vcmp.lt.f32.partialorder %v2838_v55, 0.0004427343 }
 0x4ef   : > { %v2874_v0 = vmul.f32 0.01, %v2822_v54  ;;  %v5785_v27 = vpop.eup %5784  ;;  %v2875_v9 = vmul.f32 0.01, %v2831_v16  ;;  %v2849_v11 = vsel %vm8631_vm9, %v2846_v28, %v2843_v18  ;;  %v2840_v17 = vsel %vm2839_vm1, %v2837_v30, %v2834_v39 }
 0x4f0   : > { %v2855_v34 = vmul.f32 %v8550_v10, %v2854_v58  ;;  %v2890_v36 = vsel %vm2630_vm11, %v8315_v38, %v2870_v21  ;;  %v2876_v12 = vmul.f32 0.01, %v2840_v17  ;;  %v2852_v3 = vmul.f32 0.6931472, %v5785_v27  ;;  %v2899_v10 = vld [vmem:[#allocation5 + $0x80] sm:$0xff] }
 0x4f1   : > { %v2894_v59 = vsel %vm2634_vm5, %v8392_v33, %v2874_v0  ;;  %vm2636_vm3 = vcmp.gt.f32.partialorder %v8459_v29, 20.0  ;;  %vm2857_vm14 = vcmp.lt.f32.partialorder %v2856_v37, 0.0004427343  ;;  %vm2635_vm4 = vcmp.gt.f32.partialorder %v8387_v7, 20.0  ;;  %v2906_v29 = vld [vmem:[#allocation5 + $0xb8] sm:$0xff] }
 0x4f2   : > { %v5306_v63 = vpack.c.bf16 %v2894_v59, %v2890_v36  ;;  %v2896_v48 = vsel %vm2636_vm3, %v8436_v44, %v2876_v12  ;;  %v2858_v5 = vsel %vm2857_vm14, %v2855_v34, %v2852_v3  ;;  %vm3165_vm15 = vcmask 302080  }
 0x4f3   : > { %v2895_v19 = vsel %vm2635_vm4, %v8353_v47, %v2875_v9  ;;  %v2877_v38 = vmul.f32 0.01, %v2849_v11  ;;  %5170 = vmatprep.subr.msk.mxu0 %vm3190_vm13, %v2896_v48  ;;  %v2878_v33 = vmul.f32 0.01, %v2858_v5  ;;  %vm2638_vm10 = vcmp.gt.f32.partialorder %v8466_v2, 20.0  ;;  %v2900_v47 = vld [vmem:[#allocation5 + $0x88] sm:$0xff] }
 0x4f4   : > { %5307 = vmatprep.subr.bf16.mxu1 %v5306_v63  ;;  %5171 = vmatpush1.msk.msra.mxu0 %vm3190_vm13, %v2895_v19  ;;  %vm2637_vm0 = vcmp.gt.f32.partialorder %v8416_v20, 20.0  ;;  %v2901_v2 = vld [vmem:[#allocation5 + $0x90] sm:$0xff]  ;;  %v2903_v20 = vld [vmem:[#allocation5 + $0xa0] sm:$0xff] }
 0x4f5   : > { %5309 = vmatpush1.bf16.msra.mxu1 %v5308_v8  ;;  %v2898_v7 = vsel %vm2638_vm10, %v8440_v57, %v2878_v33  ;;  %5172 = vmatmul.mubr.msk.f32.vlgmr.msra.gmra.mrb[32].mxu0 %vm3165_vm15, %v2899_v10  ;;  %v2897_v44 = vsel %vm2637_vm0, %v8398_v50, %v2877_v38  ;;  %v2902_v50 = vld [vmem:[#allocation5 + $0x98] sm:$0xff]  ;;  %v2904_v57 = vld [vmem:[#allocation5 + $0xa8] sm:$0xff] }
 0x4f6   : > { %5180 = vmatprep.subr.msk.mxu1 %vm3190_vm13, %v2898_v7  ;;  %3273 = vmatprep.mubr.f32.mxu0 %v10489_v6 }
 0x4f9   : > { %5181 = vmatpush1.msk.msra.mxu1 %vm3190_vm13, %v2897_v44  ;;  %5173 = vmatmul.mubr.msk.f32.gmra.mrb[34].mxu0 %vm3165_vm15, %v2900_v47 }
 0x4fa   : > { %5182 = vmatmul.mubr.msk.f32.vlgmr.msra.gmra.mrb[32].mxu1 %vm3165_vm15, %v2899_v10  ;;  %3279 = vmatprep.mubr.f32.mxu0 %v10489_v6 }
 0x4fb   : > { %3386 = vmatprep.mubr.f32.mxu1 %v10489_v6 }
 0x4fd   : > { %5174 = vmatmul.mubr.msk.f32.gmra.mrb[36].mxu0 %vm3165_vm15, %v2901_v2 }
 0x4fe   : > { %5183 = vmatmul.mubr.msk.f32.gmra.mrb[34].mxu1 %vm3165_vm15, %v2900_v47  ;;  %3285 = vmatprep.mubr.f32.mxu0 %v10489_v6 }
 0x4ff   : > { %3392 = vmatprep.mubr.f32.mxu1 %v10489_v6 }
 0x501   : > { %5175 = vmatmul.mubr.msk.f32.gmra.mrb[38].mxu0 %vm3165_vm15, %v2902_v50 }
 0x502   : > { %5184 = vmatmul.mubr.msk.f32.gmra.mrb[36].mxu1 %vm3165_vm15, %v2901_v2  ;;  %3291 = vmatprep.mubr.f32.mxu0 %v10489_v6 }
 0x503   : > { %3398 = vmatprep.mubr.f32.mxu1 %v10489_v6 }
 0x505   : > { %5176 = vmatmul.mubr.msk.f32.gmra.mrb[40].mxu0 %vm3165_vm15, %v2903_v20 }
 0x506   : > { %5185 = vmatmul.mubr.msk.f32.gmra.mrb[38].mxu1 %vm3165_vm15, %v2902_v50  ;;  %3297 = vmatprep.mubr.f32.mxu0 %v10489_v6 }
 0x507   : > { %3404 = vmatprep.mubr.f32.mxu1 %v10489_v6 }
 0x509   : > { %5177 = vmatmul.mubr.msk.f32.gmra.mrb[42].mxu0 %vm3165_vm15, %v2904_v57 }
 0x50a   : > { %5186 = vmatmul.mubr.msk.f32.gmra.mrb[40].mxu1 %vm3165_vm15, %v2903_v20  ;;  %3303 = vmatprep.mubr.f32.mxu0 %v10489_v6 }
 0x50b   : > { %3410 = vmatprep.mubr.f32.mxu1 %v10489_v6 }
 0x50d   : > { %5178 = vmatmul.mubr.msk.f32.gmra.mrb[44].mxu0 %vm3165_vm15, %v2905_v62 }
 0x50e   : > { %5187 = vmatmul.mubr.msk.f32.gmra.mrb[42].mxu1 %vm3165_vm15, %v2904_v57  ;;  %3309 = vmatprep.mubr.f32.mxu0 %v10489_v6 }
 0x50f   : > { %3416 = vmatprep.mubr.f32.mxu1 %v10489_v6 }
 0x511   : > { %5179 = vmatmul.mubr.msk.f32.gmra.mrb[46].mxu0 %vm3165_vm15, %v2906_v29 }
 0x512   : > { %5188 = vmatmul.mubr.msk.f32.gmra.mrb[44].mxu1 %vm3165_vm15, %v2905_v62  ;;  %4053 = vmatprep.mubr.f32.mxu0 %v10489_v6 }
 0x513   : > { %3422 = vmatprep.mubr.f32.mxu1 %v10489_v6 }
 0x516   : > { %5189 = vmatmul.mubr.msk.f32.gmra.mrb[46].mxu1 %vm3165_vm15, %v2906_v29 }
 0x517   : > { %4166 = vmatprep.mubr.f32.mxu1 %v10489_v6 }
 0x5c8   : > { %v8691_v31 = vpop.f32.mrb[32].mxu0 }
 0x5c9   : > { %v8694_v42 = vmul.f32 100.0, %v8691_v31  ;;  %v8696_v8 = vpop.f32.mrb[33].mxu0 }
 0x5ca   : > { %v8699_v26 = vmul.f32 100.0, %v8696_v8 }
 0x5cb   : > { %v3493_v40 = vmul.f32 1.442695, %v8694_v42  ;;  %vm3461_vm5 = vcmp.gt.f32.partialorder %v8694_v42, 20.0 }
 0x5cc   : > { %v3495_v14 = vmul.f32 1.442695, %v8699_v26  ;;  %v8705_v23 = vpop.f32.mrb[34].mxu0  ;;  %vm3462_vm3 = vcmp.gt.f32.partialorder %v8699_v26, 20.0 }
 0x5cd   : > { %v8702_v22 = vpop.f32.mrb[32].mxu1  ;;  %5786 = vpow2.f32 %v3493_v40  ;;  %v8713_v15 = vmul.f32 100.0, %v8705_v23  ;;  %v8715_v32 = vpop.f32.mrb[35].mxu0 }
 0x5ce   : > { %v8708_v1 = vmul.f32 100.0, %v8702_v22  ;;  %v8710_v51 = vpop.f32.mrb[33].mxu1  ;;  %5788 = vpow2.f32 %v3495_v14  ;;  %v8721_v41 = vmul.f32 100.0, %v8715_v32 }
 0x5cf   : > { %v8718_v45 = vmul.f32 100.0, %v8710_v51  ;;  %v3501_v25 = vmul.f32 1.442695, %v8713_v15  ;;  %vm3465_vm13 = vcmp.gt.f32.partialorder %v8713_v15, 20.0 }
 0x5d0   : > { %v3497_v56 = vmul.f32 1.442695, %v8708_v1  ;;  %v8728_v13 = vpop.f32.mrb[36].mxu0  ;;  %v3503_v46 = vmul.f32 1.442695, %v8721_v41  ;;  %vm3463_vm9 = vcmp.gt.f32.partialorder %v8708_v1, 20.0 }
 0x5d1   : > { %v3499_v24 = vmul.f32 1.442695, %v8718_v45  ;;  %v8726_v4 = vpop.f32.mrb[34].mxu1  ;;  %10520 = vst [vmem:[#allocation11_spill] sm:$0xff] %v8728_v13  ;;  %v8736_v61 = vpop.f32.mrb[37].mxu0  ;;  %v8744_v60 = vmul.f32 100.0, %v8728_v13 }
 0x5d2   : > { %5790 = vpow2.f32 %v3497_v56  ;;  %v8731_v35 = vmul.f32 100.0, %v8726_v4  ;;  %v8734_v52 = vpop.f32.mrb[35].mxu1  ;;  %10521 = vst [vmem:[#allocation12_spill] sm:$0xff] %v8736_v61  ;;  %v8749_v49 = vmul.f32 100.0, %v8736_v61  ;;  %vm3464_vm10 = vcmp.gt.f32.partialorder %v8718_v45, 20.0 }
 0x5d3   : > { %5792 = vpow2.f32 %v3499_v24  ;;  %v8739_v55 = vmul.f32 100.0, %v8734_v52  ;;  %v3509_v37 = vmul.f32 1.442695, %v8744_v60  ;;  %vm3466_vm0 = vcmp.gt.f32.partialorder %v8721_v41, 20.0 }
 0x5d4   : > { %5794 = vpow2.f32 %v3501_v25  ;;  %v3505_v18 = vmul.f32 1.442695, %v8731_v35  ;;  %v8753_v28 = vpop.f32.mrb[38].mxu0  ;;  %v3511_v11 = vmul.f32 1.442695, %v8749_v49  ;;  %vm3467_vm1 = vcmp.gt.f32.partialorder %v8731_v35, 20.0 }
 0x5d5   : > { %5796 = vpow2.f32 %v3503_v46  ;;  %v3507_v43 = vmul.f32 1.442695, %v8739_v55  ;;  %v8746_v58 = vpop.f32.mrb[36].mxu1  ;;  %10524 = vst [vmem:[#allocation14_spill] sm:$0xff] %v8753_v28  ;;  %v8755_v21 = vpop.f32.mrb[39].mxu0  ;;  %v8798_v20 = vmul.f32 100.0, %v8753_v28 }
 0x5d6   : > { %10522 = vst [vmem:[#allocation25_spill] sm:$0xff] %v8746_v58  ;;  %5798 = vpow2.f32 %v3505_v18  ;;  %v8751_v16 = vpop.f32.mrb[37].mxu1  ;;  %10525 = vst [vmem:[#allocation19_spill] sm:$0xff] %v8755_v21  ;;  %v8766_v9 = vmul.f32 100.0, %v8746_v58  ;;  %v8804_v40 = vmul.f32 100.0, %v8755_v21 }
 0x5d7   : > { %10523 = vst [vmem:[#allocation26_spill] sm:$0xff] %v8751_v16  ;;  %v5787_v54 = vpop.eup %5786  ;;  %5800 = vpow2.f32 %v3507_v43  ;;  %v8795_v50 = vmul.f32 100.0, %v8751_v16 }
 0x5d8   : > { %v8757_v39 = vpop.eup %5788  ;;  %v3557_v30 = vadd.f32 1.0, %v5787_v54  ;;  %v8762_v0 = vpop.f32.mrb[40].mxu0  ;;  %10526 = vst [vmem:[#allocation22_spill] sm:$0xff] %v8766_v9  ;;  %v3560_v59 = vmul.f32 -0.5, %v5787_v54  ;;  %v3563_v3 = vand.u32 2147483647, %v5787_v54 }
 0x5d9   : > { %v8760_v53 = vpop.f32.mrb[38].mxu1  ;;  %v3566_v27 = vadd.f32 1.0, %v8757_v39  ;;  %v8771_v34 = vpop.f32.mrb[41].mxu0  ;;  %v3569_v48 = vmul.f32 -0.5, %v8757_v39  ;;  %v3513_v33 = vmul.f32 1.442695, %v8766_v9 }
 0x5da   : > { %v8769_v17 = vpop.f32.mrb[39].mxu1  ;;  %5802 = vlog2.f32 %v3557_v30  ;;  %10528 = vst [vmem:[#allocation27_spill] sm:$0xff] %v8795_v50  ;;  %v3561_v62 = vadd.f32 1.0, %v3560_v59  ;;  %v3572_v29 = vand.u32 2147483647, %v8757_v39  ;;  %v8937_v45 = vmul.f32 100.0, %v8760_v53 }
 0x5db   : > { %5804 = vlog2.f32 %v3566_v27  ;;  %vm8806_vm2 = vcmp.lt.f32.partialorder %v3563_v3, 0.0004427343  ;;  %v3570_v56 = vadd.f32 1.0, %v3569_v48  ;;  %v3519_v26 = vmul.f32 1.442695, %v8804_v40 }
 0x5dc   : > { %v8773_v36 = vpop.eup %5790  ;;  %5806 = vpow2.f32 %v3509_v37  ;;  %v8781_v10 = vpop.f32.mrb[42].mxu0  ;;  %v3562_v48 = vmul.f32 %v5787_v54, %v3561_v62  ;;  %vm8827_vm6 = vcmp.lt.f32.partialorder %v3572_v29, 0.0004427343 }
 0x5dd   : > { %v8775_v12 = vpop.eup %5792  ;;  %v3575_v63 = vadd.f32 1.0, %v8773_v36  ;;  %v8779_v5 = vpop.f32.mrb[40].mxu1  ;;  %5808 = vpow2.f32 %v3511_v11  ;;  %v3578_v43 = vmul.f32 -0.5, %v8773_v36  ;;  %v3581_v30 = vand.u32 2147483647, %v8773_v36 }
 0x5de   : > { %v8783_v19 = vpop.eup %5794  ;;  %v3584_v38 = vadd.f32 1.0, %v8775_v12  ;;  %v8787_v7 = vpop.f32.mrb[41].mxu1  ;;  %v3587_v37 = vmul.f32 -0.5, %v8775_v12  ;;  %v3590_v59 = vand.u32 2147483647, %v8775_v12 }
 0x5df   : > { %v8789_v47 = vpop.f32.mrb[43].mxu0  ;;  %v8791_v44 = vpop.eup %5796  ;;  %5810 = vlog2.f32 %v3575_v63  ;;  %v3593_v2 = vadd.f32 1.0, %v8783_v19  ;;  %v3596_v3 = vmul.f32 -0.5, %v8783_v19  ;;  %v3579_v16 = vadd.f32 1.0, %v3578_v43 }
 0x5e0   : > { %10527 = vst [vmem:[#allocation23_spill] sm:$0xff] %v8789_v47  ;;  %v8800_v57 = vpop.eup %5798  ;;  %5812 = vlog2.f32 %v3584_v38  ;;  %v8813_v46 = vpop.f32.mrb[44].mxu0  ;;  %v3602_v63 = vadd.f32 1.0, %v8791_v44  ;;  %vm8842_vm11 = vcmp.lt.f32.partialorder %v3581_v30, 0.0004427343  ;;  %v3588_v58 = vadd.f32 1.0, %v3587_v37 }
 0x5e1   : > { %5814 = vlog2.f32 %v3593_v2  ;;  %v3611_v25 = vadd.f32 1.0, %v8800_v57  ;;  %v8811_v24 = vpop.f32.mrb[42].mxu1  ;;  %10532 = vst [vmem:[#allocation16_spill] sm:$0xff] %v8813_v46  ;;  %v8815_v18 = vpop.eup %5800  ;;  %v3599_v2 = vand.u32 2147483647, %v8783_v19  ;;  %v3605_v46 = vmul.f32 -0.5, %v8791_v44 }
 0x5e2   : > { %10531 = vst [vmem:[#allocation17_spill] sm:$0xff] %v8811_v24  ;;  %5816 = vpow2.f32 %v3513_v33  ;;  %v8820_v27 = vpop.f32.mrb[43].mxu1  ;;  %v8822_v11 = vpop.f32.mrb[45].mxu0  ;;  %v8833_v33 = vmul.f32 1.442695, %v8795_v50  ;;  %v3597_v28 = vadd.f32 1.0, %v3596_v3  ;;  %v3571_v37 = vmul.f32 %v8757_v39, %v3570_v56 }
 0x5e3   : > { %10533 = vst [vmem:[#allocation21_spill] sm:$0xff] %v8820_v27  ;;  %10534 = vst [vmem:[#allocation15_spill] sm:$0xff] %v8822_v11  ;;  %5818 = vlog2.f32 %v3611_v25  ;;  %v3614_v11 = vmul.f32 -0.5, %v8800_v57  ;;  %v3620_v25 = vadd.f32 1.0, %v8815_v18  ;;  %vm8849_vm12 = vcmp.lt.f32.partialorder %v3590_v59, 0.0004427343 }
 0x5e4   : > { %v5803_v6 = vpop.eup %5802  ;;  %5820 = vlog2.f32 %v3602_v63  ;;  %v8840_v54 = vpop.f32.mrb[46].mxu0  ;;  %vm8862_vm8 = vcmp.lt.f32.partialorder %v3599_v2, 0.0004427343  ;;  %v3617_v3 = vand.u32 2147483647, %v8800_v57  ;;  %v3606_v24 = vadd.f32 1.0, %v3605_v46 }
 0x5e5   : > { %v8838_v27 = vpop.f32.mrb[44].mxu1  ;;  %10538 = vst [vmem:[#allocation13_spill] sm:$0xff] %v8840_v54  ;;  %v5805_v62 = vpop.eup %5804  ;;  %v3559_v29 = vmul.f32 0.6931472, %v5803_v6  ;;  %5822 = vlog2.f32 %v3620_v25  ;;  %v3623_v54 = vmul.f32 -0.5, %v8815_v18  ;;  %v3580_v56 = vmul.f32 %v8773_v36, %v3579_v16 }
 0x5e6   : > { %10537 = vst [vmem:[#allocation24_spill] sm:$0xff] %v8838_v27  ;;  %v8846_v21 = vpop.eup %5806  ;;  %v8854_v27 = vpop.f32.mrb[45].mxu1  ;;  %v3568_v30 = vmul.f32 0.6931472, %v5805_v62  ;;  %v3589_v2 = vmul.f32 %v8775_v12, %v3588_v58  ;;  %v3626_v61 = vand.u32 2147483647, %v8815_v18 }
 0x5e7   : > { %10543 = vst [vmem:[#allocation18_spill] sm:$0xff] %v8854_v27  ;;  %v8856_v6 = vpop.f32.mrb[47].mxu0  ;;  %v8858_v43 = vpop.eup %5808  ;;  %v3565_v50 = vsel %vm8806_vm2, %v3562_v48, %v3559_v29  ;;  %v3615_v27 = vadd.f32 1.0, %v3614_v11  ;;  %v3598_v48 = vmul.f32 %v8783_v19, %v3597_v28  ;;  %v3624_v29 = vadd.f32 1.0, %v3623_v54 }
 0x5e8   : > { %10544 = vst [vmem:[#allocation20_spill] sm:$0xff] %v8856_v6  ;;  %v3608_v6 = vand.u32 2147483647, %v8791_v44  ;;  %v3574_v58 = vsel %vm8827_vm6, %v3571_v37, %v3568_v30  ;;  %vm8889_vm14 = vcmp.lt.f32.partialorder %v3617_v3, 0.0004427343  ;;  %v3607_v19 = vmul.f32 %v8791_v44, %v3606_v24 }
 0x5e9   : > { %v5811_v25 = vpop.eup %5810  ;;  %v8870_v9 = vpop.f32.mrb[46].mxu1  ;;  %vm8902_vm15 = vcmp.lt.f32.partialorder %v3626_v61, 0.0004427343  ;;  %v3846_v37 = vmul.f32 0.01, %v3574_v58  ;;  %v3625_v44 = vmul.f32 %v8815_v18, %v3624_v29  ;;  %vm3468_vm2 = vcmp.gt.f32.partialorder %v8739_v55, 20.0 }
 0x5ea   : > { %10547 = vst [vmem:[#allocation28_spill] sm:$0xff] %v8870_v9  ;;  %v5813_v62 = vpop.eup %5812  ;;  %v3577_v39 = vmul.f32 0.6931472, %v5811_v25  ;;  %v8877_v14 = vpop.f32.mrb[47].mxu1  ;;  %v3629_v9 = vadd.f32 1.0, %v8846_v21  ;;  %v8944_v55 = vmul.f32 100.0, %v8769_v17 }
 0x5eb   : > { %v5815_v11 = vpop.eup %5814  ;;  %v3586_v46 = vmul.f32 0.6931472, %v5813_v62  ;;  %v3845_v25 = vmul.f32 0.01, %v3565_v50  ;;  %v3616_v62 = vmul.f32 %v8800_v57, %v3615_v27  ;;  %vm8894_vm4 = vcmp.lt.f32.partialorder %v3608_v6, 0.0004427343 }
 0x5ec   : > { %v8881_v13 = vpop.eup %5816  ;;  %v3583_v16 = vsel %vm8842_vm11, %v3580_v56, %v3577_v39  ;;  %v3595_v36 = vmul.f32 0.6931472, %v5815_v11  ;;  %5824 = vlog2.f32 %v3629_v9  ;;  %v3878_v1 = vsel %vm3462_vm3, %v8696_v8, %v3846_v37 }
 0x5ed   : > { %v5819_v12 = vpop.eup %5818  ;;  %v3592_v47 = vsel %vm8849_vm12, %v3589_v2, %v3586_v46  ;;  %v3847_v27 = vmul.f32 0.01, %v3583_v16  ;;  %v3877_v24 = vsel %vm3461_vm5, %v8691_v31, %v3845_v25  ;;  %v3647_v2 = vadd.f32 1.0, %v8881_v13 }
 0x5ee   : > { %v3601_v38 = vsel %vm8862_vm8, %v3598_v48, %v3595_v36  ;;  %v3613_v54 = vmul.f32 0.6931472, %v5819_v12  ;;  %v5821_v57 = vpop.eup %5820  ;;  %v3848_v61 = vmul.f32 0.01, %v3592_v47  ;;  %v3638_v31 = vadd.f32 1.0, %v8858_v43 }
 0x5ef   : > { %v3849_v3 = vmul.f32 0.01, %v3601_v38  ;;  %v3604_v6 = vmul.f32 0.6931472, %v5821_v57  ;;  %v5823_v59 = vpop.eup %5822  ;;  %v3879_v9 = vsel %vm3463_vm9, %v8702_v22, %v3847_v27  ;;  %5826 = vpow2.f32 %v8833_v33 }
 0x5f0   : > { %v3619_v63 = vsel %vm8889_vm14, %v3616_v62, %v3613_v54  ;;  %v3622_v42 = vmul.f32 0.6931472, %v5823_v59  ;;  %5828 = vlog2.f32 %v3638_v31  ;;  %v3517_v33 = vmul.f32 1.442695, %v8798_v20 }
 0x5f1   : > { %v3881_v39 = vsel %vm3465_vm13, %v8705_v23, %v3849_v3  ;;  %v3851_v56 = vmul.f32 0.01, %v3619_v63  ;;  %v3610_v18 = vsel %vm8894_vm4, %v3607_v19, %v3604_v6  ;;  %v3880_v41 = vsel %vm3464_vm10, %v8710_v51, %v3848_v61 }
 0x5f2   : > { %v5312_v11 = vpack.c.bf16 %v3881_v39, %v3877_v24  ;;  %v3850_v15 = vmul.f32 0.01, %v3610_v18  ;;  %v3628_v48 = vsel %vm8902_vm15, %v3625_v44, %v3622_v42  ;;  %5830 = vlog2.f32 %v3647_v2 }
 0x5f3   : > { %v3883_v46 = vsel %vm3467_vm1, %v8726_v4, %v3851_v56  ;;  %v3852_v4 = vmul.f32 0.01, %v3628_v48  ;;  %5832 = vpow2.f32 %v3517_v33  ;;  %v3632_v16 = vmul.f32 -0.5, %v8846_v21  ;;  %v10564_v56 = vld [vmem:[#allocation22_spill] sm:$0xff]  ;;  %v10566_v48 = vld [vmem:[#allocation27_spill] sm:$0xff] }
 0x5f4   : > { %v5328_v23 = vpack.c.bf16 %v3883_v46, %v3879_v9  ;;  %v3882_v22 = vsel %vm3466_vm0, %v8715_v32, %v3850_v15  ;;  %v3521_v32 = vmul.f32 1.442695, %v8937_v45  ;;  %5834 = vpow2.f32 %v3519_v26 }
 0x5f5   : > { %v5310_v35 = vpack.c.bf16 %v3882_v22, %v3878_v1  ;;  %v3884_v29 = vsel %vm3468_vm2, %v8734_v52, %v3852_v4  ;;  %v8948_v51 = vmul.f32 100.0, %v8762_v0  ;;  %v3523_v52 = vmul.f32 1.442695, %v8944_v55 }
 0x5f6   : > { %v5326_v8 = vpack.c.bf16 %v3884_v29, %v3880_v41  ;;  %v5825_v25 = vpop.eup %5824  ;;  %5836 = vpow2.f32 %v3521_v32  ;;  %v3641_v58 = vmul.f32 -0.5, %v8858_v43  ;;  %v8954_v12 = vmul.f32 100.0, %v8779_v5 }
 0x5f7   : > { %5311 = vmatprep.subr.bf16.mxu0 %v5310_v35  ;;  %v3525_v36 = vmul.f32 1.442695, %v8948_v51  ;;  %v3635_v28 = vand.u32 2147483647, %v8846_v21  ;;  %5838 = vpow2.f32 %v3523_v52  ;;  %v3633_v19 = vadd.f32 1.0, %v3632_v16 }
 0x5f8   : > { %5313 = vmatpush1.bf16.msra.mxu0 %v5312_v11  ;;  %5327 = vmatprep.subr.bf16.mxu1 %v5326_v8  ;;  %v3650_v50 = vmul.f32 -0.5, %v8881_v13  ;;  %v3653_v38 = vand.u32 2147483647, %v8881_v13  ;;  %v3631_v30 = vmul.f32 0.6931472, %v5825_v25  ;;  %v3642_v57 = vadd.f32 1.0, %v3641_v58 }
 0x5f9   : > { %5329 = vmatpush1.bf16.msra.mxu1 %v5328_v23  ;;  %v8956_v62 = vpop.eup %5826  ;;  %5840 = vpow2.f32 %v3525_v36  ;;  %v3529_v27 = vmul.f32 1.442695, %v8954_v12  ;;  %vm8963_vm6 = vcmp.lt.f32.partialorder %v3635_v28, 0.0004427343  ;;  %v8968_v44 = vmul.f32 100.0, %v8771_v34  ;;  %v10560_v28 = vld [vmem:[#allocation11_spill] sm:$0xff] }
 0x5fa   : > { %v3656_v47 = vadd.f32 1.0, %v8956_v62  ;;  %v5829_v54 = vpop.eup %5828  ;;  %v8971_v24 = vmul.f32 100.0, %v8781_v10  ;;  %v3634_v6 = vmul.f32 %v8846_v21, %v3633_v19  ;;  %v3651_v59 = vadd.f32 1.0, %v3650_v50 }
 0x5fb   : > { %v3644_v61 = vand.u32 2147483647, %v8858_v43  ;;  %vm8979_vm11 = vcmp.lt.f32.partialorder %v3653_v38, 0.0004427343  ;;  %v3640_v2 = vmul.f32 0.6931472, %v5829_v54  ;;  %v3643_v42 = vmul.f32 %v8858_v43, %v3642_v57 }
 0x5fc   : > { %v5831_v37 = vpop.eup %5830  ;;  %5842 = vlog2.f32 %v3656_v47  ;;  %v3637_v18 = vsel %vm8963_vm6, %v3634_v6, %v3631_v30  ;;  %v3527_v46 = vmul.f32 1.442695, %v8968_v44  ;;  %v3533_v15 = vmul.f32 1.442695, %v8971_v24 }
 0x5fd   : > { %v8973_v63 = vpop.eup %5832  ;;  %5844 = vpow2.f32 %v3529_v27  ;;  %v3649_v9 = vmul.f32 0.6931472, %v5831_v37  ;;  %v3652_v23 = vmul.f32 %v8881_v13, %v3651_v59  ;;  %vm8993_vm5 = vcmp.lt.f32.partialorder %v3644_v61, 0.0004427343  ;;  %v10563_v27 = vld [vmem:[#allocation12_spill] sm:$0xff] }
 0x5fe   : > { %v8977_v39 = vpop.eup %5834  ;;  %v3665_v11 = vadd.f32 1.0, %v8973_v63  ;;  %v3646_v22 = vsel %vm8993_vm5, %v3643_v42, %v3640_v2  ;;  %v3659_v4 = vmul.f32 -0.5, %v8956_v62  ;;  %v9004_v35 = vmul.f32 100.0, %v8787_v7 }
 0x5ff   : > { %v3674_v21 = vadd.f32 1.0, %v8977_v39  ;;  %v3853_v33 = vmul.f32 0.01, %v3637_v18  ;;  %v3668_v13 = vmul.f32 -0.5, %v8973_v63  ;;  %v3655_v26 = vsel %vm8979_vm11, %v3652_v23, %v3649_v9  ;;  %v10565_v18 = vld [vmem:[#allocation17_spill] sm:$0xff] }
 0x600   : > { %v8988_v31 = vpop.eup %5836  ;;  %5846 = vlog2.f32 %v3665_v11  ;;  %v3662_v8 = vand.u32 2147483647, %v8956_v62  ;;  %v3677_v32 = vmul.f32 -0.5, %v8977_v39  ;;  %v3854_v25 = vmul.f32 0.01, %v3646_v22 }
 0x601   : > { %v3683_v1 = vadd.f32 1.0, %v8988_v31  ;;  %5848 = vlog2.f32 %v3674_v21  ;;  %v8998_v43 = vpop.eup %5838  ;;  %v3686_v16 = vmul.f32 -0.5, %v8988_v31  ;;  %vm3469_vm12 = vcmp.gt.f32.partialorder %v8744_v60, 20.0 }
 0x602   : > { %5850 = vpow2.f32 %v3533_v15  ;;  %v3692_v41 = vadd.f32 1.0, %v8998_v43  ;;  %vm3470_vm13 = vcmp.gt.f32.partialorder %v8749_v49, 20.0  ;;  %v3660_v52 = vadd.f32 1.0, %v3659_v4 }
 0x603   : > { %5852 = vlog2.f32 %v3683_v1  ;;  %v9008_v29 = vpop.eup %5840  ;;  %v3531_v58 = vmul.f32 1.442695, %v9004_v35  ;;  %v9019_v19 = vsel %vm3469_vm12, %v10560_v28, %v3853_v33  ;;  %v3855_v50 = vmul.f32 0.01, %v3655_v26 }
 0x604   : > { %5854 = vpow2.f32 %v3527_v46  ;;  %vm3473_vm8 = vcmp.gt.f32.partialorder %v8798_v20, 20.0  ;;  %v3669_v47 = vadd.f32 1.0, %v3668_v13  ;;  %v3701_v38 = vadd.f32 1.0, %v9008_v29 }
 0x605   : > { %5856 = vlog2.f32 %v3692_v41  ;;  %vm9023_vm9 = vcmp.lt.f32.partialorder %v3662_v8, 0.0004427343  ;;  %v3671_v60 = vand.u32 2147483647, %v8973_v63  ;;  %vm3474_vm1 = vcmp.gt.f32.partialorder %v8804_v40, 20.0 }
 0x606   : > { %v5843_v36 = vpop.eup %5842  ;;  %v3678_v49 = vadd.f32 1.0, %v3677_v32  ;;  %v3695_v30 = vmul.f32 -0.5, %v8998_v43  ;;  %v3886_v37 = vsel %vm3470_vm13, %v10563_v27, %v3854_v25  ;;  %v3687_v3 = vadd.f32 1.0, %v3686_v16  ;;  %v10572_v27 = vld [vmem:[#allocation19_spill] sm:$0xff] }
 0x607   : > { %v9030_v57 = vpop.eup %5844  ;;  %v3689_v6 = vand.u32 2147483647, %v8988_v31  ;;  %v3680_v59 = vand.u32 2147483647, %v8977_v39  ;;  %vm3471_vm3 = vcmp.gt.f32.partialorder %v10564_v56, 20.0  ;;  %v3661_v11 = vmul.f32 %v8956_v62, %v3660_v52 }
 0x608   : > { %v3658_v2 = vmul.f32 0.6931472, %v5843_v36  ;;  %vm3475_vm14 = vcmp.gt.f32.partialorder %v8937_v45, 20.0  ;;  %5858 = vpow2.f32 %v3531_v58  ;;  %v9039_v42 = vmul.f32 100.0, %v10565_v18  ;;  %v10571_v36 = vld [vmem:[#allocation14_spill] sm:$0xff] }
 0x609   : > { %v3670_v46 = vmul.f32 %v8973_v63, %v3669_v47  ;;  %v3698_v15 = vand.u32 2147483647, %v8998_v43  ;;  %5860 = vlog2.f32 %v3701_v38  ;;  %vm3472_vm4 = vcmp.gt.f32.partialorder %v10566_v48, 20.0  ;;  %v10576_v48 = vld [vmem:[#allocation21_spill] sm:$0xff] }
 0x60a   : > { %v5847_v61 = vpop.eup %5846  ;;  %vm3672_vm15 = vcmp.lt.f32.partialorder %v3671_v60, 0.0004427343  ;;  %v3679_v62 = vmul.f32 %v8977_v39, %v3678_v49  ;;  %v3696_v22 = vadd.f32 1.0, %v3695_v30  ;;  %v3688_v13 = vmul.f32 %v8988_v31, %v3687_v3 }
 0x60b   : > { %v5849_v21 = vpop.eup %5848  ;;  %v3667_v9 = vmul.f32 0.6931472, %v5847_v61  ;;  %vm9048_vm10 = vcmp.lt.f32.partialorder %v3689_v6, 0.0004427343  ;;  %vm3681_vm0 = vcmp.lt.f32.partialorder %v3680_v59, 0.0004427343  ;;  %v3664_v26 = vsel %vm9023_vm9, %v3661_v11, %v3658_v2 }
 0x60c   : > { %v9043_v23 = vpop.eup %5850  ;;  %v3676_v1 = vmul.f32 0.6931472, %v5849_v21  ;;  %vm9056_vm2 = vcmp.lt.f32.partialorder %v3698_v15, 0.0004427343  ;;  %v3719_v31 = vadd.f32 1.0, %v9030_v57  ;;  %v3697_v54 = vmul.f32 %v8998_v43, %v3696_v22  ;;  %v10573_v2 = vld [vmem:[#allocation25_spill] sm:$0xff] }
 0x60d   : > { %v5853_v4 = vpop.eup %5852  ;;  %v3673_v33 = vsel %vm3672_vm15, %v3670_v46, %v3667_v9  ;;  %v3737_v58 = vadd.f32 1.0, %v9043_v23  ;;  %v3856_v60 = vmul.f32 0.01, %v3664_v26  ;;  %v3704_v20 = vmul.f32 -0.5, %v9008_v29  ;;  %v10574_v21 = vld [vmem:[#allocation23_spill] sm:$0xff]  ;;  %v10575_v15 = vld [vmem:[#allocation26_spill] sm:$0xff] }
 0x60e   : > { %v9052_v63 = vpop.eup %5854  ;;  %v3857_v8 = vmul.f32 0.01, %v3673_v33  ;;  %v3685_v32 = vmul.f32 0.6931472, %v5853_v4  ;;  %v3682_v25 = vsel %vm3681_vm0, %v3679_v62, %v3676_v1  ;;  %v3887_v43 = vsel %vm3471_vm3, %v10573_v2, %v3855_v50 }
 0x60f   : > { %v5857_v16 = vpop.eup %5856  ;;  %v3858_v39 = vmul.f32 0.01, %v3682_v25  ;;  %v3710_v61 = vadd.f32 1.0, %v9052_v63  ;;  %5862 = vlog2.f32 %v3737_v58  ;;  %vm3476_vm6 = vcmp.gt.f32.partialorder %v8944_v55, 20.0  ;;  %v10579_v25 = vld [vmem:[#allocation15_spill] sm:$0xff] }
 0x610   : > { %v3889_v28 = vsel %vm3473_vm8, %v10571_v36, %v3857_v8  ;;  %v3691_v47 = vsel %vm9048_vm10, %v3688_v13, %v3685_v32  ;;  %v3694_v38 = vmul.f32 0.6931472, %v5857_v16  ;;  %5864 = vlog2.f32 %v3719_v31  ;;  %v10578_v8 = vld [vmem:[#allocation24_spill] sm:$0xff] }
 0x611   : > { %v5316_v49 = vpack.c.bf16 %v3889_v28, %v9019_v19  ;;  %v3859_v30 = vmul.f32 0.01, %v3691_v47  ;;  %v3890_v3 = vsel %vm3474_vm1, %v10572_v27, %v3858_v39  ;;  %v9086_v9 = vmul.f32 100.0, %v10574_v21 }
 0x612   : > { %v5314_v6 = vpack.c.bf16 %v3890_v3, %v3886_v37  ;;  %v3700_v59 = vsel %vm9056_vm2, %v3697_v54, %v3694_v38  ;;  %v9082_v40 = vpop.eup %5858  ;;  %v3888_v50 = vsel %vm3472_vm4, %v10575_v15, %v3856_v60  ;;  %v3537_v56 = vmul.f32 1.442695, %v9039_v42  ;;  %v10582_v3 = vld [vmem:[#allocation13_spill] sm:$0xff]  ;;  %v10584_v15 = vld [vmem:[#allocation20_spill] sm:$0xff] }
 0x613   : > { %v3891_v19 = vsel %vm3475_vm14, %v8760_v53, %v3859_v30  ;;  %v3860_v11 = vmul.f32 0.01, %v3700_v59  ;;  %v5861_v46 = vpop.eup %5860  ;;  %v3740_v53 = vmul.f32 -0.5, %v9043_v23  ;;  %v3705_v62 = vadd.f32 1.0, %v3704_v20  ;;  %v10583_v59 = vld [vmem:[#allocation28_spill] sm:$0xff] }
 0x614   : > { %v5332_v37 = vpack.c.bf16 %v3891_v19, %v3887_v43  ;;  %5315 = vmatprep.subr.bf16.mxu0 %v5314_v6  ;;  %5866 = vlog2.f32 %v3710_v61  ;;  %v3707_v55 = vand.u32 2147483647, %v9008_v29  ;;  %v3728_v22 = vadd.f32 1.0, %v9082_v40 }
 0x615   : > { %v3892_v45 = vsel %vm3476_vm6, %v8769_v17, %v3860_v11  ;;  %5317 = vmatpush1.bf16.msra.mxu0 %v5316_v49  ;;  %5868 = vpow2.f32 %v3537_v56  ;;  %v3703_v4 = vmul.f32 0.6931472, %v5861_v46  ;;  %v3535_v33 = vmul.f32 1.442695, %v9086_v9  ;;  %v10577_v17 = vld [vmem:[#allocation16_spill] sm:$0xff] }
 0x616   : > { %v5330_v1 = vpack.c.bf16 %v3892_v45, %v3888_v50  ;;  %v9098_v13 = vmul.f32 100.0, %v10576_v48  ;;  %v9101_v41 = vmul.f32 100.0, %v10577_v17  ;;  %v3741_v26 = vadd.f32 1.0, %v3740_v53 }
 0x617   : > { %v9104_v32 = vmul.f32 100.0, %v10578_v8  ;;  %v9107_v16 = vmul.f32 100.0, %v10579_v25  ;;  %v3706_v39 = vmul.f32 %v9008_v29, %v3705_v62  ;;  %5870 = vpow2.f32 %v3535_v33 }
 0x618   : > { %5331 = vmatprep.subr.bf16.mxu1 %v5330_v1  ;;  %vm9110_vm11 = vcmp.lt.f32.partialorder %v3707_v55, 0.0004427343  ;;  %5872 = vlog2.f32 %v3728_v22  ;;  %v3743_v31 = vand.u32 2147483647, %v9043_v23  ;;  %v3539_v58 = vmul.f32 1.442695, %v9098_v13 }
 0x619   : > { %5333 = vmatpush1.bf16.msra.mxu1 %v5332_v37  ;;  %v3709_v36 = vsel %vm9110_vm11, %v3706_v39, %v3703_v4  ;;  %v3722_v28 = vmul.f32 -0.5, %v9030_v57  ;;  %v3541_v47 = vmul.f32 1.442695, %v9101_v41  ;;  %v3545_v38 = vmul.f32 1.442695, %v9104_v32  ;;  %v5863_v29 = vpop.eup %5862 }
 0x61a   : > { %v3713_v54 = vmul.f32 -0.5, %v9052_v63  ;;  %v3742_v60 = vmul.f32 %v9043_v23, %v3741_v26  ;;  %5874 = vpow2.f32 %v3539_v58  ;;  %v3543_v49 = vmul.f32 1.442695, %v9107_v16  ;;  %v5865_v30 = vpop.eup %5864 }
 0x61b   : > { %v3739_v27 = vmul.f32 0.6931472, %v5863_v29  ;;  %5876 = vpow2.f32 %v3541_v47  ;;  %v9125_v6 = vmul.f32 100.0, %v10582_v3  ;;  %v9128_v20 = vmul.f32 100.0, %v10583_v59 }
 0x61c   : > { %vm3477_vm5 = vcmp.gt.f32.partialorder %v8948_v51, 20.0  ;;  %v3861_v61 = vmul.f32 0.01, %v3709_v36  ;;  %vm3744_vm12 = vcmp.lt.f32.partialorder %v3743_v31, 0.0004427343  ;;  %5878 = vpow2.f32 %v3545_v38 }
 0x61d   : > { %v3723_v43 = vadd.f32 1.0, %v3722_v28  ;;  %v3745_v23 = vsel %vm3744_vm12, %v3742_v60, %v3739_v27  ;;  %5880 = vpow2.f32 %v3543_v49  ;;  %v3549_v19 = vmul.f32 1.442695, %v9125_v6  ;;  %v10589_v60 = vld [vmem:[#allocation18_spill] sm:$0xff] }
 0x61e   : > { %v5867_v2 = vpop.eup %5866  ;;  %v3731_v37 = vmul.f32 -0.5, %v9082_v40  ;;  %vm3481_vm13 = vcmp.gt.f32.partialorder %v8971_v24, 20.0  ;;  %v3865_v46 = vmul.f32 0.01, %v3745_v23  ;;  %v9137_v50 = vmul.f32 100.0, %v10584_v15 }
 0x61f   : > { %v9132_v11 = vpop.eup %5868  ;;  %v3725_v45 = vand.u32 2147483647, %v9030_v57  ;;  %v3714_v53 = vadd.f32 1.0, %v3713_v54  ;;  %v3553_v1 = vmul.f32 1.442695, %v9128_v20  ;;  %v9145_v62 = vsel %vm3477_vm5, %v8762_v0, %v3861_v61 }
 0x620   : > { %v3755_v56 = vadd.f32 1.0, %v9132_v11  ;;  %v3721_v55 = vmul.f32 0.6931472, %v5865_v30  ;;  %v9148_v22 = vsel %vm3481_vm13, %v8781_v10, %v3865_v46  ;;  %5882 = vpow2.f32 %v3549_v19 }
 0x621   : > { %v9150_v24 = vpop.eup %5870  ;;  %v3724_v4 = vmul.f32 %v9030_v57, %v3723_v43  ;;  %v3716_v33 = vand.u32 2147483647, %v9052_v63  ;;  %v5320_v26 = vpack.c.bf16 %v9148_v22, %v9145_v62  ;;  %v3712_v52 = vmul.f32 0.6931472, %v5867_v2 }
 0x622   : > { %5884 = vlog2.f32 %v3755_v56  ;;  %v5873_v39 = vpop.eup %5872  ;;  %v3732_v51 = vadd.f32 1.0, %v3731_v37  ;;  %v3746_v0 = vadd.f32 1.0, %v9150_v24  ;;  %v3551_v31 = vmul.f32 1.442695, %v9137_v50 }
 0x623   : > { %vm3479_vm8 = vcmp.gt.f32.partialorder %v8954_v12, 20.0  ;;  %vm9159_vm9 = vcmp.lt.f32.partialorder %v3725_v45, 0.0004427343  ;;  %v3715_v57 = vmul.f32 %v9052_v63, %v3714_v53  ;;  %5886 = vpow2.f32 %v3553_v1 }
 0x624   : > { %v9164_v58 = vpop.eup %5874  ;;  %v3727_v36 = vsel %vm9159_vm9, %v3724_v4, %v3721_v55  ;;  %v3734_v28 = vand.u32 2147483647, %v9082_v40  ;;  %v3758_v47 = vmul.f32 -0.5, %v9132_v11  ;;  %5888 = vlog2.f32 %v3746_v0 }
 0x625   : > { %v9170_v38 = vpop.eup %5876  ;;  %vm9172_vm1 = vcmp.lt.f32.partialorder %v3716_v33, 0.0004427343  ;;  %v3730_v54 = vmul.f32 0.6931472, %v5873_v39  ;;  %v3764_v63 = vadd.f32 1.0, %v9164_v58  ;;  %v9178_v49 = vmul.f32 100.0, %v10589_v60 }
 0x626   : > { %v9180_v30 = vpop.eup %5878  ;;  %v3718_v27 = vsel %vm9172_vm1, %v3715_v57, %v3712_v52  ;;  %v3733_v61 = vmul.f32 %v9082_v40, %v3732_v51  ;;  %v3773_v2 = vadd.f32 1.0, %v9170_v38  ;;  %5890 = vpow2.f32 %v3551_v31 }
 0x627   : > { %v9186_v43 = vpop.eup %5880  ;;  %v3863_v23 = vmul.f32 0.01, %v3727_v36  ;;  %v3749_v19 = vmul.f32 -0.5, %v9150_v24  ;;  %5892 = vlog2.f32 %v3764_v63  ;;  %v3791_v37 = vadd.f32 1.0, %v9180_v30 }
 0x628   : > { %vm3478_vm3 = vcmp.gt.f32.partialorder %v8968_v44, 20.0  ;;  %vm9191_vm14 = vcmp.lt.f32.partialorder %v3734_v28, 0.0004427343  ;;  %v3759_v45 = vadd.f32 1.0, %v3758_v47  ;;  %5894 = vlog2.f32 %v3773_v2 }
 0x629   : > { %v3862_v40 = vmul.f32 0.01, %v3718_v27  ;;  %v3736_v53 = vsel %vm9191_vm14, %v3733_v61, %v3730_v54  ;;  %v3761_v56 = vand.u32 2147483647, %v9132_v11  ;;  %v3547_v1 = vmul.f32 1.442695, %v9178_v49 }
 0x62a   : > { %v9199_v55 = vpop.eup %5882  ;;  %vm3480_vm4 = vcmp.gt.f32.partialorder %v9004_v35, 20.0  ;;  %vm3483_vm15 = vcmp.gt.f32.partialorder %v9039_v42, 20.0  ;;  %v3767_v4 = vmul.f32 -0.5, %v9164_v58  ;;  %v3782_v33 = vadd.f32 1.0, %v9186_v43 }
 0x62b   : > { %v9208_v52 = vsel %vm3479_vm8, %v8779_v5, %v3863_v23  ;;  %vm3482_vm10 = vcmp.gt.f32.partialorder %v9086_v9, 20.0  ;;  %v3750_v51 = vadd.f32 1.0, %v3749_v19  ;;  %5896 = vlog2.f32 %v3791_v37 }
 0x62c   : > { %v5885_v39 = vpop.eup %5884  ;;  %v3864_v0 = vmul.f32 0.01, %v3736_v53  ;;  %v3760_v10 = vmul.f32 %v9132_v11, %v3759_v45  ;;  %v3752_v57 = vand.u32 2147483647, %v9150_v24  ;;  %v3894_v28 = vsel %vm3478_vm3, %v8771_v34, %v3862_v40 }
 0x62d   : > { %v3757_v31 = vmul.f32 0.6931472, %v5885_v39  ;;  %v9213_v36 = vpop.eup %5886  ;;  %vm3762_vm0 = vcmp.lt.f32.partialorder %v3761_v56, 0.0004427343  ;;  %5898 = vpow2.f32 %v3547_v1  ;;  %v3809_v5 = vadd.f32 1.0, %v9199_v55 }
 0x62e   : > { %v5889_v12 = vpop.eup %5888  ;;  %vm3484_vm2 = vcmp.gt.f32.partialorder %v9098_v13, 20.0  ;;  %v3768_v29 = vadd.f32 1.0, %v3767_v4  ;;  %v3770_v54 = vand.u32 2147483647, %v9164_v58  ;;  %5900 = vlog2.f32 %v3782_v33 }
 0x62f   : > { %v3763_v47 = vsel %vm3762_vm0, %v3760_v10, %v3757_v31  ;;  %v3748_v63 = vmul.f32 0.6931472, %v5889_v12  ;;  %v3751_v27 = vmul.f32 %v9150_v24, %v3750_v51  ;;  %v3776_v61 = vmul.f32 -0.5, %v9170_v38 }
 0x630   : > { %v3867_v11 = vmul.f32 0.01, %v3763_v47  ;;  %v9223_v44 = vpop.eup %5890  ;;  %v3896_v34 = vsel %vm3480_vm4, %v8787_v7, %v3864_v0  ;;  %vm3753_vm6 = vcmp.lt.f32.partialorder %v3752_v57, 0.0004427343  ;;  %5902 = vlog2.f32 %v3809_v5 }
 0x631   : > { %v3827_v2 = vadd.f32 1.0, %v9213_v36  ;;  %v5893_v23 = vpop.eup %5892  ;;  %v3754_v37 = vsel %vm3753_vm6, %v3751_v27, %v3748_v63  ;;  %v3779_v24 = vand.u32 2147483647, %v9170_v38  ;;  %v3794_v46 = vmul.f32 -0.5, %v9180_v30 }
 0x632   : > { %v3899_v19 = vsel %vm3483_vm15, %v10565_v18, %v3867_v11  ;;  %v5895_v45 = vpop.eup %5894  ;;  %v3866_v53 = vmul.f32 0.01, %v3754_v37  ;;  %v3766_v35 = vmul.f32 0.6931472, %v5893_v23  ;;  %v3769_v7 = vmul.f32 %v9164_v58, %v3768_v29 }
 0x633   : > { %v5336_v40 = vpack.c.bf16 %v3899_v19, %v9208_v52  ;;  %vm3771_vm11 = vcmp.lt.f32.partialorder %v3770_v54, 0.0004427343  ;;  %v3777_v56 = vadd.f32 1.0, %v3776_v61  ;;  %v3812_v1 = vmul.f32 -0.5, %v9199_v55 }
 0x634   : > { %5904 = vlog2.f32 %v3827_v2  ;;  %v3898_v18 = vsel %vm3482_vm10, %v10574_v21, %v3866_v53  ;;  %v3772_v42 = vsel %vm3771_vm11, %v3769_v7, %v3766_v35  ;;  %v3797_v4 = vand.u32 2147483647, %v9180_v30 }
 0x635   : > { %v3818_v33 = vadd.f32 1.0, %v9223_v44  ;;  %v5897_v39 = vpop.eup %5896  ;;  %v5318_v52 = vpack.c.bf16 %v3898_v18, %v3894_v28  ;;  %v3868_v51 = vmul.f32 0.01, %v3772_v42  ;;  %v3775_v0 = vmul.f32 0.6931472, %v5895_v45 }
 0x636   : > { %v3785_v58 = vmul.f32 -0.5, %v9186_v43  ;;  %v3795_v31 = vadd.f32 1.0, %v3794_v46  ;;  %v3830_v10 = vmul.f32 -0.5, %v9213_v36  ;;  %v9245_v57 = vmul.f32 100.0, %v8877_v14 }
 0x637   : > { %5906 = vlog2.f32 %v3818_v33  ;;  %v9247_v9 = vpop.eup %5898  ;;  %v3900_v21 = vsel %vm3484_vm2, %v10576_v48, %v3868_v51  ;;  %vm3485_vm5 = vcmp.gt.f32.partialorder %v9101_v41, 20.0  ;;  %v3778_v28 = vmul.f32 %v9170_v38, %v3777_v56  ;;  %5319 = vmatprep.subr.bf16.mxu0 %v5318_v52 }
 0x638   : > { %vm9254_vm12 = vcmp.lt.f32.partialorder %v3779_v24, 0.0004427343  ;;  %v3813_v12 = vadd.f32 1.0, %v3812_v1  ;;  %v5901_v47 = vpop.eup %5900  ;;  %v5334_v29 = vpack.c.bf16 %v3900_v21, %v3896_v34  ;;  %v3793_v54 = vmul.f32 0.6931472, %v5897_v39  ;;  %5321 = vmatpush1.bf16.msra.mxu0 %v5320_v26 }
 0x639   : > { %v3788_v11 = vand.u32 2147483647, %v9186_v43  ;;  %v3815_v63 = vand.u32 2147483647, %v9199_v55  ;;  %v3781_v48 = vsel %vm9254_vm12, %v3778_v28, %v3775_v0  ;;  %vm9265_vm13 = vcmp.lt.f32.partialorder %v3797_v4, 0.0004427343 }
 0x63a   : > { %v3786_v38 = vadd.f32 1.0, %v3785_v58  ;;  %v3821_v27 = vmul.f32 -0.5, %v9223_v44  ;;  %v5903_v61 = vpop.eup %5902  ;;  %v3796_v34 = vmul.f32 %v9180_v30, %v3795_v31  ;;  %v3800_v2 = vadd.f32 1.0, %v9247_v9  ;;  %5335 = vmatprep.subr.bf16.mxu1 %v5334_v29 }
 0x63b   : > { %v3831_v23 = vadd.f32 1.0, %v3830_v10  ;;  %v3555_v19 = vmul.f32 1.442695, %v9245_v57  ;;  %v3784_v62 = vmul.f32 0.6931472, %v5901_v47  ;;  %v3814_v26 = vmul.f32 %v9199_v55, %v3813_v12  ;;  %5337 = vmatpush1.bf16.msra.mxu1 %v5336_v40 }
 0x63c   : > { %v3811_v22 = vmul.f32 0.6931472, %v5903_v61  ;;  %v3833_v37 = vand.u32 2147483647, %v9213_v36  ;;  %v3869_v24 = vmul.f32 0.01, %v3781_v48  ;;  %v3799_v46 = vsel %vm9265_vm13, %v3796_v34, %v3793_v54 }
 0x63d   : > { %vm3816_vm8 = vcmp.lt.f32.partialorder %v3815_v63, 0.0004427343  ;;  %5908 = vpow2.f32 %v3555_v19  ;;  %v3787_v45 = vmul.f32 %v9186_v43, %v3786_v38  ;;  %vm9278_vm9 = vcmp.lt.f32.partialorder %v3788_v11, 0.0004427343  ;;  %v3911_v63 = vld [vmem:[#allocation5 + $0x110] sm:$0xff] }
 0x63e   : > { %v5905_v30 = vpop.eup %5904  ;;  %v3817_v35 = vsel %vm3816_vm8, %v3814_v26, %v3811_v22  ;;  %v3822_v7 = vadd.f32 1.0, %v3821_v27  ;;  %v3832_v1 = vmul.f32 %v9213_v36, %v3831_v23  ;;  %v3824_v40 = vand.u32 2147483647, %v9223_v44  ;;  %v3914_v22 = vld [vmem:[#allocation5 + $0x128] sm:$0xff] }
 0x63f   : > { %v3873_v56 = vmul.f32 0.01, %v3817_v35  ;;  %v3829_v55 = vmul.f32 0.6931472, %v5905_v30  ;;  %v3871_v18 = vmul.f32 0.01, %v3799_v46  ;;  %v3790_v42 = vsel %vm9278_vm9, %v3787_v45, %v3784_v62  ;;  %v9347_v46 = vpop.permute.xlu0 %3932 }
 0x640   : > { %vm3489_vm1 = vcmp.gt.f32.partialorder %v9125_v6, 20.0  ;;  %vm3834_vm3 = vcmp.lt.f32.partialorder %v3833_v37, 0.0004427343  ;;  %v3901_v4 = vsel %vm3485_vm5, %v10577_v17, %v3869_v24  ;;  %5910 = vlog2.f32 %v3800_v2  ;;  %v3913_v62 = vld [vmem:[#allocation5 + $0x120] sm:$0xff] }
 0x641   : > { %v5907_v43 = vpop.eup %5906  ;;  %v3905_v33 = vsel %vm3489_vm1, %v10582_v3, %v3873_v56  ;;  %v3835_v39 = vsel %vm3834_vm3, %v3832_v1, %v3829_v55  ;;  %v3823_v0 = vmul.f32 %v9223_v44, %v3822_v7  ;;  %vm3487_vm14 = vcmp.gt.f32.partialorder %v9104_v32, 20.0 }
 0x642   : > { %v5324_v52 = vpack.c.bf16 %v3905_v33, %v3901_v4  ;;  %v3875_v36 = vmul.f32 0.01, %v3835_v39  ;;  %v3820_v51 = vmul.f32 0.6931472, %v5907_v43  ;;  %v3870_v58 = vmul.f32 0.01, %v3790_v42 }
 0x643   : > { %vm3491_vm4 = vcmp.gt.f32.partialorder %v9128_v20, 20.0  ;;  %vm3825_vm15 = vcmp.lt.f32.partialorder %v3824_v40, 0.0004427343  ;;  %v3903_v6 = vsel %vm3487_vm14, %v10578_v8, %v3871_v18  ;;  %vm3486_vm10 = vcmp.gt.f32.partialorder %v9107_v16, 20.0  ;;  %v9365_v43 = vpop.permute.xlu0 %3942 }
 0x644   : > { %v3907_v41 = vsel %vm3491_vm4, %v10583_v59, %v3875_v36  ;;  %v3826_v17 = vsel %vm3825_vm15, %v3823_v0, %v3820_v51  ;;  %vm3490_vm0 = vcmp.gt.f32.partialorder %v9137_v50, 20.0  ;;  %v3902_v44 = vsel %vm3486_vm10, %v10579_v25, %v3870_v58  ;;  %v3909_v59 = vld [vmem:[#allocation5 + $0x100] sm:$0xff]  ;;  %v3910_v25 = vld [vmem:[#allocation5 + $0x108] sm:$0xff] }
 0x645   : > { %v5340_v31 = vpack.c.bf16 %v3907_v41, %v3903_v6  ;;  %v3874_v10 = vmul.f32 0.01, %v3826_v17  ;;  %v3803_v20 = vmul.f32 -0.5, %v9247_v9  ;;  %v3806_v16 = vand.u32 2147483647, %v9247_v9 }
 0x646   : > { %v10598_v47 = vmov 0.0   ;;  %vm3488_vm11 = vcmp.gt.f32.partialorder %v9178_v49, 20.0  ;;  %vm3492_vm5 = vcmp.gt.f32.partialorder %v9245_v57, 20.0  ;;  %v9339_v49 = vpop.permute.xlu1 %3927 }
 0x647   : > { %v5909_v3 = vpop.eup %5908  ;;  %v3906_v32 = vsel %vm3490_vm0, %v10584_v15, %v3874_v10  ;;  %v3804_v5 = vadd.f32 1.0, %v3803_v20  ;;  %vm3807_vm2 = vcmp.lt.f32.partialorder %v3806_v16, 0.0004427343 }
 0x648   : > { %v5322_v21 = vpack.c.bf16 %v3906_v32, %v3902_v44  ;;  %v3836_v28 = vadd.f32 1.0, %v5909_v3  ;;  %v3839_v12 = vmul.f32 -0.5, %v5909_v3  ;;  %v3842_v54 = vand.u32 2147483647, %v5909_v3 }
 0x649   : > { %v3805_v15 = vmul.f32 %v9247_v9, %v3804_v5  ;;  %v3912_v9 = vld [vmem:[#allocation5 + $0x118] sm:$0xff] }
 0x64a   : > { %5912 = vlog2.f32 %v3836_v28  ;;  %5323 = vmatprep.subr.bf16.mxu0 %v5322_v21  ;;  %v5911_v8 = vpop.eup %5910  ;;  %v3840_v29 = vadd.f32 1.0, %v3839_v12  ;;  %vm3843_vm6 = vcmp.lt.f32.partialorder %v3842_v54, 0.0004427343  ;;  %v9356_v56 = vpop.permute.xlu1 %3937 }
 0x64b   : > { %5325 = vmatpush1.bf16.msra.mxu0 %v5324_v52  ;;  %v3802_v50 = vmul.f32 0.6931472, %v5911_v8 }
 0x64c   : > { %v3841_v38 = vmul.f32 %v5909_v3, %v3840_v29 }
 0x64d   : > { %v3808_v11 = vsel %vm3807_vm2, %v3805_v15, %v3802_v50 }
 0x64e   : > { %5190 = vmatmul.mubr.msk.f32.vlgmr.msra.gmra.mrb[48].mxu0 %vm2393_vm7, %v3909_v59  ;;  %v3872_v27 = vmul.f32 0.01, %v3808_v11  ;;  %v9383_v10 = vpop.permute.xlu1 %3947 }
 0x64f   : > { %4059 = vmatprep.mubr.f32.mxu0 %v10598_v47 }
 0x650   : > { %v3904_v2 = vsel %vm3488_vm11, %v10589_v60, %v3872_v27  ;;  %v3916_v60 = vld [vmem:[#allocation5 + $0x138] sm:$0xff] }
 0x652   : > { %5191 = vmatmul.mubr.msk.f32.gmra.mrb[50].mxu0 %vm2393_vm7, %v3910_v25 }
 0x653   : > { %4065 = vmatprep.mubr.f32.mxu0 %v10598_v47 }
 0x654   : > { %v5913_v48 = vpop.eup %5912 }
 0x655   : > { %v3838_v13 = vmul.f32 0.6931472, %v5913_v48 }
 0x656   : > { %5192 = vmatmul.mubr.msk.f32.gmra.mrb[52].mxu0 %vm2393_vm7, %v3911_v63 }
 0x657   : > { %v3844_v61 = vsel %vm3843_vm6, %v3841_v38, %v3838_v13  ;;  %4071 = vmatprep.mubr.f32.mxu0 %v10598_v47 }
 0x658   : > { %v3876_v34 = vmul.f32 0.01, %v3844_v61 }
 0x65a   : > { %v3908_v23 = vsel %vm3492_vm5, %v8877_v14, %v3876_v34  ;;  %5193 = vmatmul.mubr.msk.f32.gmra.mrb[54].mxu0 %vm2393_vm7, %v3912_v9  ;;  %v3915_v14 = vld [vmem:[#allocation5 + $0x130] sm:$0xff] }
 0x65b   : > { %v5338_v19 = vpack.c.bf16 %v3908_v23, %v3904_v2  ;;  %4077 = vmatprep.mubr.f32.mxu0 %v10598_v47 }
 0x65d   : > { %5339 = vmatprep.subr.bf16.mxu1 %v5338_v19 }
 0x65e   : > { %5341 = vmatpush1.bf16.msra.mxu1 %v5340_v31  ;;  %5194 = vmatmul.mubr.msk.f32.gmra.mrb[56].mxu0 %vm2393_vm7, %v3913_v62 }
 0x65f   : > { %4083 = vmatprep.mubr.f32.mxu0 %v10598_v47 }
 0x661   : > { %5198 = vmatmul.mubr.msk.f32.vlgmr.msra.gmra.mrb[48].mxu1 %vm2393_vm7, %v3909_v59 }
 0x662   : > { %4172 = vmatprep.mubr.f32.mxu1 %v10598_v47  ;;  %5195 = vmatmul.mubr.msk.f32.gmra.mrb[58].mxu0 %vm2393_vm7, %v3914_v22 }
 0x663   : > { %4089 = vmatprep.mubr.f32.mxu0 %v10598_v47 }
 0x665   : > { %5199 = vmatmul.mubr.msk.f32.gmra.mrb[50].mxu1 %vm2393_vm7, %v3910_v25 }
 0x666   : > { %4178 = vmatprep.mubr.f32.mxu1 %v10598_v47  ;;  %5196 = vmatmul.mubr.msk.f32.gmra.mrb[60].mxu0 %vm2393_vm7, %v3915_v14 }
 0x667   : > { %4095 = vmatprep.mubr.f32.mxu0 %v10598_v47 }
 0x669   : > { %5200 = vmatmul.mubr.msk.f32.gmra.mrb[52].mxu1 %vm2393_vm7, %v3911_v63 }
 0x66a   : > { %4184 = vmatprep.mubr.f32.mxu1 %v10598_v47  ;;  %5197 = vmatmul.mubr.msk.f32.gmra.mrb[62].mxu0 %vm2393_vm7, %v3916_v60 }
 0x66b   : > { %4809 = vmatprep.mubr.f32.mxu0 %v10598_v47 }
 0x66d   : > { %5201 = vmatmul.mubr.msk.f32.gmra.mrb[54].mxu1 %vm2393_vm7, %v3912_v9 }
 0x66e   : > { %4190 = vmatprep.mubr.f32.mxu1 %v10598_v47 }
 0x671   : > { %5202 = vmatmul.mubr.msk.f32.gmra.mrb[56].mxu1 %vm2393_vm7, %v3913_v62 }
 0x672   : > { %4196 = vmatprep.mubr.f32.mxu1 %v10598_v47 }
 0x675   : > { %5203 = vmatmul.mubr.msk.f32.gmra.mrb[58].mxu1 %vm2393_vm7, %v3914_v22 }
 0x676   : > { %4202 = vmatprep.mubr.f32.mxu1 %v10598_v47 }
 0x679   : > { %5204 = vmatmul.mubr.msk.f32.gmra.mrb[60].mxu1 %vm2393_vm7, %v3915_v14 }
 0x67a   : > { %4208 = vmatprep.mubr.f32.mxu1 %v10598_v47 }
 0x67d   : > { %5205 = vmatmul.mubr.msk.f32.gmra.mrb[62].mxu1 %vm2393_vm7, %v3916_v60 }
 0x67e   : > { %4904 = vmatprep.mubr.f32.mxu1 %v10598_v47 }
 0x721   : > { %v4055_v57 = vpop.f32.mrb[48].mxu0 }
 0x722   : > { %v9342_v26 = vadd.f32 %v4055_v57, %v9339_v49  ;;  %v4057_v37 = vpop.f32.mrb[49].mxu0 }
 0x723   : > { %v9372_v36 = vadd.f32 %v4057_v37, %v9339_v49 }
 0x724   : > { %v9345_v24 = vmul.f32 100.0, %v9342_v26 }
 0x725   : > { %v4061_v30 = vpop.f32.mrb[50].mxu0  ;;  %v9386_v44 = vmul.f32 100.0, %v9372_v36 }
 0x726   : > { %v4279_v45 = vmul.f32 1.442695, %v9345_v24  ;;  %v9351_v53 = vadd.f32 %v4061_v30, %v9347_v46  ;;  %v4063_v35 = vpop.f32.mrb[51].mxu0  ;;  %vm4247_vm13 = vcmp.gt.f32.partialorder %v9345_v24, 20.0 }
 0x727   : > { %v9378_v6 = vadd.f32 %v4063_v35, %v9347_v46  ;;  %v4281_v15 = vmul.f32 1.442695, %v9386_v44 }
 0x728   : > { %5914 = vpow2.f32 %v4279_v45  ;;  %v9354_v7 = vmul.f32 100.0, %v9351_v53 }
 0x729   : > { %v4067_v55 = vpop.f32.mrb[52].mxu0  ;;  %v9399_v59 = vmul.f32 100.0, %v9378_v6 }
 0x72a   : > { %v4287_v1 = vmul.f32 1.442695, %v9354_v7  ;;  %v9360_v40 = vadd.f32 %v4067_v55, %v9356_v56  ;;  %v4069_v18 = vpop.f32.mrb[53].mxu0  ;;  %vm4251_vm8 = vcmp.gt.f32.partialorder %v9354_v7, 20.0 }
 0x72b   : > { %v9402_v5 = vadd.f32 %v4069_v18, %v9356_v56  ;;  %v4289_v27 = vmul.f32 1.442695, %v9399_v59 }
 0x72c   : > { %5916 = vpow2.f32 %v4287_v1  ;;  %v9363_v42 = vmul.f32 100.0, %v9360_v40 }
 0x72d   : > { %v4073_v4 = vpop.f32.mrb[54].mxu0  ;;  %10599 = vst [vmem:[#allocation11_spill] sm:$0xff] %v9402_v5  ;;  %v9424_v61 = vmul.f32 100.0, %v9402_v5 }
 0x72e   : > { %v4295_v33 = vmul.f32 1.442695, %v9363_v42  ;;  %v9369_v39 = vadd.f32 %v4073_v4, %v9365_v43  ;;  %v4075_v52 = vpop.f32.mrb[55].mxu0  ;;  %vm4255_vm1 = vcmp.gt.f32.partialorder %v9363_v42, 20.0 }
 0x72f   : > { %10600 = vst [vmem:[#allocation12_spill] sm:$0xff] %v9424_v61  ;;  %v9427_v9 = vadd.f32 %v4075_v52, %v9365_v43  ;;  %v4297_v55 = vmul.f32 1.442695, %v9424_v61  ;;  %v9569_v61 = vpop.permute.xlu0 %3952 }
 0x730   : > { %5918 = vpow2.f32 %v4295_v33  ;;  %v9375_v51 = vmul.f32 100.0, %v9369_v39 }
 0x731   : > { %v4079_v0 = vpop.f32.mrb[56].mxu0  ;;  %10601 = vst [vmem:[#allocation22_spill] sm:$0xff] %v9427_v9  ;;  %v9454_v52 = vmul.f32 100.0, %v9427_v9 }
 0x732   : > { %v5915_v58 = vpop.eup %5914  ;;  %v4303_v41 = vmul.f32 1.442695, %v9375_v51  ;;  %v9381_v17 = vpop.f32.mrb[57].mxu0  ;;  %v9392_v28 = vadd.f32 %v4079_v0, %v9383_v10  ;;  %vm4259_vm14 = vcmp.gt.f32.partialorder %v9375_v51, 20.0 }
 0x733   : > { %v4343_v31 = vadd.f32 1.0, %v5915_v58  ;;  %v4346_v16 = vmul.f32 -0.5, %v5915_v58  ;;  %v4349_v23 = vand.u32 2147483647, %v5915_v58  ;;  %10604 = vst [vmem:[#allocation17_spill] sm:$0xff] %v9454_v52 }
 0x734   : > { %v4168_v3 = vpop.f32.mrb[48].mxu1  ;;  %5920 = vpow2.f32 %v4303_v41  ;;  %v9413_v63 = vmul.f32 100.0, %v9392_v28 }
 0x735   : > { %5922 = vlog2.f32 %v4343_v31  ;;  %v9389_v32 = vadd.f32 %v4168_v3, %v9339_v49  ;;  %v4170_v21 = vpop.f32.mrb[49].mxu1  ;;  %v9394_v20 = vpop.f32.mrb[58].mxu0  ;;  %v4347_v2 = vadd.f32 1.0, %v4346_v16  ;;  %vm9446_vm12 = vcmp.lt.f32.partialorder %v4349_v23, 0.0004427343 }
 0x736   : > { %v9396_v8 = vpop.eup %5916  ;;  %v9404_v12 = vpop.f32.mrb[59].mxu0  ;;  %v4311_v37 = vmul.f32 1.442695, %v9413_v63  ;;  %v4305_v23 = vmul.f32 1.442695, %v9454_v52 }
 0x737   : > { %v9407_v50 = vmul.f32 100.0, %v9389_v32  ;;  %v4379_v25 = vadd.f32 1.0, %v9396_v8  ;;  %v4382_v62 = vmul.f32 -0.5, %v9396_v8  ;;  %v4348_v18 = vmul.f32 %v5915_v58, %v4347_v2 }
 0x738   : > { %v4174_v29 = vpop.f32.mrb[50].mxu1  ;;  %v4385_v58 = vand.u32 2147483647, %v9396_v8  ;;  %v9468_v2 = vadd.f32 %v4170_v21, %v9339_v49 }
 0x739   : > { %v4283_v54 = vmul.f32 1.442695, %v9407_v50  ;;  %5924 = vlog2.f32 %v4379_v25  ;;  %v4176_v11 = vpop.f32.mrb[51].mxu1  ;;  %v9415_v48 = vpop.f32.mrb[60].mxu0  ;;  %v9420_v38 = vadd.f32 %v4174_v29, %v9347_v46  ;;  %v4383_v31 = vadd.f32 1.0, %v4382_v62 }
 0x73a   : > { %v9417_v13 = vpop.eup %5918  ;;  %v9429_v34 = vpop.f32.mrb[61].mxu0  ;;  %10605 = vst [vmem:[#allocation27_spill] sm:$0xff] %v9468_v2  ;;  %vm4386_vm9 = vcmp.lt.f32.partialorder %v4385_v58, 0.0004427343  ;;  %vm4249_vm10 = vcmp.gt.f32.partialorder %v9407_v50, 20.0 }
 0x73b   : > { %5926 = vpow2.f32 %v4283_v54  ;;  %v4415_v19 = vadd.f32 1.0, %v9417_v13  ;;  %v9434_v22 = vmul.f32 100.0, %v9420_v38  ;;  %v4418_v25 = vmul.f32 -0.5, %v9417_v13 }
 0x73c   : > { %5928 = vpow2.f32 %v4281_v15  ;;  %v4180_v14 = vpop.f32.mrb[52].mxu1  ;;  %v4384_v62 = vmul.f32 %v9396_v8, %v4383_v31 }
 0x73d   : > { %5930 = vlog2.f32 %v4415_v19  ;;  %v9437_v60 = vadd.f32 %v4180_v14, %v9356_v56  ;;  %v4182_v57 = vpop.f32.mrb[53].mxu1  ;;  %v9440_v30 = vpop.f32.mrb[62].mxu0  ;;  %v4291_v35 = vmul.f32 1.442695, %v9434_v22  ;;  %v9474_v14 = vadd.f32 %v4176_v11, %v9347_v46 }
 0x73e   : > { %v9442_v45 = vpop.eup %5920  ;;  %5932 = vpow2.f32 %v4289_v27  ;;  %v9456_v0 = vpop.f32.mrb[63].mxu0  ;;  %v4419_v49 = vadd.f32 1.0, %v4418_v25  ;;  %v4421_v46 = vand.u32 2147483647, %v9417_v13  ;;  %vm4253_vm0 = vcmp.gt.f32.partialorder %v9434_v22, 20.0 }
 0x73f   : > { %v5923_v1 = vpop.eup %5922  ;;  %v9451_v33 = vmul.f32 100.0, %v9437_v60  ;;  %5934 = vpow2.f32 %v4291_v35  ;;  %v4451_v3 = vadd.f32 1.0, %v9442_v45  ;;  %10606 = vst [vmem:[#allocation14_spill] sm:$0xff] %v9474_v14  ;;  %v4454_v11 = vmul.f32 -0.5, %v9442_v45 }
 0x740   : > { %v4345_v41 = vmul.f32 0.6931472, %v5923_v1  ;;  %v4186_v16 = vpop.f32.mrb[54].mxu1  ;;  %5936 = vpow2.f32 %v4311_v37  ;;  %vm9527_vm3 = vcmp.lt.f32.partialorder %v4421_v46, 0.0004427343 }
 0x741   : > { %v4299_v15 = vmul.f32 1.442695, %v9451_v33  ;;  %v9462_v29 = vpop.f32.mrb[55].mxu1  ;;  %5938 = vlog2.f32 %v4451_v3  ;;  %v9477_v37 = vadd.f32 %v4186_v16, %v9365_v43  ;;  %v9489_v3 = vmul.f32 100.0, %v9468_v2 }
 0x742   : > { %v4351_v54 = vsel %vm9446_vm12, %v4348_v18, %v4345_v41  ;;  %vm4257_vm11 = vcmp.gt.f32.partialorder %v9451_v33, 20.0 }
 0x743   : > { %v5925_v27 = vpop.eup %5924  ;;  %5940 = vpow2.f32 %v4299_v15  ;;  %v4631_v18 = vmul.f32 0.01, %v4351_v54  ;;  %v9492_v58 = vmul.f32 100.0, %v9477_v37  ;;  %v9501_v15 = vmul.f32 100.0, %v9474_v14 }
 0x744   : > { %v4381_v19 = vmul.f32 0.6931472, %v5925_v27  ;;  %v4192_v35 = vpop.f32.mrb[56].mxu1  ;;  %5942 = vpow2.f32 %v4297_v55  ;;  %v9496_v55 = vadd.f32 %v9381_v17, %v9383_v10  ;;  %v9504_v27 = vadd.f32 %v4182_v57, %v9356_v56 }
 0x745   : > { %v9479_v1 = vpop.eup %5926  ;;  %v9481_v21 = vpop.f32.mrb[57].mxu1  ;;  %v4293_v24 = vmul.f32 1.442695, %v9501_v15 }
 0x746   : > { %v9483_v4 = vpop.eup %5928  ;;  %v4361_v41 = vadd.f32 1.0, %v9479_v1  ;;  %v4387_v8 = vsel %vm4386_vm9, %v4384_v62, %v4381_v19  ;;  %10607 = vst [vmem:[#allocation19_spill] sm:$0xff] %v9496_v55  ;;  %10608 = vst [vmem:[#allocation25_spill] sm:$0xff] %v9504_v27  ;;  %v9511_v62 = vsel %vm4247_vm13, %v9342_v26, %v4631_v18  ;;  %v4364_v46 = vmul.f32 -0.5, %v9479_v1 }
 0x747   : > { %v5931_v31 = vpop.eup %5930  ;;  %v4635_v16 = vmul.f32 0.01, %v4387_v8  ;;  %10609 = vst [vmem:[#allocation23_spill] sm:$0xff] %v9511_v62  ;;  %v4307_v8 = vmul.f32 1.442695, %v9492_v58  ;;  %v9542_v47 = vmul.f32 100.0, %v9504_v27 }
 0x748   : > { %v9498_v25 = vpop.eup %5932  ;;  %5944 = vlog2.f32 %v4361_v41  ;;  %v4417_v54 = vmul.f32 0.6931472, %v5931_v31  ;;  %v9506_v19 = vpop.f32.mrb[58].mxu1  ;;  %v4420_v41 = vmul.f32 %v9417_v13, %v4419_v49  ;;  %v4285_v13 = vmul.f32 1.442695, %v9489_v3 }
 0x749   : > { %v9516_v17 = vsel %vm4251_vm8, %v9351_v53, %v4635_v16  ;;  %v9521_v56 = vpop.f32.mrb[59].mxu1  ;;  %v9523_v57 = vpop.eup %5934  ;;  %v4455_v53 = vadd.f32 1.0, %v4454_v11  ;;  %5946 = vpow2.f32 %v4305_v23  ;;  %v4457_v31 = vand.u32 2147483647, %v9442_v45  ;;  %10613 = vst [vmem:[#allocation21_spill] sm:$0xff] %v9542_v47 }
 0x74a   : > { %10610 = vst [vmem:[#allocation26_spill] sm:$0xff] %v9516_v17  ;;  %v9532_v7 = vpop.eup %5936  ;;  %v4397_v18 = vadd.f32 1.0, %v9523_v57  ;;  %v4423_v49 = vsel %vm9527_vm3, %v4420_v41, %v4417_v54  ;;  %5948 = vpow2.f32 %v4307_v8  ;;  %v4367_v9 = vand.u32 2147483647, %v9479_v1 }
 0x74b   : > { %v5939_v16 = vpop.eup %5938  ;;  %v9551_v54 = vadd.f32 %v9462_v29, %v9365_v43  ;;  %v9554_v41 = vadd.f32 %v4192_v35, %v9383_v10  ;;  %v4639_v5 = vmul.f32 0.01, %v4423_v49  ;;  %v4456_v14 = vmul.f32 %v9442_v45, %v4455_v53 }
 0x74c   : > { %v9544_v23 = vpop.f32.mrb[60].mxu1  ;;  %5950 = vlog2.f32 %v4397_v18  ;;  %v4453_v8 = vmul.f32 0.6931472, %v5939_v16  ;;  %vm4458_vm4 = vcmp.lt.f32.partialorder %v4457_v31, 0.0004427343  ;;  %v4487_v18 = vadd.f32 1.0, %v9532_v7 }
 0x74d   : > { %v9546_v11 = vpop.eup %5940  ;;  %10614 = vst [vmem:[#allocation16_spill] sm:$0xff] %v9551_v54  ;;  %v9556_v26 = vpop.f32.mrb[61].mxu1  ;;  %5952 = vpow2.f32 %v4285_v13  ;;  %v9564_v43 = vmul.f32 100.0, %v9496_v55  ;;  %v4365_v29 = vadd.f32 1.0, %v4364_v46  ;;  %v4400_v35 = vmul.f32 -0.5, %v9523_v57 }
 0x74e   : > { %v4433_v27 = vadd.f32 1.0, %v9546_v11  ;;  %v9560_v2 = vpop.eup %5942  ;;  %v4459_v52 = vsel %vm4458_vm4, %v4456_v14, %v4453_v8  ;;  %v4301_v45 = vmul.f32 1.442695, %v9542_v47  ;;  %v9573_v13 = vmul.f32 100.0, %v9554_v41 }
 0x74f   : > { %v4643_v53 = vmul.f32 0.01, %v4459_v52  ;;  %vm9577_vm15 = vcmp.lt.f32.partialorder %v4367_v9, 0.0004427343  ;;  %v9584_v14 = vsel %vm4255_vm1, %v9360_v40, %v4639_v5  ;;  %v9591_v52 = vadd.f32 %v9394_v20, %v9569_v61 }
 0x750   : > { %5954 = vlog2.f32 %v4433_v27  ;;  %v9567_v49 = vpop.f32.mrb[62].mxu1  ;;  %10617 = vst [vmem:[#allocation24_spill] sm:$0xff] %v9584_v14  ;;  %v9587_v27 = vmul.f32 100.0, %v9551_v54  ;;  %v4315_v8 = vmul.f32 1.442695, %v9573_v13  ;;  %v4366_v40 = vmul.f32 %v9479_v1, %v4365_v29 }
 0x751   : > { %5956 = vpow2.f32 %v4293_v24  ;;  %v9575_v31 = vpop.f32.mrb[63].mxu1  ;;  %v9596_v9 = vsel %vm4259_vm14, %v9369_v39, %v4643_v53  ;;  %v4401_v42 = vadd.f32 1.0, %v4400_v35  ;;  %v9605_v20 = vmul.f32 100.0, %v9591_v52 }
 0x752   : > { %v5945_v16 = vpop.eup %5944  ;;  %10618 = vst [vmem:[#allocation15_spill] sm:$0xff] %v9587_v27  ;;  %10619 = vst [vmem:[#allocation13_spill] sm:$0xff] %v9596_v9  ;;  %5958 = vlog2.f32 %v4487_v18  ;;  %v4436_v51 = vmul.f32 -0.5, %v9546_v11  ;;  %v9611_v39 = vadd.f32 %v9506_v19, %v9569_v61  ;;  %v4309_v53 = vmul.f32 1.442695, %v9587_v27 }
 0x753   : > { %v4363_v24 = vmul.f32 0.6931472, %v5945_v16  ;;  %v9599_v55 = vpop.eup %5946  ;;  %v4403_v16 = vand.u32 2147483647, %v9523_v57  ;;  %5960 = vpow2.f32 %v4315_v8  ;;  %v4490_v8 = vmul.f32 -0.5, %v9532_v7 }
 0x754   : > { %v9613_v18 = vpop.eup %5948  ;;  %5962 = vpow2.f32 %v4301_v45  ;;  %v4319_v19 = vmul.f32 1.442695, %v9605_v20  ;;  %v4402_v54 = vmul.f32 %v9523_v57, %v4401_v42  ;;  %v4439_v14 = vand.u32 2147483647, %v9546_v11 }
 0x755   : > { %v4369_v1 = vsel %vm9577_vm15, %v4366_v40, %v4363_v24  ;;  %v4469_v35 = vadd.f32 1.0, %v9613_v18  ;;  %v9626_v46 = vmul.f32 100.0, %v9611_v39  ;;  %vm4404_vm2 = vcmp.lt.f32.partialorder %v4403_v16, 0.0004427343  ;;  %v9639_v16 = vpop.permute.xlu1 %3957 }
 0x756   : > { %v5951_v29 = vpop.eup %5950  ;;  %v4633_v45 = vmul.f32 0.01, %v4369_v1  ;;  %v4437_v40 = vadd.f32 1.0, %v4436_v51  ;;  %v9632_v47 = vadd.f32 %v9481_v21, %v9383_v10  ;;  %v4472_v62 = vmul.f32 -0.5, %v9613_v18 }
 0x757   : > { %v4399_v5 = vmul.f32 0.6931472, %v5951_v29  ;;  %v9628_v24 = vpop.eup %5952  ;;  %5964 = vlog2.f32 %v4469_v35  ;;  %v4323_v57 = vmul.f32 1.442695, %v9626_v46  ;;  %v4491_v17 = vadd.f32 1.0, %v4490_v8 }
 0x758   : > { %10620 = vst [vmem:[#allocation28_spill] sm:$0xff] %v9632_v47  ;;  %5966 = vpow2.f32 %v4319_v19  ;;  %v4493_v1 = vand.u32 2147483647, %v9532_v7  ;;  %vm9641_vm6 = vcmp.lt.f32.partialorder %v4439_v14, 0.0004427343  ;;  %v9658_v14 = vadd.f32 %v9415_v48, %v9639_v16 }
 0x759   : > { %v4405_v27 = vsel %vm4404_vm2, %v4402_v54, %v4399_v5  ;;  %v4313_v10 = vmul.f32 1.442695, %v9564_v43  ;;  %5968 = vpow2.f32 %v4323_v57  ;;  %v4438_v50 = vmul.f32 %v9546_v11, %v4437_v40 }
 0x75a   : > { %v5955_v9 = vpop.eup %5954  ;;  %v4637_v29 = vmul.f32 0.01, %v4405_v27  ;;  %v9649_v27 = vsel %vm4249_vm10, %v9389_v32, %v4633_v45  ;;  %v9668_v32 = vmul.f32 100.0, %v9632_v47  ;;  %v4473_v48 = vadd.f32 1.0, %v4472_v62 }
 0x75b   : > { %v9635_v42 = vpop.eup %5956  ;;  %v4435_v51 = vmul.f32 0.6931472, %v5955_v9  ;;  %v9662_v9 = vadd.f32 %v9544_v23, %v9639_v16  ;;  %v4475_v23 = vand.u32 2147483647, %v9613_v18  ;;  %v9679_v8 = vmul.f32 100.0, %v9658_v14 }
 0x75c   : > { %v5959_v21 = vpop.eup %5958  ;;  %v9654_v5 = vsel %vm4253_vm0, %v9420_v38, %v4637_v29  ;;  %10623 = vst [vmem:[#allocation20_spill] sm:$0xff] %v9668_v32  ;;  %v9672_v38 = vadd.f32 %v9404_v12, %v9569_v61  ;;  %5970 = vpow2.f32 %v4309_v53  ;;  %v4492_v57 = vmul.f32 %v9532_v7, %v4491_v17 }
 0x75d   : > { %v9674_v22 = vpop.eup %5960  ;;  %v9682_v19 = vmul.f32 100.0, %v9662_v9  ;;  %v4441_v45 = vsel %vm9641_vm6, %v4438_v50, %v4435_v51  ;;  %v4489_v12 = vmul.f32 0.6931472, %v5959_v21  ;;  %vm9690_vm5 = vcmp.lt.f32.partialorder %v4493_v1, 0.0004427343 }
 0x75e   : > { %v9684_v11 = vpop.eup %5962  ;;  %v4505_v40 = vadd.f32 1.0, %v9674_v22  ;;  %5972 = vpow2.f32 %v4313_v10  ;;  %v9696_v29 = vadd.f32 %v9521_v56, %v9569_v61  ;;  %v4317_v35 = vmul.f32 1.442695, %v9668_v32 }
 0x75f   : > { %v9700_v51 = vmul.f32 100.0, %v9672_v38  ;;  %v4327_v53 = vmul.f32 1.442695, %v9679_v8  ;;  %v4641_v21 = vmul.f32 0.01, %v4441_v45  ;;  %v4474_v17 = vmul.f32 %v9613_v18, %v4473_v48 }
 0x760   : > { %10626 = vst [vmem:[#allocation18_spill] sm:$0xff] %v9696_v29  ;;  %5974 = vlog2.f32 %v4505_v40  ;;  %vm9704_vm12 = vcmp.lt.f32.partialorder %v4475_v23, 0.0004427343  ;;  %vm4263_vm13 = vcmp.gt.f32.partialorder %v9413_v63, 20.0  ;;  %v4331_v61 = vmul.f32 1.442695, %v9682_v19  ;;  %v3963_v40 = vpop.permute.xlu0 %3962 }
 0x761   : > { %v5965_v54 = vpop.eup %5964  ;;  %v4495_v10 = vsel %vm9690_vm5, %v4492_v57, %v4489_v12  ;;  %5976 = vpow2.f32 %v4327_v53  ;;  %v9716_v50 = vadd.f32 %v9429_v34, %v9639_v16  ;;  %v4508_v18 = vmul.f32 -0.5, %v9674_v22 }
 0x762   : > { %v9710_v56 = vpop.eup %5966  ;;  %v4471_v1 = vmul.f32 0.6931472, %v5965_v54  ;;  %v9721_v23 = vmul.f32 100.0, %v9696_v29  ;;  %5978 = vpow2.f32 %v4331_v61  ;;  %vm4261_vm8 = vcmp.gt.f32.partialorder %v9492_v58, 20.0 }
 0x763   : > { %10629 = vst [vmem:[#allocation29_spill] sm:$0xff] %v9716_v50  ;;  %v4523_v48 = vadd.f32 1.0, %v9710_v56  ;;  %v9723_v45 = vpop.eup %5968  ;;  %5980 = vpow2.f32 %v4317_v35  ;;  %v4321_v34 = vmul.f32 1.442695, %v9700_v51  ;;  %v4647_v62 = vmul.f32 0.01, %v4495_v10 }
 0x764   : > { %10630 = vst [vmem:[#allocation30_spill] sm:$0xff] %v9721_v23  ;;  %v4477_v12 = vsel %vm9704_vm12, %v4474_v17, %v4471_v1  ;;  %v9730_v53 = vadd.f32 %v9440_v30, %v3963_v40  ;;  %v9735_v54 = vsel %vm4257_vm11, %v9437_v60, %v4641_v21  ;;  %v4511_v61 = vand.u32 2147483647, %v9674_v22 }
 0x765   : > { %v4645_v57 = vmul.f32 0.01, %v4477_v12  ;;  %5982 = vlog2.f32 %v4523_v48  ;;  %v4541_v58 = vadd.f32 1.0, %v9723_v45  ;;  %v9740_v17 = vmul.f32 100.0, %v9716_v50 }
 0x766   : > { %v4509_v7 = vadd.f32 1.0, %v4508_v18  ;;  %v4526_v1 = vmul.f32 -0.5, %v9710_v56  ;;  %v4325_v30 = vmul.f32 1.442695, %v9721_v23  ;;  %v9747_v10 = vpop.eup %5970  ;;  %v4529_v33 = vand.u32 2147483647, %v9710_v56 }
 0x767   : > { %10631 = vst [vmem:[#allocation31_spill] sm:$0xff] %v9740_v17  ;;  %v9743_v35 = vsel %vm4261_vm8, %v9477_v37, %v4645_v57  ;;  %5984 = vlog2.f32 %v4541_v58  ;;  %v9754_v21 = vadd.f32 %v9556_v26, %v9639_v16  ;;  %v4544_v37 = vmul.f32 -0.5, %v9723_v45 }
 0x768   : > { %v9756_v48 = vpop.eup %5972  ;;  %5986 = vpow2.f32 %v4321_v34  ;;  %v9760_v18 = vmul.f32 100.0, %v9730_v53  ;;  %v9763_v12 = vadd.f32 %v9567_v49, %v3963_v40  ;;  %v9768_v58 = vsel %vm4263_vm13, %v9392_v28, %v4647_v62 }
 0x769   : > { %10632 = vst [vmem:[#allocation32_spill] sm:$0xff] %v9754_v21  ;;  %vm9770_vm9 = vcmp.lt.f32.partialorder %v4511_v61, 0.0004427343  ;;  %v4329_v16 = vmul.f32 1.442695, %v9740_v17  ;;  %v4352_v34 = vadd.f32 1.0, %v9483_v4  ;;  %5988 = vpow2.f32 %v4325_v30 }
 0x76a   : > { %v5975_v57 = vpop.eup %5974  ;;  %v4527_v50 = vadd.f32 1.0, %v4526_v1  ;;  %v4547_v29 = vand.u32 2147483647, %v9723_v45  ;;  %v4510_v47 = vmul.f32 %v9674_v22, %v4509_v7  ;;  %vm4267_vm1 = vcmp.gt.f32.partialorder %v9605_v20, 20.0 }
 0x76b   : > { %v4507_v60 = vmul.f32 0.6931472, %v5975_v57  ;;  %v9777_v49 = vpop.eup %5976  ;;  %vm9781_vm3 = vcmp.lt.f32.partialorder %v4529_v33, 0.0004427343  ;;  %v9786_v63 = vmul.f32 100.0, %v9754_v21  ;;  %5990 = vlog2.f32 %v4352_v34 }
 0x76c   : > { %v9788_v62 = vpop.eup %5978  ;;  %vm4265_vm14 = vcmp.gt.f32.partialorder %v9573_v13, 20.0  ;;  %v4545_v61 = vadd.f32 1.0, %v4544_v37  ;;  %v4559_v1 = vadd.f32 1.0, %v9777_v49  ;;  %v4335_v30 = vmul.f32 1.442695, %v9760_v18 }
 0x76d   : > { %10637 = vst [vmem:[#allocation33_spill] sm:$0xff] %v9786_v63  ;;  %v9794_v22 = vmul.f32 100.0, %v9763_v12  ;;  %v9796_v7 = vpop.eup %5980  ;;  %v4577_v33 = vadd.f32 1.0, %v9788_v62  ;;  %5992 = vpow2.f32 %v4329_v16  ;;  %v9800_v57 = vadd.f32 %v9456_v0, %v3963_v40 }
 0x76e   : > { %v9803_v34 = vadd.f32 %v9575_v31, %v3963_v40  ;;  %v4513_v37 = vsel %vm9770_vm9, %v4510_v47, %v4507_v60  ;;  %v4528_v17 = vmul.f32 %v9710_v56, %v4527_v50  ;;  %vm4269_vm4 = vcmp.gt.f32.partialorder %v9626_v46, 20.0 }
 0x76f   : > { %10638 = vst [vmem:[#allocation34_spill] sm:$0xff] %v9800_v57  ;;  %v5983_v21 = vpop.eup %5982  ;;  %vm9809_vm15 = vcmp.lt.f32.partialorder %v4547_v29, 0.0004427343  ;;  %5994 = vlog2.f32 %v4559_v1  ;;  %v4562_v0 = vmul.f32 -0.5, %v9777_v49  ;;  %v4565_v32 = vand.u32 2147483647, %v9777_v49 }
 0x770   : > { %10639 = vst [vmem:[#allocation35_spill] sm:$0xff] %v9803_v34  ;;  %v4525_v16 = vmul.f32 0.6931472, %v5983_v21  ;;  %5996 = vlog2.f32 %v4577_v33  ;;  %v4546_v31 = vmul.f32 %v9723_v45, %v4545_v61  ;;  %v9817_v40 = vmul.f32 1.442695, %v9786_v63 }
 0x771   : > { %5998 = vpow2.f32 %v4335_v30  ;;  %v4339_v47 = vmul.f32 1.442695, %v9794_v22  ;;  %v5985_v56 = vpop.eup %5984  ;;  %v4649_v29 = vmul.f32 0.01, %v4513_v37  ;;  %v9823_v60 = vmul.f32 100.0, %v9800_v57 }
 0x772   : > { %v4531_v50 = vsel %vm9781_vm3, %v4528_v17, %v4525_v16  ;;  %v9826_v21 = vmul.f32 100.0, %v9803_v34  ;;  %v9828_v26 = vpop.eup %5986  ;;  %v4543_v61 = vmul.f32 0.6931472, %v5985_v56  ;;  %v4580_v1 = vmul.f32 -0.5, %v9788_v62 }
 0x773   : > { %v4651_v45 = vmul.f32 0.01, %v4531_v50  ;;  %6000 = vpow2.f32 %v4339_v47  ;;  %v4563_v30 = vadd.f32 1.0, %v4562_v0  ;;  %vm9831_vm10 = vcmp.lt.f32.partialorder %v4565_v32, 0.0004427343  ;;  %v9837_v37 = vpop.eup %5988 }
 0x774   : > { %v4583_v17 = vand.u32 2147483647, %v9788_v62  ;;  %v4355_v28 = vmul.f32 -0.5, %v9483_v4  ;;  %v4549_v56 = vsel %vm9809_vm15, %v4546_v31, %v4543_v61  ;;  %v4358_v0 = vand.u32 2147483647, %v9483_v4 }
 0x775   : > { %v9842_v16 = vsel %vm4267_vm1, %v9591_v52, %v4651_v45  ;;  %v4388_v32 = vadd.f32 1.0, %v9498_v25  ;;  %v5991_v47 = vpop.eup %5990  ;;  %v9851_v50 = vsel %vm4265_vm14, %v9554_v41, %v4649_v29  ;;  %v4653_v63 = vmul.f32 0.01, %v4549_v56 }
 0x776   : > { %10644 = vst [vmem:[#allocation36_spill] sm:$0xff] %v9851_v50  ;;  %v4356_v20 = vadd.f32 1.0, %v4355_v28  ;;  %vm4248_vm0 = vcmp.gt.f32.partialorder %v9386_v44, 20.0  ;;  %v4581_v52 = vadd.f32 1.0, %v4580_v1  ;;  %v4354_v23 = vmul.f32 0.6931472, %v5991_v47 }
 0x777   : > { %6002 = vlog2.f32 %v4388_v32  ;;  %v4391_v31 = vmul.f32 -0.5, %v9498_v25  ;;  %v9857_v45 = vpop.eup %5992  ;;  %v9862_v13 = vsel %vm4269_vm4, %v9611_v39, %v4653_v63  ;;  %v4564_v41 = vmul.f32 %v9777_v49, %v4563_v30 }
 0x778   : > { %v4357_v29 = vmul.f32 %v9483_v4, %v4356_v20  ;;  %v4370_v61 = vadd.f32 1.0, %v9628_v24  ;;  %v4337_v56 = vmul.f32 1.442695, %v9823_v60  ;;  %vm9870_vm2 = vcmp.lt.f32.partialorder %v4358_v0, 0.0004427343 }
 0x779   : > { %v5995_v28 = vpop.eup %5994  ;;  %v4373_v46 = vmul.f32 -0.5, %v9628_v24  ;;  %vm4271_vm6 = vcmp.gt.f32.partialorder %v9679_v8, 20.0  ;;  %vm4273_vm11 = vcmp.gt.f32.partialorder %v9682_v19, 20.0  ;;  %vm9877_vm5 = vcmp.lt.f32.partialorder %v4583_v17, 0.0004427343 }
 0x77a   : > { %v5997_v39 = vpop.eup %5996  ;;  %v4561_v49 = vmul.f32 0.6931472, %v5995_v28  ;;  %v4360_v63 = vsel %vm9870_vm2, %v4357_v29, %v4354_v23  ;;  %6004 = vlog2.f32 %v4370_v61  ;;  %v4582_v47 = vmul.f32 %v9788_v62, %v4581_v52 }
 0x77b   : > { %v5999_v30 = vpop.eup %5998  ;;  %v4579_v0 = vmul.f32 0.6931472, %v5997_v39  ;;  %v4392_v20 = vadd.f32 1.0, %v4391_v31  ;;  %v4394_v1 = vand.u32 2147483647, %v9498_v25  ;;  %v4406_v17 = vadd.f32 1.0, %v9635_v42 }
 0x77c   : > { %v4567_v28 = vsel %vm9831_vm10, %v4564_v41, %v4561_v49  ;;  %v4595_v34 = vadd.f32 1.0, %v5999_v30  ;;  %v4632_v57 = vmul.f32 0.01, %v4360_v63  ;;  %v4598_v23 = vmul.f32 -0.5, %v5999_v30 }
 0x77d   : > { %v6001_v50 = vpop.eup %6000  ;;  %v4585_v32 = vsel %vm9877_vm5, %v4582_v47, %v4579_v0  ;;  %6006 = vpow2.f32 %v4337_v56  ;;  %v4374_v29 = vadd.f32 1.0, %v4373_v46  ;;  %vm4252_vm12 = vcmp.gt.f32.partialorder %v9399_v59, 20.0 }
 0x77e   : > { %6008 = vlog2.f32 %v4595_v34  ;;  %v4601_v62 = vand.u32 2147483647, %v5999_v30  ;;  %v9892_v52 = vmul.f32 1.442695, %v9826_v21  ;;  %v4376_v33 = vand.u32 2147483647, %v9628_v24 }
 0x77f   : > { %v4655_v31 = vmul.f32 0.01, %v4567_v28  ;;  %v4657_v41 = vmul.f32 0.01, %v4585_v32  ;;  %v4613_v61 = vadd.f32 1.0, %v6001_v50  ;;  %v4393_v39 = vmul.f32 %v9498_v25, %v4392_v20 }
 0x780   : > { %v4616_v49 = vmul.f32 -0.5, %v6001_v50  ;;  %vm9896_vm13 = vcmp.lt.f32.partialorder %v4394_v1, 0.0004427343  ;;  %v4664_v34 = vsel %vm4248_vm0, %v9372_v36, %v4632_v57  ;;  %6010 = vlog2.f32 %v4406_v17 }
 0x781   : > { %v6003_v56 = vpop.eup %6002  ;;  %v4599_v46 = vadd.f32 1.0, %v4598_v23  ;;  %6012 = vlog2.f32 %v4613_v61  ;;  %v4375_v63 = vmul.f32 %v9628_v24, %v4374_v29  ;;  %v4409_v0 = vmul.f32 -0.5, %v9635_v42  ;;  %v10664_v29 = vld [vmem:[#allocation12_spill] sm:$0xff] }
 0x782   : > { %vm9905_vm8 = vcmp.lt.f32.partialorder %v4601_v62, 0.0004427343  ;;  %v4390_v25 = vmul.f32 0.6931472, %v6003_v56  ;;  %v4424_v1 = vadd.f32 1.0, %v9560_v2  ;;  %v4427_v20 = vmul.f32 -0.5, %v9560_v2 }
 0x783   : > { %v9914_v36 = vsel %vm4271_vm6, %v9658_v14, %v4655_v31  ;;  %v9919_v44 = vsel %vm4273_vm11, %v9662_v9, %v4657_v41  ;;  %v4619_v24 = vand.u32 2147483647, %v6001_v50  ;;  %v4460_v57 = vadd.f32 1.0, %v9599_v55 }
 0x784   : > { %v6005_v28 = vpop.eup %6004  ;;  %v4617_v17 = vadd.f32 1.0, %v4616_v49  ;;  %v4396_v32 = vsel %vm9896_vm13, %v4393_v39, %v4390_v25  ;;  %v4412_v23 = vand.u32 2147483647, %v9635_v42  ;;  %6014 = vlog2.f32 %v4424_v1 }
 0x785   : > { %vm4250_vm9 = vcmp.gt.f32.partialorder %v9489_v3, 20.0  ;;  %vm4275_vm1 = vcmp.gt.f32.partialorder %v9760_v18, 20.0  ;;  %v4600_v14 = vmul.f32 %v5999_v30, %v4599_v46  ;;  %v4636_v8 = vmul.f32 0.01, %v4396_v32 }
 0x786   : > { %v4372_v19 = vmul.f32 0.6931472, %v6005_v28  ;;  %v4410_v9 = vadd.f32 1.0, %v4409_v0  ;;  %vm9927_vm3 = vcmp.lt.f32.partialorder %v4376_v33, 0.0004427343  ;;  %v4428_v62 = vadd.f32 1.0, %v4427_v20 }
 0x787   : > { %v4430_v31 = vand.u32 2147483647, %v9560_v2  ;;  %6016 = vlog2.f32 %v4460_v57  ;;  %v9932_v41 = vpop.eup %6006  ;;  %vm4254_vm14 = vcmp.gt.f32.partialorder %v9501_v15, 20.0  ;;  %v4668_v61 = vsel %vm4252_vm12, %v9378_v6, %v4636_v8 }
 0x788   : > { %v4378_v30 = vsel %vm9927_vm3, %v4375_v63, %v4372_v19  ;;  %v4463_v33 = vmul.f32 -0.5, %v9599_v55  ;;  %v4442_v39 = vadd.f32 1.0, %v9684_v11  ;;  %v6009_v49 = vpop.eup %6008  ;;  %vm4277_vm4 = vcmp.gt.f32.partialorder %v9794_v22, 20.0 }
 0x789   : > { %v4618_v4 = vmul.f32 %v6001_v50, %v4617_v17  ;;  %vm9943_vm15 = vcmp.lt.f32.partialorder %v4619_v24, 0.0004427343  ;;  %v5342_v46 = vpack.c.bf16 %v4668_v61, %v4664_v34  ;;  %vm9947_vm10 = vcmp.lt.f32.partialorder %v4412_v23, 0.0004427343  ;;  %v10662_v17 = vld [vmem:[#allocation23_spill] sm:$0xff] }
 0x78a   : > { %v4597_v6 = vmul.f32 0.6931472, %v6009_v49  ;;  %v4411_v59 = vmul.f32 %v9635_v42, %v4410_v9  ;;  %6018 = vlog2.f32 %v4442_v39  ;;  %v4445_v63 = vmul.f32 -0.5, %v9684_v11  ;;  %v6011_v25 = vpop.eup %6010  ;;  %v10661_v42 = vld [vmem:[#allocation26_spill] sm:$0xff] }
 0x78b   : > { %5343 = vmatprep.subr.bf16.mxu0 %v5342_v46  ;;  %v4634_v1 = vmul.f32 0.01, %v4378_v30  ;;  %v4429_v50 = vmul.f32 %v9560_v2, %v4428_v62  ;;  %vm9954_vm0 = vcmp.lt.f32.partialorder %v4430_v31, 0.0004427343  ;;  %v4478_v34 = vadd.f32 1.0, %v9747_v10  ;;  %v6013_v24 = vpop.eup %6012  ;;  %v10665_v62 = vld [vmem:[#allocation17_spill] sm:$0xff] }
 0x78c   : > { %v4603_v57 = vsel %vm9905_vm8, %v4600_v14, %v4597_v6  ;;  %v4408_v28 = vmul.f32 0.6931472, %v6011_v25  ;;  %v10663_v32 = vpack.c.bf16 %v10661_v42, %v10662_v17  ;;  %v4464_v23 = vadd.f32 1.0, %v4463_v33  ;;  %v10666_v46 = vld [vmem:[#allocation27_spill] sm:$0xff] }
 0x78d   : > { %v4466_v8 = vand.u32 2147483647, %v9599_v55  ;;  %v4659_v19 = vmul.f32 0.01, %v4603_v57  ;;  %v4615_v2 = vmul.f32 0.6931472, %v6013_v24  ;;  %6020 = vlog2.f32 %v4478_v34 }
 0x78e   : > { %5345 = vmatpush1.bf16.msra.mxu0 %v10663_v32  ;;  %v4481_v9 = vmul.f32 -0.5, %v9747_v10  ;;  %vm4256_vm2 = vcmp.gt.f32.partialorder %v10664_v29, 20.0  ;;  %vm4260_vm6 = vcmp.gt.f32.partialorder %v10665_v62, 20.0  ;;  %v4414_v47 = vsel %vm9947_vm10, %v4411_v59, %v4408_v28  ;;  %v6015_v30 = vpop.eup %6014  ;;  %v10667_v24 = vld [vmem:[#allocation14_spill] sm:$0xff]  ;;  %v10672_v29 = vld [vmem:[#allocation15_spill] sm:$0xff] }
 0x78f   : > { %v4446_v14 = vadd.f32 1.0, %v4445_v63  ;;  %v4448_v31 = vand.u32 2147483647, %v9684_v11  ;;  %v4496_v61 = vadd.f32 1.0, %v9756_v48  ;;  %v9975_v33 = vsel %vm4275_vm1, %v9730_v53, %v4659_v19  ;;  %v10669_v19 = vld [vmem:[#allocation11_spill] sm:$0xff] }
 0x790   : > { %v4621_v39 = vsel %vm9943_vm15, %v4618_v4, %v4615_v2  ;;  %v4638_v49 = vmul.f32 0.01, %v4414_v47  ;;  %v4666_v0 = vsel %vm4250_vm9, %v10666_v46, %v4634_v1  ;;  %v5356_v6 = vpack.c.bf16 %v9975_v33, %v9914_v36  ;;  %v4698_v36 = vld [vmem:[#allocation5 + $0x158] sm:$0xff]  ;;  %v4708_v33 = vpop.permute.xlu1 %4707 }
 0x791   : > { %v4661_v59 = vmul.f32 0.01, %v4621_v39  ;;  %v4426_v63 = vmul.f32 0.6931472, %v6015_v30  ;;  %v4465_v25 = vmul.f32 %v9599_v55, %v4464_v23  ;;  %v6017_v34 = vpop.eup %6016  ;;  %v4482_v18 = vadd.f32 1.0, %v4481_v9  ;;  %v10670_v9 = vld [vmem:[#allocation22_spill] sm:$0xff] }
 0x792   : > { %v4670_v53 = vsel %vm4254_vm14, %v10667_v24, %v4638_v49  ;;  %6022 = vlog2.f32 %v4496_v61  ;;  %v4499_v4 = vmul.f32 -0.5, %v9756_v48  ;;  %v4462_v57 = vmul.f32 0.6931472, %v6017_v34 }
 0x793   : > { %v9992_v3 = vsel %vm4277_vm4, %v9763_v12, %v4661_v59  ;;  %v5358_v56 = vpack.c.bf16 %v4670_v53, %v4666_v0  ;;  %v4432_v1 = vsel %vm9954_vm0, %v4429_v50, %v4426_v63  ;;  %6024 = vpow2.f32 %v9817_v40  ;;  %v10673_v59 = vld [vmem:[#allocation13_spill] sm:$0xff]  ;;  %v10674_v63 = vld [vmem:[#allocation24_spill] sm:$0xff] }
 0x794   : > { %v5372_v55 = vpack.c.bf16 %v9992_v3, %v9919_v44  ;;  %vm4467_vm11 = vcmp.lt.f32.partialorder %v4466_v8, 0.0004427343  ;;  %v4640_v15 = vmul.f32 0.01, %v4432_v1  ;;  %v6019_v28 = vpop.eup %6018  ;;  %6026 = vpow2.f32 %v9892_v52  ;;  %v10676_v1 = vld [vmem:[#allocation25_spill] sm:$0xff]  ;;  %v4699_v44 = vld [vmem:[#allocation5 + $0x160] sm:$0xff] }
 0x795   : > { %5359 = vmatprep.subr.bf16.mxu1 %v5358_v56  ;;  %v4468_v42 = vsel %vm4467_vm11, %v4465_v25, %v4462_v57  ;;  %v4484_v12 = vand.u32 2147483647, %v9747_v10  ;;  %v4532_v22 = vadd.f32 1.0, %v9828_v26  ;;  %v10668_v50 = vpack.c.bf16 %v9654_v5, %v9649_v27 }
 0x796   : > { %v4644_v20 = vmul.f32 0.01, %v4468_v42  ;;  %v4444_v40 = vmul.f32 0.6931472, %v6019_v28  ;;  %v4447_v17 = vmul.f32 %v9684_v11, %v4446_v14  ;;  %v4514_v32 = vadd.f32 1.0, %v9796_v7 }
 0x797   : > { %5361 = vmatpush1.bf16.msra.mxu1 %v10668_v50  ;;  %vm4449_vm5 = vcmp.lt.f32.partialorder %v4448_v31, 0.0004427343  ;;  %v4483_v23 = vmul.f32 %v9747_v10, %v4482_v18  ;;  %v4500_v52 = vadd.f32 1.0, %v4499_v4  ;;  %6028 = vlog2.f32 %v4532_v22  ;;  %v6021_v8 = vpop.eup %6020  ;;  %v10671_v10 = vld [vmem:[#allocation21_spill] sm:$0xff] }
 0x798   : > { %v4672_v2 = vsel %vm4256_vm2, %v10669_v19, %v4640_v15  ;;  %v4676_v27 = vsel %vm4260_vm6, %v10670_v9, %v4644_v20  ;;  %v4450_v5 = vsel %vm4449_vm5, %v4447_v17, %v4444_v40  ;;  %6030 = vlog2.f32 %v4514_v32  ;;  %v10677_v15 = vld [vmem:[#allocation16_spill] sm:$0xff] }
 0x799   : > { %v5346_v47 = vpack.c.bf16 %v4676_v27, %v4672_v2  ;;  %v4480_v11 = vmul.f32 0.6931472, %v6021_v8  ;;  %v4535_v14 = vmul.f32 -0.5, %v9828_v26  ;;  %v4517_v31 = vmul.f32 -0.5, %v9796_v7 }
 0x79a   : > { %vm4258_vm12 = vcmp.gt.f32.partialorder %v10671_v10, 20.0  ;;  %vm4485_vm13 = vcmp.lt.f32.partialorder %v4484_v12, 0.0004427343  ;;  %v4642_v61 = vmul.f32 0.01, %v4450_v5  ;;  %v4550_v30 = vadd.f32 1.0, %v9837_v37 }
 0x79b   : > { %vm4262_vm8 = vcmp.gt.f32.partialorder %v10672_v29, 20.0  ;;  %5347 = vmatprep.subr.bf16.mxu0 %v5346_v47  ;;  %v4486_v39 = vsel %vm4485_vm13, %v4483_v23, %v4480_v11  ;;  %v4502_v62 = vand.u32 2147483647, %v9756_v48  ;;  %v4568_v49 = vadd.f32 1.0, %v9857_v45 }
 0x79c   : > { %v6023_v46 = vpop.eup %6022  ;;  %v4646_v0 = vmul.f32 0.01, %v4486_v39  ;;  %v10675_v25 = vpack.c.bf16 %v10673_v59, %v10674_v63  ;;  %v4501_v34 = vmul.f32 %v9756_v48, %v4500_v52  ;;  %v4538_v24 = vand.u32 2147483647, %v9828_v26  ;;  %v10687_v59 = vld [vmem:[#allocation19_spill] sm:$0xff] }
 0x79d   : > { %6032 = vlog2.f32 %v4550_v30  ;;  %v4498_v53 = vmul.f32 0.6931472, %v6023_v46  ;;  %v4536_v18 = vadd.f32 1.0, %v4535_v14  ;;  %v4518_v4 = vadd.f32 1.0, %v4517_v31  ;;  %v10026_v56 = vpop.eup %6024 }
 0x79e   : > { %5349 = vmatpush1.bf16.msra.mxu0 %v10675_v25  ;;  %6034 = vlog2.f32 %v4568_v49  ;;  %v4674_v57 = vsel %vm4258_vm12, %v10676_v1, %v4642_v61  ;;  %v4678_v28 = vsel %vm4262_vm8, %v10677_v15, %v4646_v0  ;;  %v4553_v42 = vmul.f32 -0.5, %v9837_v37  ;;  %v10036_v12 = vpop.eup %6026  ;;  %v10699_v61 = vld [vmem:[#allocation34_spill] sm:$0xff] }
 0x79f   : > { %v4604_v48 = vadd.f32 1.0, %v9932_v41  ;;  %vm4264_vm9 = vcmp.gt.f32.partialorder %v9564_v43, 20.0  ;;  %v5362_v22 = vpack.c.bf16 %v4678_v28, %v4674_v57  ;;  %vm10039_vm1 = vcmp.lt.f32.partialorder %v4502_v62, 0.0004427343  ;;  %v10690_v28 = vld [vmem:[#allocation20_spill] sm:$0xff] }
 0x7a0   : > { %v4504_v20 = vsel %vm10039_vm1, %v4501_v34, %v4498_v53  ;;  %v4520_v40 = vand.u32 2147483647, %v9796_v7  ;;  %v4571_v17 = vmul.f32 -0.5, %v9857_v45  ;;  %vm4268_vm3 = vcmp.gt.f32.partialorder %v9700_v51, 20.0 }
 0x7a1   : > { %6036 = vlog2.f32 %v4604_v48  ;;  %v6029_v32 = vpop.eup %6028  ;;  %5363 = vmatprep.subr.bf16.mxu1 %v5362_v22  ;;  %vm10048_vm14 = vcmp.lt.f32.partialorder %v4538_v24, 0.0004427343  ;;  %v4556_v52 = vand.u32 2147483647, %v9837_v37  ;;  %v4586_v8 = vadd.f32 1.0, %v10026_v56  ;;  %v10691_v48 = vld [vmem:[#allocation30_spill] sm:$0xff] }
 0x7a2   : > { %v6031_v19 = vpop.eup %6030  ;;  %v10682_v2 = vpack.c.bf16 %v9743_v35, %v9735_v54  ;;  %v4534_v9 = vmul.f32 0.6931472, %v6029_v32  ;;  %v4537_v27 = vmul.f32 %v9828_v26, %v4536_v18  ;;  %v4519_v5 = vmul.f32 %v9796_v7, %v4518_v4  ;;  %v10694_v32 = vld [vmem:[#allocation18_spill] sm:$0xff] }
 0x7a3   : > { %v4554_v47 = vadd.f32 1.0, %v4553_v42  ;;  %v4648_v11 = vmul.f32 0.01, %v4504_v20  ;;  %v4516_v14 = vmul.f32 0.6931472, %v6031_v19  ;;  %v4607_v31 = vmul.f32 -0.5, %v9932_v41 }
 0x7a4   : > { %5365 = vmatpush1.bf16.msra.mxu1 %v10682_v2  ;;  %6038 = vlog2.f32 %v4586_v8  ;;  %v4540_v10 = vsel %vm10048_vm14, %v4537_v27, %v4534_v9  ;;  %vm10062_vm4 = vcmp.lt.f32.partialorder %v4520_v40, 0.0004427343  ;;  %v4572_v54 = vadd.f32 1.0, %v4571_v17  ;;  %v10693_v40 = vld [vmem:[#allocation28_spill] sm:$0xff] }
 0x7a5   : > { %v4622_v35 = vadd.f32 1.0, %v10036_v12  ;;  %v4652_v30 = vmul.f32 0.01, %v4540_v10  ;;  %v4522_v7 = vsel %vm10062_vm4, %v4519_v5, %v4516_v14  ;;  %vm10069_vm15 = vcmp.lt.f32.partialorder %v4556_v52, 0.0004427343 }
 0x7a6   : > { %v4574_v29 = vand.u32 2147483647, %v9857_v45  ;;  %v4555_v62 = vmul.f32 %v9837_v37, %v4554_v47  ;;  %v4610_v49 = vand.u32 2147483647, %v9932_v41  ;;  %v4589_v46 = vmul.f32 -0.5, %v10026_v56  ;;  %v10695_v47 = vld [vmem:[#allocation31_spill] sm:$0xff] }
 0x7a7   : > { %v6033_v39 = vpop.eup %6032  ;;  %6040 = vlog2.f32 %v4622_v35  ;;  %v4680_v63 = vsel %vm4264_vm9, %v10687_v59, %v4648_v11  ;;  %v4684_v25 = vsel %vm4268_vm3, %v9672_v38, %v4652_v30  ;;  %v4608_v24 = vadd.f32 1.0, %v4607_v31  ;;  %v10696_v11 = vld [vmem:[#allocation36_spill] sm:$0xff]  ;;  %v10698_v31 = vld [vmem:[#allocation29_spill] sm:$0xff] }
 0x7a8   : > { %v6035_v0 = vpop.eup %6034  ;;  %v4552_v34 = vmul.f32 0.6931472, %v6033_v39  ;;  %v5350_v53 = vpack.c.bf16 %v4684_v25, %v4680_v63  ;;  %v4650_v18 = vmul.f32 0.01, %v4522_v7  ;;  %v4573_v37 = vmul.f32 %v9857_v45, %v4572_v54  ;;  %v10700_v39 = vld [vmem:[#allocation33_spill] sm:$0xff] }
 0x7a9   : > { %v4570_v4 = vmul.f32 0.6931472, %v6035_v0  ;;  %vm10086_vm10 = vcmp.lt.f32.partialorder %v4574_v29, 0.0004427343  ;;  %v4625_v43 = vmul.f32 -0.5, %v10036_v12  ;;  %vm4266_vm0 = vcmp.gt.f32.partialorder %v10690_v28, 20.0 }
 0x7aa   : > { %v4558_v1 = vsel %vm10069_vm15, %v4555_v62, %v4552_v34  ;;  %5351 = vmatprep.subr.bf16.mxu0 %v5350_v53  ;;  %v4590_v42 = vadd.f32 1.0, %v4589_v46  ;;  %vm4270_vm2 = vcmp.gt.f32.partialorder %v10691_v48, 20.0  ;;  %v10692_v45 = vpack.c.bf16 %v9842_v16, %v9768_v58  ;;  %v10701_v62 = vld [vmem:[#allocation32_spill] sm:$0xff]  ;;  %v10702_v46 = vld [vmem:[#allocation35_spill] sm:$0xff]  ;;  %v4696_v63 = vld [vmem:[#allocation5 + $0x148] sm:$0xff]  ;;  %v4713_v34 = vpop.permute.xlu0 %4712 }
 0x7ab   : > { %v6037_v15 = vpop.eup %6036  ;;  %v4654_v38 = vmul.f32 0.01, %v4558_v1  ;;  %v4576_v51 = vsel %vm10086_vm10, %v4573_v37, %v4570_v4  ;;  %v4609_v50 = vmul.f32 %v9932_v41, %v4608_v24  ;;  %v4592_v20 = vand.u32 2147483647, %v10026_v56 }
 0x7ac   : > { %5353 = vmatpush1.bf16.msra.mxu0 %v10692_v45  ;;  %v4606_v22 = vmul.f32 0.6931472, %v6037_v15  ;;  %v4682_v17 = vsel %vm4266_vm0, %v10693_v40, %v4650_v18  ;;  %vm4611_vm6 = vcmp.lt.f32.partialorder %v4610_v49, 0.0004427343  ;;  %v4656_v52 = vmul.f32 0.01, %v4576_v51 }
 0x7ad   : > { %v4686_v23 = vsel %vm4270_vm2, %v10694_v32, %v4654_v38  ;;  %v4626_v9 = vadd.f32 1.0, %v4625_v43  ;;  %v4591_v58 = vmul.f32 %v10026_v56, %v4590_v42  ;;  %v4628_v16 = vand.u32 2147483647, %v10036_v12  ;;  %v4718_v43 = vpop.permute.xlu1 %4717 }
 0x7ae   : > { %v6039_v8 = vpop.eup %6038  ;;  %v5366_v19 = vpack.c.bf16 %v4686_v23, %v4682_v17  ;;  %v4612_v2 = vsel %vm4611_vm6, %v4609_v50, %v4606_v22  ;;  %vm4272_vm11 = vcmp.gt.f32.partialorder %v10695_v47, 20.0  ;;  %vm4276_vm5 = vcmp.gt.f32.partialorder %v9823_v60, 20.0  ;;  %v4723_v50 = vpop.permute.xlu0 %4722 }
 0x7af   : > { %v4660_v27 = vmul.f32 0.01, %v4612_v2  ;;  %v4588_v5 = vmul.f32 0.6931472, %v6039_v8  ;;  %vm4593_vm12 = vcmp.lt.f32.partialorder %v4592_v20, 0.0004427343  ;;  %v10697_v14 = vpack.c.bf16 %v9862_v13, %v10696_v11 }
 0x7b0   : > { %5367 = vmatprep.subr.bf16.mxu1 %v5366_v19  ;;  %v4688_v10 = vsel %vm4272_vm11, %v10698_v31, %v4656_v52  ;;  %v4627_v7 = vmul.f32 %v10036_v12, %v4626_v9  ;;  %vm4629_vm13 = vcmp.lt.f32.partialorder %v4628_v16, 0.0004427343  ;;  %v4695_v13 = vld [vmem:[#allocation5 + $0x140] sm:$0xff]  ;;  %vm4274_vm8 = vcmp.gt.f32.partialorder %v10700_v39, 20.0 }
 0x7b1   : > { %v6041_v41 = vpop.eup %6040  ;;  %5369 = vmatpush1.bf16.msra.mxu1 %v10697_v14  ;;  %v4692_v54 = vsel %vm4276_vm5, %v10699_v61, %v4660_v27  ;;  %v4594_v35 = vsel %vm4593_vm12, %v4591_v58, %v4588_v5  ;;  %vm4278_vm9 = vcmp.gt.f32.partialorder %v9826_v21, 20.0  ;;  %v10703_v12 = vmov 0.0   ;;  %v4697_v21 = vld [vmem:[#allocation5 + $0x150] sm:$0xff]  ;;  %v4728_v2 = vpop.permute.xlu1 %4727 }
 0x7b2   : > { %v5354_v30 = vpack.c.bf16 %v4692_v54, %v4688_v10  ;;  %v4624_v56 = vmul.f32 0.6931472, %v6041_v41  ;;  %v4658_v26 = vmul.f32 0.01, %v4594_v35 }
 0x7b4   : > { %5355 = vmatprep.subr.bf16.mxu0 %v5354_v30  ;;  %v4630_v60 = vsel %vm4629_vm13, %v4627_v7, %v4624_v56  ;;  %v4690_v49 = vsel %vm4274_vm8, %v10701_v62, %v4658_v26 }
 0x7b5   : > { %v4662_v29 = vmul.f32 0.01, %v4630_v60  ;;  %5357 = vmatpush1.bf16.msra.mxu0 %v5356_v6 }
 0x7b7   : > { %v4694_v0 = vsel %vm4278_vm9, %v10702_v46, %v4662_v29 }
 0x7b8   : > { %v5370_v59 = vpack.c.bf16 %v4694_v0, %v4690_v49  ;;  %5206 = vmatmul.mubr.msk.f32.vlgmr.msra.gmra.mrb[64].mxu0 %vm2393_vm7, %v4695_v13 }
 0x7b9   : > { %4815 = vmatprep.mubr.f32.mxu0 %v10703_v12 }
 0x7ba   : > { %5371 = vmatprep.subr.bf16.mxu1 %v5370_v59 }
 0x7bb   : > { %5373 = vmatpush1.bf16.msra.mxu1 %v5372_v55 }
 0x7bc   : > { %5207 = vmatmul.mubr.msk.f32.gmra.mrb[66].mxu0 %vm2393_vm7, %v4696_v63 }
 0x7bd   : > { %4821 = vmatprep.mubr.f32.mxu0 %v10703_v12 }
 0x7be   : > { %5211 = vmatmul.mubr.msk.f32.vlgmr.msra.gmra.mrb[64].mxu1 %vm2393_vm7, %v4695_v13 }
 0x7bf   : > { %4910 = vmatprep.mubr.f32.mxu1 %v10703_v12 }
 0x7c0   : > { %5208 = vmatmul.mubr.msk.f32.gmra.mrb[68].mxu0 %vm2393_vm7, %v4697_v21 }
 0x7c1   : > { %4827 = vmatprep.mubr.f32.mxu0 %v10703_v12 }
 0x7c2   : > { %5212 = vmatmul.mubr.msk.f32.gmra.mrb[66].mxu1 %vm2393_vm7, %v4696_v63 }
 0x7c3   : > { %4916 = vmatprep.mubr.f32.mxu1 %v10703_v12 }
 0x7c4   : > { %5209 = vmatmul.mubr.msk.f32.gmra.mrb[70].mxu0 %vm2393_vm7, %v4698_v36 }
 0x7c5   : > { %4833 = vmatprep.mubr.f32.mxu0 %v10703_v12 }
 0x7c6   : > { %5213 = vmatmul.mubr.msk.f32.gmra.mrb[68].mxu1 %vm2393_vm7, %v4697_v21 }
 0x7c7   : > { %4922 = vmatprep.mubr.f32.mxu1 %v10703_v12 }
 0x7c8   : > { %5210 = vmatmul.mubr.msk.f32.gmra.mrb[72].mxu0 %vm2393_vm7, %v4699_v44 }
 0x7ca   : > { %5214 = vmatmul.mubr.msk.f32.gmra.mrb[70].mxu1 %vm2393_vm7, %v4698_v36 }
 0x7cb   : > { %4928 = vmatprep.mubr.f32.mxu1 %v10703_v12 }
 0x7ce   : > { %5215 = vmatmul.mubr.msk.f32.gmra.mrb[72].mxu1 %vm2393_vm7, %v4699_v44 }
 0x88b   : > { %v4811_v6 = vpop.f32.mrb[64].mxu0 }
 0x88c   : > { %v4812_v3 = vadd.f32 %v4811_v6, %v4708_v33  ;;  %v4813_v55 = vpop.f32.mrb[65].mxu0 }
 0x88d   : > { %v4814_v25 = vadd.f32 %v4813_v55, %v4708_v33 }
 0x88e   : > { %4935 = vst [vmem:[%s10141_s17] sm:$0xff] %v4812_v3 }
 0x88f   : > { %4936 = vst [vmem:[%s10141_s17 + $0x8] sm:$0xff] %v4814_v25  ;;  %v4817_v24 = vpop.f32.mrb[66].mxu0 }
 0x890   : > { %v4818_v53 = vadd.f32 %v4817_v24, %v4713_v34  ;;  %v4819_v18 = vpop.f32.mrb[67].mxu0 }
 0x891   : > { %v4906_v4 = vpop.f32.mrb[64].mxu1  ;;  %v4820_v37 = vadd.f32 %v4819_v18, %v4713_v34 }
 0x892   : > { %v4907_v1 = vadd.f32 %v4906_v4, %v4708_v33  ;;  %v4908_v57 = vpop.f32.mrb[65].mxu1  ;;  %4939 = vst [vmem:[%s10141_s17 + $0x20] sm:$0xff] %v4818_v53 }
 0x893   : > { %v4909_v15 = vadd.f32 %v4908_v57, %v4708_v33  ;;  %4940 = vst [vmem:[%s10141_s17 + $0x28] sm:$0xff] %v4820_v37  ;;  %v4823_v28 = vpop.f32.mrb[68].mxu0 }
 0x894   : > { %4937 = vst [vmem:[%s10141_s17 + $0x10] sm:$0xff] %v4907_v1  ;;  %v4824_v38 = vadd.f32 %v4823_v28, %v4718_v43  ;;  %v4825_v51 = vpop.f32.mrb[69].mxu0 }
 0x895   : > { %4938 = vst [vmem:[%s10141_s17 + $0x18] sm:$0xff] %v4909_v15  ;;  %v4912_v42 = vpop.f32.mrb[66].mxu1  ;;  %v4826_v48 = vadd.f32 %v4825_v51, %v4718_v43 }
 0x896   : > { %v4913_v45 = vadd.f32 %v4912_v42, %v4713_v34  ;;  %v4914_v22 = vpop.f32.mrb[67].mxu1  ;;  %4943 = vst [vmem:[%s10141_s17 + $0x40] sm:$0xff] %v4824_v38 }
 0x897   : > { %v4915_v20 = vadd.f32 %v4914_v22, %v4713_v34  ;;  %4944 = vst [vmem:[%s10141_s17 + $0x48] sm:$0xff] %v4826_v48  ;;  %v4829_v40 = vpop.f32.mrb[70].mxu0 }
 0x898   : > { %4941 = vst [vmem:[%s10141_s17 + $0x30] sm:$0xff] %v4913_v45  ;;  %v4830_v17 = vadd.f32 %v4829_v40, %v4723_v50  ;;  %v4831_v32 = vpop.f32.mrb[71].mxu0 }
 0x899   : > { %4942 = vst [vmem:[%s10141_s17 + $0x38] sm:$0xff] %v4915_v20  ;;  %v4918_v23 = vpop.f32.mrb[68].mxu1  ;;  %v4832_v52 = vadd.f32 %v4831_v32, %v4723_v50 }
 0x89a   : > { %v4919_v8 = vadd.f32 %v4918_v23, %v4718_v43  ;;  %v4920_v19 = vpop.f32.mrb[69].mxu1  ;;  %4947 = vst [vmem:[%s10141_s17 + $0x60] sm:$0xff] %v4830_v17 }
 0x89b   : > { %v4921_v9 = vadd.f32 %v4920_v19, %v4718_v43  ;;  %4948 = vst [vmem:[%s10141_s17 + $0x68] sm:$0xff] %v4832_v52  ;;  %v4835_v27 = vpop.f32.mrb[72].mxu0 }
 0x89c   : > { %4945 = vst [vmem:[%s10141_s17 + $0x50] sm:$0xff] %v4919_v8  ;;  %v4836_v5 = vadd.f32 %v4835_v27, %v4728_v2  ;;  %v4837_v58 = vpop.f32.mrb[73].mxu0 }
 0x89d   : > { %4946 = vst [vmem:[%s10141_s17 + $0x58] sm:$0xff] %v4921_v9  ;;  %v4924_v16 = vpop.f32.mrb[70].mxu1  ;;  %v4838_v47 = vadd.f32 %v4837_v58, %v4728_v2 }
 0x89e   : > { %v4925_v41 = vadd.f32 %v4924_v16, %v4723_v50  ;;  %v4926_v11 = vpop.f32.mrb[71].mxu1  ;;  %4951 = vst [vmem:[%s10141_s17 + $0x80] sm:$0xff] %v4836_v5 }
 0x89f   : > { %v4927_v14 = vadd.f32 %v4926_v11, %v4723_v50  ;;  %4952 = vst [vmem:[%s10141_s17 + $0x88] sm:$0xff] %v4838_v47 }
 0x8a0   : > { %4949 = vst [vmem:[%s10141_s17 + $0x70] sm:$0xff] %v4925_v41 }
 0x8a1   : > { %4950 = vst [vmem:[%s10141_s17 + $0x78] sm:$0xff] %v4927_v14  ;;  %v4930_v31 = vpop.f32.mrb[72].mxu1 }
 0x8a2   : > { %v4931_v10 = vadd.f32 %v4930_v31, %v4728_v2  ;;  %v4932_v61 = vpop.f32.mrb[73].mxu1 }
 0x8a3   : > { %v4933_v54 = vadd.f32 %v4932_v61, %v4728_v2 }
 0x8a4   : > { %4953 = vst [vmem:[%s10141_s17 + $0x90] sm:$0xff] %v4931_v10 }
 0x8a5   : > { %4954 = vst [vmem:[%s10141_s17 + $0x98] sm:$0xff] %v4933_v54 }
 0x8a6   : > { %6115 = shalt.err (!%p6112_p7)
}
 0x8a7   : > { %s6116_s7 = scalar_lea.hbm %s10166_s30, 2560  ;;  %s6120_s25 = scalar_lea.hbm %s10215_s2, 10240 }
 0x8a8   : > { %p6117_p9 = scmp.ne.s32.totalorder %s10166_s30, %s6116_s7  ;;  %p6121_p0 = scmp.lt.u32.totalorder %s10166_s30, %s10215_s2 }
 0x8a9   : > { %p6122_p10 = scmp.lt.u32.totalorder %s6120_s25, %s6116_s7  ;;  %p6124_p1 = scmp.lt.u32.totalorder %s6116_s7, %s10166_s30 }
 0x8aa   : > { %p6118_p11 = pnand %p6117_p9, %p6289_p12 }
 0x8ab   : > { %p6123_p2 = por %p6122_p10, %p6121_p0 }
 0x8ac   : > { %p6119_p5 = pneg %p6118_p11 }
 0x8ad   : > { %p6125_p4 = por %p6124_p1, %p6123_p2 }
 0x8af   : > { %p6126_p6 = pnand %p6125_p4, %p6119_p5 }
 0x8b1   : > { %6129 = shalt.err (!%p6126_p6)
}
 0x8b2   : > { %s6188_s29 = smov 512   ;;  %s6189_s15 = smov 2048  }
 0x8b3   : > { %s6190_s17 = smov 32  }
 0x8b4   : > { %5461 = dma.vmem_to_hbm [thread:$0]  (%p6289_p12), %s10168_s22, 2560, %s10166_s30, %s4956_s13, %s6188_s29, %s6189_s15, %s6190_s17  }
 0x8b5 PF: > { %p5478_p8 = scmp.ge.s32.totalorder %s6172_s12, 2  ;;  %s4984_s27 = sand.u32 1, %s6160_s9  }
 0x8b6   : > { %p10704_p13 = scmp.ne.s32.totalorder %s10330_s16, 0  ;;  %s4985_s23 = scalar_lea.sflag [#allocation4], %s4984_s27 }
 0x8b8   : > { %p5472_p3 = pnand %p5478_p8, %p10704_p13 }
 0x8ba   : > { %6155 = dma.done.wait (!%p5472_p3), %s4985_s23, 2560  }
 0x8bb   : > { %6157 = vsyncadd (!%p5472_p3), %s4985_s23, 4294964736  ;;  %p16_p7 = scmp.ge.s32.totalorder %s6259_s21, 6   ;;  %s10705_s9 = smov %s6164_s10 }
 0x8bc   : > { %s10706_s10 = smov %s6168_s11  ;;  %s10707_s11 = smov %s6285_s8 }
 0x8bd   : > { %s10708_s12 = smov %s6259_s21  ;;  %18 = sbr.rel (!%p16_p7) target bundleno = 6 (0x6), region = 77 }
 0x8c4   :  { %4990 = vsyncpa [#allocation3], 1 }
 0x8c5   :  { %4992 = vsyncpa [#allocation3 + $0x1], 1 }
 0x8c6   :  { %4993 = vsyncpa [#allocation6], 1 }
 0x8c7   :  { %4994 = vsyncpa [#allocation4], 1 }
 0x8c8   :  { %4996 = vsyncpa [#allocation4 + $0x1], 1 }

</bundles_post_ra>
